<compile_context>
chip_gen: v7x
topology: tpu7x:2x2x1
jax: 0.10.0
libtpu: 0.0.40
codegen_flags: <defaults>
</compile_context>

<pallas_src>
import functools

import jax
import jax.numpy as jnp
from jax import lax
from jax.experimental import pallas as pl
from jax.experimental.pallas import tpu as pltpu

BN_EPS = 1e-5

_WEIGHT_ORDER = ("cw1", "aff1", "cw2", "aff2", "cw3", "aff3", "w1", "b1",
                 "w4t", "aff4", "w5t", "aff5", "w2", "b2",
                 "wx", "wh", "lb", "wout", "bout")


# ---------------------------------------------------------------------------
# The fused kernel: one grid step processes `block_b` batch elements.
# ---------------------------------------------------------------------------
def _seprnn_kernel(sx_ref, tx_ref, qx_ref,
                   cw1_ref, aff1_ref, cw2_ref, aff2_ref, cw3_ref, aff3_ref,
                   w1_ref, b1_ref,
                   w4t_ref, aff4_ref, w5t_ref, aff5_ref, w2_ref, b2_ref,
                   wx_ref, wh_ref, lb_ref, wout_ref, bout_ref,
                   o_ref, *, stride, hidden, lbl, seq_len, block_b, conv_dims):
    f32 = jnp.float32

    def conv_windows(act, k, oh):
        # Stack the k shifted row windows along lanes -> (oh, k * cols_in).
        if stride == 1:
            parts = [act[i:i + oh, :] for i in range(k)]
        else:
            parts = [lax.slice(act, (i, 0),
                               (i + (oh - 1) * stride + 1, act.shape[1]),
                               (stride, 1)) for i in range(k)]
        return jnp.concatenate(parts, axis=1)

    def conv_bn_relu(act, cw_ref, aff_ref, k, oh):
        # ONE matmul per conv layer (bands folded into K); folded BN + ReLU.
        win = conv_windows(act, k, oh)
        out = jnp.dot(win, cw_ref[...], preferred_element_type=f32)
        return jnp.maximum(out * aff_ref[0:1, :] + aff_ref[1:2, :], 0.0)

    (k1, oh1), (k2, oh2), (k3, oh3) = conv_dims

    # ---------------- branch 1: conv stack (per sample) + batched fc1 -------
    flat_rows = []
    for s in range(block_b):
        a = sx_ref[s]                                    # (H, W*Cin) channel-last
        a = conv_bn_relu(a, cw1_ref, aff1_ref, k1, oh1)
        a = conv_bn_relu(a, cw2_ref, aff2_ref, k2, oh2)
        a = conv_bn_relu(a, cw3_ref, aff3_ref, k3, oh3)  # (oh3, ow3*C3)
        flat_rows.append(jnp.concatenate([a[r:r + 1, :] for r in range(oh3)],
                                         axis=1))        # (1, oh3*ow3*C3)
    x1in = jnp.concatenate(flat_rows, axis=0)            # (block_b, K1)
    x1 = jnp.maximum(jnp.dot(x1in, w1_ref[...], preferred_element_type=f32)
                     + b1_ref[...], 0.0)                 # (block_b, H)

    # ---------------- branch 2: conv4/conv5 as VPU FMAs + batched fc2 -------
    # Lane layout: col = f2*F + m (PyTorch's fc2 flatten order), so fc2_w.T
    # is used verbatim and no in-kernel flatten/transpose is needed.
    txf = tx_ref[...]                                    # (block_b, lbl*lbl), col = c*lbl + l
    w4t = w4t_ref[...]                                   # (lbl, F*F): [c, col] = w4[m, c]
    w5t = w5t_ref[...]                                   # (lbl, F*F): [l, col] = w5[f2, l]
    acc5 = None
    for l in range(lbl):
        u = None
        for c in range(lbl):
            term = txf[:, c * lbl + l: c * lbl + l + 1] * w4t[c:c + 1, :]
            u = term if u is None else u + term
        u = jnp.maximum(u * aff4_ref[0:1, :] + aff4_ref[1:2, :], 0.0)
        term5 = u * w5t[l:l + 1, :]
        acc5 = term5 if acc5 is None else acc5 + term5
    y5 = jnp.maximum(acc5 * aff5_ref[0:1, :] + aff5_ref[1:2, :], 0.0)  # (block_b, F*F)
    x2 = jnp.maximum(jnp.dot(y5, w2_ref[...], preferred_element_type=f32)
                     + b2_ref[...], 0.0)                 # (block_b, H)

    # ---------------- branch 3: LSTM (batched recurrence) -------------------
    # Gate columns host-reordered to [i, f, o | g]; one tanh(3H)-based sigmoid
    # slab + one tanh(H) per step + one tanh(H) for the cell.
    wx = wx_ref[...]                                     # (E, 4H)
    wh = wh_ref[...]                                     # (H, 4H)
    lb = lb_ref[...]                                     # (1, 4H)
    xproj = [jnp.dot(qx_ref[s], wx, preferred_element_type=f32) + lb
             for s in range(block_b)]                    # each (T, 4H)
    h = jnp.zeros((block_b, hidden), f32)
    c = jnp.zeros((block_b, hidden), f32)
    h3 = 3 * hidden
    for t in range(seq_len):                             # static unroll (T small)
        xpt = jnp.concatenate([xp[t:t + 1, :] for xp in xproj], axis=0)  # (block_b, 4H)
        g = xpt + jnp.dot(h, wh, preferred_element_type=f32)
        sg = 0.5 * (jnp.tanh(0.5 * g[:, :h3]) + 1.0)     # sigmoid(i, f, o), one EUP op
        gg = jnp.tanh(g[:, h3:])                         # tanh(g)
        c = sg[:, hidden:2 * hidden] * c + sg[:, :hidden] * gg
        h = sg[:, 2 * hidden:h3] * jnp.tanh(c)
    x3 = h                                               # (block_b, H)

    # ---------------- head: fc(x1 + x2 + x3) via VPU mul + lane reduce ------
    x = x1 + x2 + x3
    q = jnp.sum(x * wout_ref[...], axis=1, keepdims=True) + bout_ref[...]
    o_ref[...] = q.astype(o_ref.dtype)


# ---------------------------------------------------------------------------
# One-time parameter preparation (BN folding, stacked banded conv weights,
# flattened fc weights, tiled branch-2 weights, reordered LSTM gates).
# ---------------------------------------------------------------------------
def prepare_params(p, cfg):
    stride = cfg["stride"]
    nf = cfg["n_filters"]
    feat = cfg["features"]
    hidden = cfg["rnn_hidden"]
    h_in, w_in = cfg["para_h"], cfg["para_w"]
    f32 = jnp.float32

    def conv_out(size, k):
        return (size - k) // stride + 1

    def banded_stacked(w_oihw, width_in):
        # (k*W*Cin, OW*Cout): row block i pairs with the i-th shifted window.
        cout, cin, kh, kw = w_oihw.shape
        ow = conv_out(width_in, kw)
        wt = jnp.transpose(w_oihw.astype(f32), (2, 3, 1, 0))   # (kh, kw, cin, cout)
        bands = []
        for i in range(kh):
            flat = wt[i].reshape(kw * cin, cout)
            cols = []
            for pcol in range(ow):
                top = pcol * stride * cin
                bot = (width_in - (pcol * stride + kw)) * cin
                cols.append(jnp.pad(flat, ((top, bot), (0, 0))))
            bands.append(jnp.concatenate(cols, axis=1))        # (W*Cin, OW*Cout)
        return jnp.concatenate(bands, axis=0)

    def fold(bias, bn):
        scale = bn["gamma"] / jnp.sqrt(bn["var"] + BN_EPS)
        shift = (bias - bn["mean"]) * scale + bn["beta"]
        return scale.astype(f32), shift.astype(f32)

    def aff_lanes(bias, bn, reps, mode):
        scale, shift = fold(bias, bn)
        rep = (lambda v: jnp.tile(v, reps)) if mode == "tile" \
            else (lambda v: jnp.repeat(v, reps))
        return jnp.stack([rep(scale), rep(shift)], axis=0)

    ow1, oh1 = conv_out(w_in, 5), conv_out(h_in, 5)
    ow2, oh2 = conv_out(ow1, 3), conv_out(oh1, 3)
    ow3, oh3 = conv_out(ow2, 3), conv_out(oh2, 3)
    c3 = 2 * nf

    kp = {}
    # branch 1
    kp["cw1"] = banded_stacked(p["conv1_w"], w_in)
    kp["aff1"] = aff_lanes(p["conv1_b"], p["bn1"], ow1, "tile")
    kp["cw2"] = banded_stacked(p["conv2_w"], ow1)
    kp["aff2"] = aff_lanes(p["conv2_b"], p["bn2"], ow2, "tile")
    kp["cw3"] = banded_stacked(p["conv3_w"], ow2)
    kp["aff3"] = aff_lanes(p["conv3_b"], p["bn3"], ow3, "tile")
    # fc1: flattened K = oh3*ow3*c3, row index r*(ow3*c3) + w*c3 + c
    kp["w1"] = (p["fc1_w"].astype(f32)
                .reshape(hidden, c3, oh3, ow3)
                .transpose(2, 3, 1, 0)
                .reshape(oh3 * ow3 * c3, hidden))
    kp["b1"] = p["fc1_b"].reshape(1, hidden).astype(f32)
    # branch 2: tiled over lane col = f2*F + m
    kp["w4t"] = jnp.tile(p["conv4_w"].T.astype(f32), (1, feat))       # [c, col] = w4[m, c]
    kp["aff4"] = aff_lanes(p["conv4_b"], p["bn4"], feat, "tile")      # per-m affine
    kp["w5t"] = jnp.repeat(p["conv5_w"].T.astype(f32), feat, axis=1)  # [l, col] = w5[f2, l]
    kp["aff5"] = aff_lanes(p["conv5_b"], p["bn5"], feat, "repeat")    # per-f2 affine
    kp["w2"] = p["fc2_w"].T.astype(f32)                               # (F*F, hidden)
    kp["b2"] = p["fc2_b"].reshape(1, hidden).astype(f32)
    # branch 3: fused-gate LSTM, columns reordered i,f,g,o -> i,f,o,g
    def reorder(m):
        i, f, g, o = jnp.split(m, 4, axis=-1)
        return jnp.concatenate([i, f, o, g], axis=-1)
    kp["wx"] = reorder(p["lstm_wih"].T.astype(f32))                   # (E, 4H)
    kp["wh"] = reorder(p["lstm_whh"].T.astype(f32))                   # (H, 4H)
    kp["lb"] = reorder((p["lstm_bih"] + p["lstm_bhh"])
                       .reshape(1, 4 * hidden).astype(f32))
    # head
    kp["wout"] = p["fc_w"].reshape(1, hidden).astype(f32)
    kp["bout"] = p["fc_b"].reshape(1, 1).astype(f32)
    return kp


# ---------------------------------------------------------------------------
# Wrapper: one pallas_call for the whole forward, gridded over batch blocks.
# ---------------------------------------------------------------------------
def sep_rnn_forward(kp, status_x, transform_x, seq_x, cfg, block_b=None):
    b, cin, h_in, w_in = status_x.shape
    lbl = transform_x.shape[1]
    t_steps, emb = seq_x.shape[1], seq_x.shape[2]
    stride = cfg["stride"]
    hidden = cfg["rnn_hidden"]

    if block_b is None:
        block_b = min(b, 8)                 # M of the fc / LSTM / head matmuls
    n_blocks = -(-b // block_b)
    b_pad = n_blocks * block_b

    # channel-last "rows = h, cols = (w, c)" layout for the conv branch;
    # transform_x pre-flattened to (B, lbl*lbl) so branch 2 stays 2-D in-kernel.
    sx = status_x.transpose(0, 2, 3, 1).reshape(b, h_in, w_in * cin).astype(jnp.float32)
    txf = transform_x.reshape(b, lbl * lbl).astype(jnp.float32)
    qx = seq_x.astype(jnp.float32)
    if b_pad != b:
        sx = jnp.pad(sx, ((0, b_pad - b), (0, 0), (0, 0)))
        txf = jnp.pad(txf, ((0, b_pad - b), (0, 0)))
        qx = jnp.pad(qx, ((0, b_pad - b), (0, 0), (0, 0)))

    conv_dims = []
    hh = h_in
    for k in (5, 3, 3):
        hh = (hh - k) // stride + 1
        conv_dims.append((k, hh))
    conv_dims = tuple(conv_dims)

    weights = [kp[name] for name in _WEIGHT_ORDER]
    assert all(w.ndim == 2 for w in weights)
    in_specs = [
        pl.BlockSpec((block_b, h_in, w_in * cin), lambda i: (i, 0, 0)),
        pl.BlockSpec((block_b, lbl * lbl), lambda i: (i, 0)),
        pl.BlockSpec((block_b, t_steps, emb), lambda i: (i, 0, 0)),
    ] + [pl.BlockSpec(w.shape, lambda i: (0, 0)) for w in weights]

    # Note: 4*hidden = 128 keeps the fused gates on one lane tile; other hidden
    # sizes remain correct but add masked-lane / relayout cost.
    kernel = functools.partial(
        _seprnn_kernel, stride=stride, hidden=hidden, lbl=lbl,
        seq_len=t_steps, block_b=block_b, conv_dims=conv_dims)

    out = pl.pallas_call(
        kernel,
        out_shape=jax.ShapeDtypeStruct((b_pad, 1), jnp.float32),
        grid=(n_blocks,),
        in_specs=in_specs,
        out_specs=pl.BlockSpec((block_b, 1), lambda i: (i, 0)),
        compiler_params=pltpu.CompilerParams(
            dimension_semantics=("parallel",)),
    )(sx, txf, qx, *weights)
    return out[:b]


# ---------------------------------------------------------------------------
# Deterministic parameter init (shapes from SepRNN.__init__)
# ---------------------------------------------------------------------------
def init_params(key, cfg):
    nf = cfg["n_filters"]
    lbl = cfg["label_size"]
    feat = cfg["features"]
    hidden = cfg["rnn_hidden"]
    emb = cfg["embedding_size"]
    lin_in = cfg["linear_input_size"]

    keys = iter(jax.random.split(key, 64))

    def w(shape, scale=0.1):
        return (scale * jax.random.normal(next(keys), shape)).astype(jnp.float32)

    def bn(c):
        return {
            "gamma": (1.0 + 0.1 * jax.random.normal(next(keys), (c,))).astype(jnp.float32),
            "beta": (0.05 * jax.random.normal(next(keys), (c,))).astype(jnp.float32),
            "mean": (0.05 * jax.random.normal(next(keys), (c,))).astype(jnp.float32),
            "var": (0.5 + jnp.abs(jax.random.normal(next(keys), (c,)))).astype(jnp.float32),
        }

    return {
        "conv1_w": w((nf, 3, 5, 5)), "conv1_b": w((nf,)), "bn1": bn(nf),
        "conv2_w": w((2 * nf, nf, 3, 3)), "conv2_b": w((2 * nf,)), "bn2": bn(2 * nf),
        "conv3_w": w((2 * nf, 2 * nf, 3, 3)), "conv3_b": w((2 * nf,)), "bn3": bn(2 * nf),
        "fc1_w": w((hidden, lin_in)), "fc1_b": w((hidden,)),
        "conv4_w": w((feat, lbl)), "conv4_b": w((feat,)), "bn4": bn(feat),
        "conv5_w": w((feat, lbl)), "conv5_b": w((feat,)), "bn5": bn(feat),
        "fc2_w": w((hidden, feat * feat)), "fc2_b": w((hidden,)),
        "lstm_wih": w((4 * hidden, emb)), "lstm_whh": w((4 * hidden, hidden)),
        "lstm_bih": w((4 * hidden,)), "lstm_bhh": w((4 * hidden,)),
        "fc_w": w((1, hidden)), "fc_b": w((1,)),
    }


# ---------------------------------------------------------------------------
# Pure-JAX reference (numerical check)
# ---------------------------------------------------------------------------
def reference_forward(params, status_x, transform_x, seq_x, cfg):
    stride = cfg["stride"]
    hidden = cfg["rnn_hidden"]
    relu = lambda v: jnp.maximum(v, 0.0)
    hi = lax.Precision.HIGHEST

    def bn(x, p, axis):
        shp = [1] * x.ndim
        shp[axis] = -1
        return ((x - p["mean"].reshape(shp))
                * (p["gamma"].reshape(shp) / jnp.sqrt(p["var"].reshape(shp) + BN_EPS))
                + p["beta"].reshape(shp))

    def conv2d(x, w, b):
        y = lax.conv_general_dilated(x, w, (stride, stride), "VALID",
                                     dimension_numbers=("NCHW", "OIHW", "NCHW"),
                                     precision=hi)
        return y + b.reshape(1, -1, 1, 1)

    x1 = relu(bn(conv2d(status_x, params["conv1_w"], params["conv1_b"]), params["bn1"], 1))
    x1 = relu(bn(conv2d(x1, params["conv2_w"], params["conv2_b"]), params["bn2"], 1))
    x1 = relu(bn(conv2d(x1, params["conv3_w"], params["conv3_b"]), params["bn3"], 1))
    x1 = relu(jnp.matmul(x1.reshape(x1.shape[0], -1), params["fc1_w"].T, precision=hi)
              + params["fc1_b"])

    y4 = jnp.einsum("bcl,fc->bfl", transform_x, params["conv4_w"], precision=hi) \
        + params["conv4_b"].reshape(1, -1, 1)
    y4 = relu(bn(y4, params["bn4"], 1)).transpose(0, 2, 1)
    y5 = jnp.einsum("bcl,fc->bfl", y4, params["conv5_w"], precision=hi) \
        + params["conv5_b"].reshape(1, -1, 1)
    y5 = relu(bn(y5, params["bn5"], 1))
    x2 = relu(jnp.matmul(y5.reshape(y5.shape[0], -1), params["fc2_w"].T, precision=hi)
              + params["fc2_b"])

    def lstm_cell(carry, x_t):
        h, c = carry
        gates = (jnp.matmul(x_t, params["lstm_wih"].T, precision=hi) + params["lstm_bih"]
                 + jnp.matmul(h, params["lstm_whh"].T, precision=hi) + params["lstm_bhh"])
        i, f, g, o = jnp.split(gates, 4, axis=-1)
        c = jax.nn.sigmoid(f) * c + jax.nn.sigmoid(i) * jnp.tanh(g)
        h = jax.nn.sigmoid(o) * jnp.tanh(c)
        return (h, c), None

    b = seq_x.shape[0]
    init = (jnp.zeros((b, hidden), jnp.float32), jnp.zeros((b, hidden), jnp.float32))
    (h_last, _), _ = lax.scan(lstm_cell, init, seq_x.transpose(1, 0, 2))
    x3 = h_last

    x = x1 + x2 + x3
    return jnp.matmul(x, params["fc_w"].T, precision=hi) + params["fc_b"]


# ---------------------------------------------------------------------------
if __name__ == "__main__":
    cfg = dict(n_filters=8, label_size=4, features=20, rnn_hidden=32,
               embedding_size=16, stride=1, para_h=16, para_w=16,
               seq_len=8, batch=2)

    def conv_out(size, k, s):
        return (size - (k - 1) - 1) // s + 1

    cw_, ch_ = cfg["para_w"], cfg["para_h"]
    for k in (5, 3, 3):
        cw_ = conv_out(cw_, k, cfg["stride"])
        ch_ = conv_out(ch_, k, cfg["stride"])
    cfg["linear_input_size"] = cw_ * ch_ * cfg["n_filters"] * 2  # 8*8*16 = 1024

    key = jax.random.PRNGKey(0)
    k_param, k_s, k_t, k_q = jax.random.split(key, 4)
    params = init_params(k_param, cfg)

    status_x = jax.random.normal(
        k_s, (cfg["batch"], 3, cfg["para_h"], cfg["para_w"]), jnp.float32)
    transform_x = jax.random.normal(
        k_t, (cfg["batch"], cfg["label_size"], cfg["label_size"]), jnp.float32)
    seq_x = jax.random.normal(
        k_q, (cfg["batch"], cfg["seq_len"], cfg["embedding_size"]), jnp.float32)

    kparams = prepare_params(params, cfg)           # one-time weight prep
    fwd = jax.jit(functools.partial(sep_rnn_forward, cfg=cfg))

    out = jax.block_until_ready(fwd(kparams, status_x, transform_x, seq_x))

    ref = reference_forward(params, status_x, transform_x, seq_x, cfg)
    assert out.shape == (cfg["batch"], 1), out.shape
    assert bool(jnp.all(jnp.isfinite(out)))
    assert bool(jnp.allclose(out, ref, atol=1e-3, rtol=1e-3)), (out, ref)
    print("KERNEL_OK")
</pallas_src>

<mosaic_0001>
module attributes {stable_mosaic.version = 11 : i64} {
  func.func @_seprnn_kernel(%arg0: i32, %arg1: memref<2x16x48xf32, #tpu.memory_space<vmem>>, %arg2: memref<2x16xf32, #tpu.memory_space<vmem>>, %arg3: memref<2x8x16xf32, #tpu.memory_space<vmem>>, %arg4: memref<240x96xf32, #tpu.memory_space<vmem>>, %arg5: memref<2x96xf32, #tpu.memory_space<vmem>>, %arg6: memref<288x160xf32, #tpu.memory_space<vmem>>, %arg7: memref<2x160xf32, #tpu.memory_space<vmem>>, %arg8: memref<480x128xf32, #tpu.memory_space<vmem>>, %arg9: memref<2x128xf32, #tpu.memory_space<vmem>>, %arg10: memref<1024x32xf32, #tpu.memory_space<vmem>>, %arg11: memref<1x32xf32, #tpu.memory_space<vmem>>, %arg12: memref<4x400xf32, #tpu.memory_space<vmem>>, %arg13: memref<2x400xf32, #tpu.memory_space<vmem>>, %arg14: memref<4x400xf32, #tpu.memory_space<vmem>>, %arg15: memref<2x400xf32, #tpu.memory_space<vmem>>, %arg16: memref<400x32xf32, #tpu.memory_space<vmem>>, %arg17: memref<1x32xf32, #tpu.memory_space<vmem>>, %arg18: memref<16x128xf32, #tpu.memory_space<vmem>>, %arg19: memref<32x128xf32, #tpu.memory_space<vmem>>, %arg20: memref<1x128xf32, #tpu.memory_space<vmem>>, %arg21: memref<1x32xf32, #tpu.memory_space<vmem>>, %arg22: memref<1x1xf32, #tpu.memory_space<vmem>>, %arg23: memref<2x1xf32, #tpu.memory_space<vmem>>) attributes {dimension_semantics = [#tpu.dimension_semantics<parallel>], iteration_bounds = array<i64: 1>, scalar_prefetch = 0 : i64, scratch_operands = 0 : i64, tpu.core_type = #tpu.core_type<tc>, window_params = [{transform_indices = @transform_0, window_bounds = array<i64: 2, 16, 48>}, {transform_indices = @transform_1, window_bounds = array<i64: 2, 16>}, {transform_indices = @transform_2, window_bounds = array<i64: 2, 8, 16>}, {pipeline_mode = #tpu.pipeline_mode<synchronous>, transform_indices = @transform_3, window_bounds = array<i64: 240, 96>}, {pipeline_mode = #tpu.pipeline_mode<synchronous>, transform_indices = @transform_4, window_bounds = array<i64: 2, 96>}, {pipeline_mode = #tpu.pipeline_mode<synchronous>, transform_indices = @transform_5, window_bounds = array<i64: 288, 160>}, {pipeline_mode = #tpu.pipeline_mode<synchronous>, transform_indices = @transform_6, window_bounds = array<i64: 2, 160>}, {pipeline_mode = #tpu.pipeline_mode<synchronous>, transform_indices = @transform_7, window_bounds = array<i64: 480, 128>}, {pipeline_mode = #tpu.pipeline_mode<synchronous>, transform_indices = @transform_8, window_bounds = array<i64: 2, 128>}, {pipeline_mode = #tpu.pipeline_mode<synchronous>, transform_indices = @transform_9, window_bounds = array<i64: 1024, 32>}, {pipeline_mode = #tpu.pipeline_mode<synchronous>, transform_indices = @transform_10, window_bounds = array<i64: 1, 32>}, {pipeline_mode = #tpu.pipeline_mode<synchronous>, transform_indices = @transform_11, window_bounds = array<i64: 4, 400>}, {pipeline_mode = #tpu.pipeline_mode<synchronous>, transform_indices = @transform_12, window_bounds = array<i64: 2, 400>}, {pipeline_mode = #tpu.pipeline_mode<synchronous>, transform_indices = @transform_13, window_bounds = array<i64: 4, 400>}, {pipeline_mode = #tpu.pipeline_mode<synchronous>, transform_indices = @transform_14, window_bounds = array<i64: 2, 400>}, {pipeline_mode = #tpu.pipeline_mode<synchronous>, transform_indices = @transform_15, window_bounds = array<i64: 400, 32>}, {pipeline_mode = #tpu.pipeline_mode<synchronous>, transform_indices = @transform_16, window_bounds = array<i64: 1, 32>}, {pipeline_mode = #tpu.pipeline_mode<synchronous>, transform_indices = @transform_17, window_bounds = array<i64: 16, 128>}, {pipeline_mode = #tpu.pipeline_mode<synchronous>, transform_indices = @transform_18, window_bounds = array<i64: 32, 128>}, {pipeline_mode = #tpu.pipeline_mode<synchronous>, transform_indices = @transform_19, window_bounds = array<i64: 1, 128>}, {pipeline_mode = #tpu.pipeline_mode<synchronous>, transform_indices = @transform_20, window_bounds = array<i64: 1, 32>}, {pipeline_mode = #tpu.pipeline_mode<synchronous>, transform_indices = @transform_21, window_bounds = array<i64: 1, 1>}, {transform_indices = @transform_22, window_bounds = array<i64: 2, 1>}]} {
    %c0 = arith.constant 0 : index
    %c0_0 = arith.constant 0 : index
    %c0_1 = arith.constant 0 : index
    %0 = vector.load %arg1[%c0, %c0_0, %c0_1] : memref<2x16x48xf32, #tpu.memory_space<vmem>>, vector<1x16x48xf32>
    %1 = vector.shape_cast %0 : vector<1x16x48xf32> to vector<16x48xf32>
    %2 = vector.extract_strided_slice %1 {offsets = [0, 0], sizes = [12, 48], strides = [1, 1]} : vector<16x48xf32> to vector<12x48xf32>
    %3 = vector.extract_strided_slice %1 {offsets = [1, 0], sizes = [12, 48], strides = [1, 1]} : vector<16x48xf32> to vector<12x48xf32>
    %4 = vector.extract_strided_slice %1 {offsets = [2, 0], sizes = [12, 48], strides = [1, 1]} : vector<16x48xf32> to vector<12x48xf32>
    %5 = vector.extract_strided_slice %1 {offsets = [3, 0], sizes = [12, 48], strides = [1, 1]} : vector<16x48xf32> to vector<12x48xf32>
    %6 = vector.extract_strided_slice %1 {offsets = [4, 0], sizes = [12, 48], strides = [1, 1]} : vector<16x48xf32> to vector<12x48xf32>
    %7 = tpu.concatenate %2, %3, %4, %5, %6 in 1 : vector<12x48xf32>, vector<12x48xf32>, vector<12x48xf32>, vector<12x48xf32>, vector<12x48xf32> -> vector<12x240xf32>
    %c0_2 = arith.constant 0 : index
    %c0_3 = arith.constant 0 : index
    %8 = vector.load %arg4[%c0_2, %c0_3] : memref<240x96xf32, #tpu.memory_space<vmem>>, vector<240x96xf32>
    %cst = arith.constant dense<0.000000e+00> : vector<12x96xf32>
    %9 = tpu.matmul %7, %8, %cst {dimension_numbers = #tpu.dot_dimension_numbers<[1], [0], [0], [1], [0, 0, 1, 1], [], []>} : vector<12x240xf32>, vector<240x96xf32>, vector<12x96xf32> -> vector<12x96xf32>
    %c0_4 = arith.constant 0 : index
    %c0_5 = arith.constant 0 : index
    %10 = vector.load %arg5[%c0_4, %c0_5] : memref<2x96xf32, #tpu.memory_space<vmem>>, vector<1x96xf32>
    %11 = vector.broadcast %10 : vector<1x96xf32> to vector<12x96xf32>
    %12 = arith.mulf %9, %11 : vector<12x96xf32>
    %c1 = arith.constant 1 : index
    %c0_6 = arith.constant 0 : index
    %13 = vector.load %arg5[%c1, %c0_6] : memref<2x96xf32, #tpu.memory_space<vmem>>, vector<1x96xf32>
    %14 = vector.broadcast %13 : vector<1x96xf32> to vector<12x96xf32>
    %15 = arith.addf %12, %14 : vector<12x96xf32>
    %cst_7 = arith.constant 0.000000e+00 : f32
    %16 = vector.broadcast %cst_7 : f32 to vector<12x96xf32>
    %17 = arith.maximumf %15, %16 : vector<12x96xf32>
    %18 = vector.extract_strided_slice %17 {offsets = [0, 0], sizes = [10, 96], strides = [1, 1]} : vector<12x96xf32> to vector<10x96xf32>
    %19 = vector.extract_strided_slice %17 {offsets = [1, 0], sizes = [10, 96], strides = [1, 1]} : vector<12x96xf32> to vector<10x96xf32>
    %20 = vector.extract_strided_slice %17 {offsets = [2, 0], sizes = [10, 96], strides = [1, 1]} : vector<12x96xf32> to vector<10x96xf32>
    %21 = tpu.concatenate %18, %19, %20 in 1 : vector<10x96xf32>, vector<10x96xf32>, vector<10x96xf32> -> vector<10x288xf32>
    %c0_8 = arith.constant 0 : index
    %c0_9 = arith.constant 0 : index
    %22 = vector.load %arg6[%c0_8, %c0_9] : memref<288x160xf32, #tpu.memory_space<vmem>>, vector<288x160xf32>
    %cst_10 = arith.constant dense<0.000000e+00> : vector<10x160xf32>
    %23 = tpu.matmul %21, %22, %cst_10 {dimension_numbers = #tpu.dot_dimension_numbers<[1], [0], [0], [1], [0, 0, 1, 1], [], []>} : vector<10x288xf32>, vector<288x160xf32>, vector<10x160xf32> -> vector<10x160xf32>
    %c0_11 = arith.constant 0 : index
    %c0_12 = arith.constant 0 : index
    %24 = vector.load %arg7[%c0_11, %c0_12] : memref<2x160xf32, #tpu.memory_space<vmem>>, vector<1x160xf32>
    %25 = vector.broadcast %24 : vector<1x160xf32> to vector<10x160xf32>
    %26 = arith.mulf %23, %25 : vector<10x160xf32>
    %c1_13 = arith.constant 1 : index
    %c0_14 = arith.constant 0 : index
    %27 = vector.load %arg7[%c1_13, %c0_14] : memref<2x160xf32, #tpu.memory_space<vmem>>, vector<1x160xf32>
    %28 = vector.broadcast %27 : vector<1x160xf32> to vector<10x160xf32>
    %29 = arith.addf %26, %28 : vector<10x160xf32>
    %cst_15 = arith.constant 0.000000e+00 : f32
    %30 = vector.broadcast %cst_15 : f32 to vector<10x160xf32>
    %31 = arith.maximumf %29, %30 : vector<10x160xf32>
    %32 = vector.extract_strided_slice %31 {offsets = [0, 0], sizes = [8, 160], strides = [1, 1]} : vector<10x160xf32> to vector<8x160xf32>
    %33 = vector.extract_strided_slice %31 {offsets = [1, 0], sizes = [8, 160], strides = [1, 1]} : vector<10x160xf32> to vector<8x160xf32>
    %34 = vector.extract_strided_slice %31 {offsets = [2, 0], sizes = [8, 160], strides = [1, 1]} : vector<10x160xf32> to vector<8x160xf32>
    %35 = tpu.concatenate %32, %33, %34 in 1 : vector<8x160xf32>, vector<8x160xf32>, vector<8x160xf32> -> vector<8x480xf32>
    %c0_16 = arith.constant 0 : index
    %c0_17 = arith.constant 0 : index
    %36 = vector.load %arg8[%c0_16, %c0_17] : memref<480x128xf32, #tpu.memory_space<vmem>>, vector<480x128xf32>
    %cst_18 = arith.constant dense<0.000000e+00> : vector<8x128xf32>
    %37 = tpu.matmul %35, %36, %cst_18 {dimension_numbers = #tpu.dot_dimension_numbers<[1], [0], [0], [1], [0, 0, 1, 1], [], []>} : vector<8x480xf32>, vector<480x128xf32>, vector<8x128xf32> -> vector<8x128xf32>
    %c0_19 = arith.constant 0 : index
    %c0_20 = arith.constant 0 : index
    %38 = vector.load %arg9[%c0_19, %c0_20] : memref<2x128xf32, #tpu.memory_space<vmem>>, vector<1x128xf32>
    %39 = vector.broadcast %38 : vector<1x128xf32> to vector<8x128xf32>
    %40 = arith.mulf %37, %39 : vector<8x128xf32>
    %c1_21 = arith.constant 1 : index
    %c0_22 = arith.constant 0 : index
    %41 = vector.load %arg9[%c1_21, %c0_22] : memref<2x128xf32, #tpu.memory_space<vmem>>, vector<1x128xf32>
    %42 = vector.broadcast %41 : vector<1x128xf32> to vector<8x128xf32>
    %43 = arith.addf %40, %42 : vector<8x128xf32>
    %cst_23 = arith.constant 0.000000e+00 : f32
    %44 = vector.broadcast %cst_23 : f32 to vector<8x128xf32>
    %45 = arith.maximumf %43, %44 : vector<8x128xf32>
    %46 = vector.extract_strided_slice %45 {offsets = [0, 0], sizes = [1, 128], strides = [1, 1]} : vector<8x128xf32> to vector<1x128xf32>
    %47 = vector.extract_strided_slice %45 {offsets = [1, 0], sizes = [1, 128], strides = [1, 1]} : vector<8x128xf32> to vector<1x128xf32>
    %48 = vector.extract_strided_slice %45 {offsets = [2, 0], sizes = [1, 128], strides = [1, 1]} : vector<8x128xf32> to vector<1x128xf32>
    %49 = vector.extract_strided_slice %45 {offsets = [3, 0], sizes = [1, 128], strides = [1, 1]} : vector<8x128xf32> to vector<1x128xf32>
    %50 = vector.extract_strided_slice %45 {offsets = [4, 0], sizes = [1, 128], strides = [1, 1]} : vector<8x128xf32> to vector<1x128xf32>
    %51 = vector.extract_strided_slice %45 {offsets = [5, 0], sizes = [1, 128], strides = [1, 1]} : vector<8x128xf32> to vector<1x128xf32>
    %52 = vector.extract_strided_slice %45 {offsets = [6, 0], sizes = [1, 128], strides = [1, 1]} : vector<8x128xf32> to vector<1x128xf32>
    %53 = vector.extract_strided_slice %45 {offsets = [7, 0], sizes = [1, 128], strides = [1, 1]} : vector<8x128xf32> to vector<1x128xf32>
    %54 = tpu.concatenate %46, %47, %48, %49, %50, %51, %52, %53 in 1 : vector<1x128xf32>, vector<1x128xf32>, vector<1x128xf32>, vector<1x128xf32>, vector<1x128xf32>, vector<1x128xf32>, vector<1x128xf32>, vector<1x128xf32> -> vector<1x1024xf32>
    %c1_24 = arith.constant 1 : index
    %c0_25 = arith.constant 0 : index
    %c0_26 = arith.constant 0 : index
    %55 = vector.load %arg1[%c1_24, %c0_25, %c0_26] : memref<2x16x48xf32, #tpu.memory_space<vmem>>, vector<1x16x48xf32>
    %56 = vector.shape_cast %55 : vector<1x16x48xf32> to vector<16x48xf32>
    %57 = vector.extract_strided_slice %56 {offsets = [0, 0], sizes = [12, 48], strides = [1, 1]} : vector<16x48xf32> to vector<12x48xf32>
    %58 = vector.extract_strided_slice %56 {offsets = [1, 0], sizes = [12, 48], strides = [1, 1]} : vector<16x48xf32> to vector<12x48xf32>
    %59 = vector.extract_strided_slice %56 {offsets = [2, 0], sizes = [12, 48], strides = [1, 1]} : vector<16x48xf32> to vector<12x48xf32>
    %60 = vector.extract_strided_slice %56 {offsets = [3, 0], sizes = [12, 48], strides = [1, 1]} : vector<16x48xf32> to vector<12x48xf32>
    %61 = vector.extract_strided_slice %56 {offsets = [4, 0], sizes = [12, 48], strides = [1, 1]} : vector<16x48xf32> to vector<12x48xf32>
    %62 = tpu.concatenate %57, %58, %59, %60, %61 in 1 : vector<12x48xf32>, vector<12x48xf32>, vector<12x48xf32>, vector<12x48xf32>, vector<12x48xf32> -> vector<12x240xf32>
    %c0_27 = arith.constant 0 : index
    %c0_28 = arith.constant 0 : index
    %63 = vector.load %arg4[%c0_27, %c0_28] : memref<240x96xf32, #tpu.memory_space<vmem>>, vector<240x96xf32>
    %cst_29 = arith.constant dense<0.000000e+00> : vector<12x96xf32>
    %64 = tpu.matmul %62, %63, %cst_29 {dimension_numbers = #tpu.dot_dimension_numbers<[1], [0], [0], [1], [0, 0, 1, 1], [], []>} : vector<12x240xf32>, vector<240x96xf32>, vector<12x96xf32> -> vector<12x96xf32>
    %c0_30 = arith.constant 0 : index
    %c0_31 = arith.constant 0 : index
    %65 = vector.load %arg5[%c0_30, %c0_31] : memref<2x96xf32, #tpu.memory_space<vmem>>, vector<1x96xf32>
    %66 = vector.broadcast %65 : vector<1x96xf32> to vector<12x96xf32>
    %67 = arith.mulf %64, %66 : vector<12x96xf32>
    %c1_32 = arith.constant 1 : index
    %c0_33 = arith.constant 0 : index
    %68 = vector.load %arg5[%c1_32, %c0_33] : memref<2x96xf32, #tpu.memory_space<vmem>>, vector<1x96xf32>
    %69 = vector.broadcast %68 : vector<1x96xf32> to vector<12x96xf32>
    %70 = arith.addf %67, %69 : vector<12x96xf32>
    %cst_34 = arith.constant 0.000000e+00 : f32
    %71 = vector.broadcast %cst_34 : f32 to vector<12x96xf32>
    %72 = arith.maximumf %70, %71 : vector<12x96xf32>
    %73 = vector.extract_strided_slice %72 {offsets = [0, 0], sizes = [10, 96], strides = [1, 1]} : vector<12x96xf32> to vector<10x96xf32>
    %74 = vector.extract_strided_slice %72 {offsets = [1, 0], sizes = [10, 96], strides = [1, 1]} : vector<12x96xf32> to vector<10x96xf32>
    %75 = vector.extract_strided_slice %72 {offsets = [2, 0], sizes = [10, 96], strides = [1, 1]} : vector<12x96xf32> to vector<10x96xf32>
    %76 = tpu.concatenate %73, %74, %75 in 1 : vector<10x96xf32>, vector<10x96xf32>, vector<10x96xf32> -> vector<10x288xf32>
    %c0_35 = arith.constant 0 : index
    %c0_36 = arith.constant 0 : index
    %77 = vector.load %arg6[%c0_35, %c0_36] : memref<288x160xf32, #tpu.memory_space<vmem>>, vector<288x160xf32>
    %cst_37 = arith.constant dense<0.000000e+00> : vector<10x160xf32>
    %78 = tpu.matmul %76, %77, %cst_37 {dimension_numbers = #tpu.dot_dimension_numbers<[1], [0], [0], [1], [0, 0, 1, 1], [], []>} : vector<10x288xf32>, vector<288x160xf32>, vector<10x160xf32> -> vector<10x160xf32>
    %c0_38 = arith.constant 0 : index
    %c0_39 = arith.constant 0 : index
    %79 = vector.load %arg7[%c0_38, %c0_39] : memref<2x160xf32, #tpu.memory_space<vmem>>, vector<1x160xf32>
    %80 = vector.broadcast %79 : vector<1x160xf32> to vector<10x160xf32>
    %81 = arith.mulf %78, %80 : vector<10x160xf32>
    %c1_40 = arith.constant 1 : index
    %c0_41 = arith.constant 0 : index
    %82 = vector.load %arg7[%c1_40, %c0_41] : memref<2x160xf32, #tpu.memory_space<vmem>>, vector<1x160xf32>
    %83 = vector.broadcast %82 : vector<1x160xf32> to vector<10x160xf32>
    %84 = arith.addf %81, %83 : vector<10x160xf32>
    %cst_42 = arith.constant 0.000000e+00 : f32
    %85 = vector.broadcast %cst_42 : f32 to vector<10x160xf32>
    %86 = arith.maximumf %84, %85 : vector<10x160xf32>
    %87 = vector.extract_strided_slice %86 {offsets = [0, 0], sizes = [8, 160], strides = [1, 1]} : vector<10x160xf32> to vector<8x160xf32>
    %88 = vector.extract_strided_slice %86 {offsets = [1, 0], sizes = [8, 160], strides = [1, 1]} : vector<10x160xf32> to vector<8x160xf32>
    %89 = vector.extract_strided_slice %86 {offsets = [2, 0], sizes = [8, 160], strides = [1, 1]} : vector<10x160xf32> to vector<8x160xf32>
    %90 = tpu.concatenate %87, %88, %89 in 1 : vector<8x160xf32>, vector<8x160xf32>, vector<8x160xf32> -> vector<8x480xf32>
    %c0_43 = arith.constant 0 : index
    %c0_44 = arith.constant 0 : index
    %91 = vector.load %arg8[%c0_43, %c0_44] : memref<480x128xf32, #tpu.memory_space<vmem>>, vector<480x128xf32>
    %cst_45 = arith.constant dense<0.000000e+00> : vector<8x128xf32>
    %92 = tpu.matmul %90, %91, %cst_45 {dimension_numbers = #tpu.dot_dimension_numbers<[1], [0], [0], [1], [0, 0, 1, 1], [], []>} : vector<8x480xf32>, vector<480x128xf32>, vector<8x128xf32> -> vector<8x128xf32>
    %c0_46 = arith.constant 0 : index
    %c0_47 = arith.constant 0 : index
    %93 = vector.load %arg9[%c0_46, %c0_47] : memref<2x128xf32, #tpu.memory_space<vmem>>, vector<1x128xf32>
    %94 = vector.broadcast %93 : vector<1x128xf32> to vector<8x128xf32>
    %95 = arith.mulf %92, %94 : vector<8x128xf32>
    %c1_48 = arith.constant 1 : index
    %c0_49 = arith.constant 0 : index
    %96 = vector.load %arg9[%c1_48, %c0_49] : memref<2x128xf32, #tpu.memory_space<vmem>>, vector<1x128xf32>
    %97 = vector.broadcast %96 : vector<1x128xf32> to vector<8x128xf32>
    %98 = arith.addf %95, %97 : vector<8x128xf32>
    %cst_50 = arith.constant 0.000000e+00 : f32
    %99 = vector.broadcast %cst_50 : f32 to vector<8x128xf32>
    %100 = arith.maximumf %98, %99 : vector<8x128xf32>
    %101 = vector.extract_strided_slice %100 {offsets = [0, 0], sizes = [1, 128], strides = [1, 1]} : vector<8x128xf32> to vector<1x128xf32>
    %102 = vector.extract_strided_slice %100 {offsets = [1, 0], sizes = [1, 128], strides = [1, 1]} : vector<8x128xf32> to vector<1x128xf32>
    %103 = vector.extract_strided_slice %100 {offsets = [2, 0], sizes = [1, 128], strides = [1, 1]} : vector<8x128xf32> to vector<1x128xf32>
    %104 = vector.extract_strided_slice %100 {offsets = [3, 0], sizes = [1, 128], strides = [1, 1]} : vector<8x128xf32> to vector<1x128xf32>
    %105 = vector.extract_strided_slice %100 {offsets = [4, 0], sizes = [1, 128], strides = [1, 1]} : vector<8x128xf32> to vector<1x128xf32>
    %106 = vector.extract_strided_slice %100 {offsets = [5, 0], sizes = [1, 128], strides = [1, 1]} : vector<8x128xf32> to vector<1x128xf32>
    %107 = vector.extract_strided_slice %100 {offsets = [6, 0], sizes = [1, 128], strides = [1, 1]} : vector<8x128xf32> to vector<1x128xf32>
    %108 = vector.extract_strided_slice %100 {offsets = [7, 0], sizes = [1, 128], strides = [1, 1]} : vector<8x128xf32> to vector<1x128xf32>
    %109 = tpu.concatenate %101, %102, %103, %104, %105, %106, %107, %108 in 1 : vector<1x128xf32>, vector<1x128xf32>, vector<1x128xf32>, vector<1x128xf32>, vector<1x128xf32>, vector<1x128xf32>, vector<1x128xf32>, vector<1x128xf32> -> vector<1x1024xf32>
    %110 = tpu.concatenate %54, %109 in 0 : vector<1x1024xf32>, vector<1x1024xf32> -> vector<2x1024xf32>
    %c0_51 = arith.constant 0 : index
    %c0_52 = arith.constant 0 : index
    %111 = vector.load %arg10[%c0_51, %c0_52] : memref<1024x32xf32, #tpu.memory_space<vmem>>, vector<1024x32xf32>
    %cst_53 = arith.constant dense<0.000000e+00> : vector<2x32xf32>
    %112 = tpu.matmul %110, %111, %cst_53 {dimension_numbers = #tpu.dot_dimension_numbers<[1], [0], [0], [1], [0, 0, 1, 1], [], []>} : vector<2x1024xf32>, vector<1024x32xf32>, vector<2x32xf32> -> vector<2x32xf32>
    %c0_54 = arith.constant 0 : index
    %c0_55 = arith.constant 0 : index
    %113 = vector.load %arg11[%c0_54, %c0_55] : memref<1x32xf32, #tpu.memory_space<vmem>>, vector<1x32xf32>
    %114 = vector.broadcast %113 : vector<1x32xf32> to vector<2x32xf32>
    %115 = arith.addf %112, %114 : vector<2x32xf32>
    %cst_56 = arith.constant 0.000000e+00 : f32
    %116 = vector.broadcast %cst_56 : f32 to vector<2x32xf32>
    %117 = arith.maximumf %115, %116 : vector<2x32xf32>
    %c0_57 = arith.constant 0 : index
    %c0_58 = arith.constant 0 : index
    %118 = vector.load %arg2[%c0_57, %c0_58] : memref<2x16xf32, #tpu.memory_space<vmem>>, vector<2x16xf32>
    %c0_59 = arith.constant 0 : index
    %c0_60 = arith.constant 0 : index
    %119 = vector.load %arg12[%c0_59, %c0_60] : memref<4x400xf32, #tpu.memory_space<vmem>>, vector<4x400xf32>
    %c0_61 = arith.constant 0 : index
    %c0_62 = arith.constant 0 : index
    %120 = vector.load %arg14[%c0_61, %c0_62] : memref<4x400xf32, #tpu.memory_space<vmem>>, vector<4x400xf32>
    %121 = vector.extract_strided_slice %118 {offsets = [0, 0], sizes = [2, 1], strides = [1, 1]} : vector<2x16xf32> to vector<2x1xf32>
    %122 = vector.extract_strided_slice %119 {offsets = [0, 0], sizes = [1, 400], strides = [1, 1]} : vector<4x400xf32> to vector<1x400xf32>
    %123 = vector.broadcast %121 : vector<2x1xf32> to vector<2x400xf32>
    %124 = vector.broadcast %122 : vector<1x400xf32> to vector<2x400xf32>
    %125 = arith.mulf %123, %124 : vector<2x400xf32>
    %126 = vector.extract_strided_slice %118 {offsets = [0, 4], sizes = [2, 1], strides = [1, 1]} : vector<2x16xf32> to vector<2x1xf32>
    %127 = vector.extract_strided_slice %119 {offsets = [1, 0], sizes = [1, 400], strides = [1, 1]} : vector<4x400xf32> to vector<1x400xf32>
    %128 = vector.broadcast %126 : vector<2x1xf32> to vector<2x400xf32>
    %129 = vector.broadcast %127 : vector<1x400xf32> to vector<2x400xf32>
    %130 = arith.mulf %128, %129 : vector<2x400xf32>
    %131 = arith.addf %125, %130 : vector<2x400xf32>
    %132 = vector.extract_strided_slice %118 {offsets = [0, 8], sizes = [2, 1], strides = [1, 1]} : vector<2x16xf32> to vector<2x1xf32>
    %133 = vector.extract_strided_slice %119 {offsets = [2, 0], sizes = [1, 400], strides = [1, 1]} : vector<4x400xf32> to vector<1x400xf32>
    %134 = vector.broadcast %132 : vector<2x1xf32> to vector<2x400xf32>
    %135 = vector.broadcast %133 : vector<1x400xf32> to vector<2x400xf32>
    %136 = arith.mulf %134, %135 : vector<2x400xf32>
    %137 = arith.addf %131, %136 : vector<2x400xf32>
    %138 = vector.extract_strided_slice %118 {offsets = [0, 12], sizes = [2, 1], strides = [1, 1]} : vector<2x16xf32> to vector<2x1xf32>
    %139 = vector.extract_strided_slice %119 {offsets = [3, 0], sizes = [1, 400], strides = [1, 1]} : vector<4x400xf32> to vector<1x400xf32>
    %140 = vector.broadcast %138 : vector<2x1xf32> to vector<2x400xf32>
    %141 = vector.broadcast %139 : vector<1x400xf32> to vector<2x400xf32>
    %142 = arith.mulf %140, %141 : vector<2x400xf32>
    %143 = arith.addf %137, %142 : vector<2x400xf32>
    %c0_63 = arith.constant 0 : index
    %c0_64 = arith.constant 0 : index
    %144 = vector.load %arg13[%c0_63, %c0_64] : memref<2x400xf32, #tpu.memory_space<vmem>>, vector<1x400xf32>
    %145 = vector.broadcast %144 : vector<1x400xf32> to vector<2x400xf32>
    %146 = arith.mulf %143, %145 : vector<2x400xf32>
    %c1_65 = arith.constant 1 : index
    %c0_66 = arith.constant 0 : index
    %147 = vector.load %arg13[%c1_65, %c0_66] : memref<2x400xf32, #tpu.memory_space<vmem>>, vector<1x400xf32>
    %148 = vector.broadcast %147 : vector<1x400xf32> to vector<2x400xf32>
    %149 = arith.addf %146, %148 : vector<2x400xf32>
    %cst_67 = arith.constant 0.000000e+00 : f32
    %150 = vector.broadcast %cst_67 : f32 to vector<2x400xf32>
    %151 = arith.maximumf %149, %150 : vector<2x400xf32>
    %152 = vector.extract_strided_slice %120 {offsets = [0, 0], sizes = [1, 400], strides = [1, 1]} : vector<4x400xf32> to vector<1x400xf32>
    %153 = vector.broadcast %152 : vector<1x400xf32> to vector<2x400xf32>
    %154 = arith.mulf %151, %153 : vector<2x400xf32>
    %155 = vector.extract_strided_slice %118 {offsets = [0, 1], sizes = [2, 1], strides = [1, 1]} : vector<2x16xf32> to vector<2x1xf32>
    %156 = vector.extract_strided_slice %119 {offsets = [0, 0], sizes = [1, 400], strides = [1, 1]} : vector<4x400xf32> to vector<1x400xf32>
    %157 = vector.broadcast %155 : vector<2x1xf32> to vector<2x400xf32>
    %158 = vector.broadcast %156 : vector<1x400xf32> to vector<2x400xf32>
    %159 = arith.mulf %157, %158 : vector<2x400xf32>
    %160 = vector.extract_strided_slice %118 {offsets = [0, 5], sizes = [2, 1], strides = [1, 1]} : vector<2x16xf32> to vector<2x1xf32>
    %161 = vector.extract_strided_slice %119 {offsets = [1, 0], sizes = [1, 400], strides = [1, 1]} : vector<4x400xf32> to vector<1x400xf32>
    %162 = vector.broadcast %160 : vector<2x1xf32> to vector<2x400xf32>
    %163 = vector.broadcast %161 : vector<1x400xf32> to vector<2x400xf32>
    %164 = arith.mulf %162, %163 : vector<2x400xf32>
    %165 = arith.addf %159, %164 : vector<2x400xf32>
    %166 = vector.extract_strided_slice %118 {offsets = [0, 9], sizes = [2, 1], strides = [1, 1]} : vector<2x16xf32> to vector<2x1xf32>
    %167 = vector.extract_strided_slice %119 {offsets = [2, 0], sizes = [1, 400], strides = [1, 1]} : vector<4x400xf32> to vector<1x400xf32>
    %168 = vector.broadcast %166 : vector<2x1xf32> to vector<2x400xf32>
    %169 = vector.broadcast %167 : vector<1x400xf32> to vector<2x400xf32>
    %170 = arith.mulf %168, %169 : vector<2x400xf32>
    %171 = arith.addf %165, %170 : vector<2x400xf32>
    %172 = vector.extract_strided_slice %118 {offsets = [0, 13], sizes = [2, 1], strides = [1, 1]} : vector<2x16xf32> to vector<2x1xf32>
    %173 = vector.extract_strided_slice %119 {offsets = [3, 0], sizes = [1, 400], strides = [1, 1]} : vector<4x400xf32> to vector<1x400xf32>
    %174 = vector.broadcast %172 : vector<2x1xf32> to vector<2x400xf32>
    %175 = vector.broadcast %173 : vector<1x400xf32> to vector<2x400xf32>
    %176 = arith.mulf %174, %175 : vector<2x400xf32>
    %177 = arith.addf %171, %176 : vector<2x400xf32>
    %c0_68 = arith.constant 0 : index
    %c0_69 = arith.constant 0 : index
    %178 = vector.load %arg13[%c0_68, %c0_69] : memref<2x400xf32, #tpu.memory_space<vmem>>, vector<1x400xf32>
    %179 = vector.broadcast %178 : vector<1x400xf32> to vector<2x400xf32>
    %180 = arith.mulf %177, %179 : vector<2x400xf32>
    %c1_70 = arith.constant 1 : index
    %c0_71 = arith.constant 0 : index
    %181 = vector.load %arg13[%c1_70, %c0_71] : memref<2x400xf32, #tpu.memory_space<vmem>>, vector<1x400xf32>
    %182 = vector.broadcast %181 : vector<1x400xf32> to vector<2x400xf32>
    %183 = arith.addf %180, %182 : vector<2x400xf32>
    %cst_72 = arith.constant 0.000000e+00 : f32
    %184 = vector.broadcast %cst_72 : f32 to vector<2x400xf32>
    %185 = arith.maximumf %183, %184 : vector<2x400xf32>
    %186 = vector.extract_strided_slice %120 {offsets = [1, 0], sizes = [1, 400], strides = [1, 1]} : vector<4x400xf32> to vector<1x400xf32>
    %187 = vector.broadcast %186 : vector<1x400xf32> to vector<2x400xf32>
    %188 = arith.mulf %185, %187 : vector<2x400xf32>
    %189 = arith.addf %154, %188 : vector<2x400xf32>
    %190 = vector.extract_strided_slice %118 {offsets = [0, 2], sizes = [2, 1], strides = [1, 1]} : vector<2x16xf32> to vector<2x1xf32>
    %191 = vector.extract_strided_slice %119 {offsets = [0, 0], sizes = [1, 400], strides = [1, 1]} : vector<4x400xf32> to vector<1x400xf32>
    %192 = vector.broadcast %190 : vector<2x1xf32> to vector<2x400xf32>
    %193 = vector.broadcast %191 : vector<1x400xf32> to vector<2x400xf32>
    %194 = arith.mulf %192, %193 : vector<2x400xf32>
    %195 = vector.extract_strided_slice %118 {offsets = [0, 6], sizes = [2, 1], strides = [1, 1]} : vector<2x16xf32> to vector<2x1xf32>
    %196 = vector.extract_strided_slice %119 {offsets = [1, 0], sizes = [1, 400], strides = [1, 1]} : vector<4x400xf32> to vector<1x400xf32>
    %197 = vector.broadcast %195 : vector<2x1xf32> to vector<2x400xf32>
    %198 = vector.broadcast %196 : vector<1x400xf32> to vector<2x400xf32>
    %199 = arith.mulf %197, %198 : vector<2x400xf32>
    %200 = arith.addf %194, %199 : vector<2x400xf32>
    %201 = vector.extract_strided_slice %118 {offsets = [0, 10], sizes = [2, 1], strides = [1, 1]} : vector<2x16xf32> to vector<2x1xf32>
    %202 = vector.extract_strided_slice %119 {offsets = [2, 0], sizes = [1, 400], strides = [1, 1]} : vector<4x400xf32> to vector<1x400xf32>
    %203 = vector.broadcast %201 : vector<2x1xf32> to vector<2x400xf32>
    %204 = vector.broadcast %202 : vector<1x400xf32> to vector<2x400xf32>
    %205 = arith.mulf %203, %204 : vector<2x400xf32>
    %206 = arith.addf %200, %205 : vector<2x400xf32>
    %207 = vector.extract_strided_slice %118 {offsets = [0, 14], sizes = [2, 1], strides = [1, 1]} : vector<2x16xf32> to vector<2x1xf32>
    %208 = vector.extract_strided_slice %119 {offsets = [3, 0], sizes = [1, 400], strides = [1, 1]} : vector<4x400xf32> to vector<1x400xf32>
    %209 = vector.broadcast %207 : vector<2x1xf32> to vector<2x400xf32>
    %210 = vector.broadcast %208 : vector<1x400xf32> to vector<2x400xf32>
    %211 = arith.mulf %209, %210 : vector<2x400xf32>
    %212 = arith.addf %206, %211 : vector<2x400xf32>
    %c0_73 = arith.constant 0 : index
    %c0_74 = arith.constant 0 : index
    %213 = vector.load %arg13[%c0_73, %c0_74] : memref<2x400xf32, #tpu.memory_space<vmem>>, vector<1x400xf32>
    %214 = vector.broadcast %213 : vector<1x400xf32> to vector<2x400xf32>
    %215 = arith.mulf %212, %214 : vector<2x400xf32>
    %c1_75 = arith.constant 1 : index
    %c0_76 = arith.constant 0 : index
    %216 = vector.load %arg13[%c1_75, %c0_76] : memref<2x400xf32, #tpu.memory_space<vmem>>, vector<1x400xf32>
    %217 = vector.broadcast %216 : vector<1x400xf32> to vector<2x400xf32>
    %218 = arith.addf %215, %217 : vector<2x400xf32>
    %cst_77 = arith.constant 0.000000e+00 : f32
    %219 = vector.broadcast %cst_77 : f32 to vector<2x400xf32>
    %220 = arith.maximumf %218, %219 : vector<2x400xf32>
    %221 = vector.extract_strided_slice %120 {offsets = [2, 0], sizes = [1, 400], strides = [1, 1]} : vector<4x400xf32> to vector<1x400xf32>
    %222 = vector.broadcast %221 : vector<1x400xf32> to vector<2x400xf32>
    %223 = arith.mulf %220, %222 : vector<2x400xf32>
    %224 = arith.addf %189, %223 : vector<2x400xf32>
    %225 = vector.extract_strided_slice %118 {offsets = [0, 3], sizes = [2, 1], strides = [1, 1]} : vector<2x16xf32> to vector<2x1xf32>
    %226 = vector.extract_strided_slice %119 {offsets = [0, 0], sizes = [1, 400], strides = [1, 1]} : vector<4x400xf32> to vector<1x400xf32>
    %227 = vector.broadcast %225 : vector<2x1xf32> to vector<2x400xf32>
    %228 = vector.broadcast %226 : vector<1x400xf32> to vector<2x400xf32>
    %229 = arith.mulf %227, %228 : vector<2x400xf32>
    %230 = vector.extract_strided_slice %118 {offsets = [0, 7], sizes = [2, 1], strides = [1, 1]} : vector<2x16xf32> to vector<2x1xf32>
    %231 = vector.extract_strided_slice %119 {offsets = [1, 0], sizes = [1, 400], strides = [1, 1]} : vector<4x400xf32> to vector<1x400xf32>
    %232 = vector.broadcast %230 : vector<2x1xf32> to vector<2x400xf32>
    %233 = vector.broadcast %231 : vector<1x400xf32> to vector<2x400xf32>
    %234 = arith.mulf %232, %233 : vector<2x400xf32>
    %235 = arith.addf %229, %234 : vector<2x400xf32>
    %236 = vector.extract_strided_slice %118 {offsets = [0, 11], sizes = [2, 1], strides = [1, 1]} : vector<2x16xf32> to vector<2x1xf32>
    %237 = vector.extract_strided_slice %119 {offsets = [2, 0], sizes = [1, 400], strides = [1, 1]} : vector<4x400xf32> to vector<1x400xf32>
    %238 = vector.broadcast %236 : vector<2x1xf32> to vector<2x400xf32>
    %239 = vector.broadcast %237 : vector<1x400xf32> to vector<2x400xf32>
    %240 = arith.mulf %238, %239 : vector<2x400xf32>
    %241 = arith.addf %235, %240 : vector<2x400xf32>
    %242 = vector.extract_strided_slice %118 {offsets = [0, 15], sizes = [2, 1], strides = [1, 1]} : vector<2x16xf32> to vector<2x1xf32>
    %243 = vector.extract_strided_slice %119 {offsets = [3, 0], sizes = [1, 400], strides = [1, 1]} : vector<4x400xf32> to vector<1x400xf32>
    %244 = vector.broadcast %242 : vector<2x1xf32> to vector<2x400xf32>
    %245 = vector.broadcast %243 : vector<1x400xf32> to vector<2x400xf32>
    %246 = arith.mulf %244, %245 : vector<2x400xf32>
    %247 = arith.addf %241, %246 : vector<2x400xf32>
    %c0_78 = arith.constant 0 : index
    %c0_79 = arith.constant 0 : index
    %248 = vector.load %arg13[%c0_78, %c0_79] : memref<2x400xf32, #tpu.memory_space<vmem>>, vector<1x400xf32>
    %249 = vector.broadcast %248 : vector<1x400xf32> to vector<2x400xf32>
    %250 = arith.mulf %247, %249 : vector<2x400xf32>
    %c1_80 = arith.constant 1 : index
    %c0_81 = arith.constant 0 : index
    %251 = vector.load %arg13[%c1_80, %c0_81] : memref<2x400xf32, #tpu.memory_space<vmem>>, vector<1x400xf32>
    %252 = vector.broadcast %251 : vector<1x400xf32> to vector<2x400xf32>
    %253 = arith.addf %250, %252 : vector<2x400xf32>
    %cst_82 = arith.constant 0.000000e+00 : f32
    %254 = vector.broadcast %cst_82 : f32 to vector<2x400xf32>
    %255 = arith.maximumf %253, %254 : vector<2x400xf32>
    %256 = vector.extract_strided_slice %120 {offsets = [3, 0], sizes = [1, 400], strides = [1, 1]} : vector<4x400xf32> to vector<1x400xf32>
    %257 = vector.broadcast %256 : vector<1x400xf32> to vector<2x400xf32>
    %258 = arith.mulf %255, %257 : vector<2x400xf32>
    %259 = arith.addf %224, %258 : vector<2x400xf32>
    %c0_83 = arith.constant 0 : index
    %c0_84 = arith.constant 0 : index
    %260 = vector.load %arg15[%c0_83, %c0_84] : memref<2x400xf32, #tpu.memory_space<vmem>>, vector<1x400xf32>
    %261 = vector.broadcast %260 : vector<1x400xf32> to vector<2x400xf32>
    %262 = arith.mulf %259, %261 : vector<2x400xf32>
    %c1_85 = arith.constant 1 : index
    %c0_86 = arith.constant 0 : index
    %263 = vector.load %arg15[%c1_85, %c0_86] : memref<2x400xf32, #tpu.memory_space<vmem>>, vector<1x400xf32>
    %264 = vector.broadcast %263 : vector<1x400xf32> to vector<2x400xf32>
    %265 = arith.addf %262, %264 : vector<2x400xf32>
    %cst_87 = arith.constant 0.000000e+00 : f32
    %266 = vector.broadcast %cst_87 : f32 to vector<2x400xf32>
    %267 = arith.maximumf %265, %266 : vector<2x400xf32>
    %c0_88 = arith.constant 0 : index
    %c0_89 = arith.constant 0 : index
    %268 = vector.load %arg16[%c0_88, %c0_89] : memref<400x32xf32, #tpu.memory_space<vmem>>, vector<400x32xf32>
    %cst_90 = arith.constant dense<0.000000e+00> : vector<2x32xf32>
    %269 = tpu.matmul %267, %268, %cst_90 {dimension_numbers = #tpu.dot_dimension_numbers<[1], [0], [0], [1], [0, 0, 1, 1], [], []>} : vector<2x400xf32>, vector<400x32xf32>, vector<2x32xf32> -> vector<2x32xf32>
    %c0_91 = arith.constant 0 : index
    %c0_92 = arith.constant 0 : index
    %270 = vector.load %arg17[%c0_91, %c0_92] : memref<1x32xf32, #tpu.memory_space<vmem>>, vector<1x32xf32>
    %271 = vector.broadcast %270 : vector<1x32xf32> to vector<2x32xf32>
    %272 = arith.addf %269, %271 : vector<2x32xf32>
    %cst_93 = arith.constant 0.000000e+00 : f32
    %273 = vector.broadcast %cst_93 : f32 to vector<2x32xf32>
    %274 = arith.maximumf %272, %273 : vector<2x32xf32>
    %c0_94 = arith.constant 0 : index
    %c0_95 = arith.constant 0 : index
    %275 = vector.load %arg18[%c0_94, %c0_95] : memref<16x128xf32, #tpu.memory_space<vmem>>, vector<16x128xf32>
    %c0_96 = arith.constant 0 : index
    %c0_97 = arith.constant 0 : index
    %276 = vector.load %arg19[%c0_96, %c0_97] : memref<32x128xf32, #tpu.memory_space<vmem>>, vector<32x128xf32>
    %c0_98 = arith.constant 0 : index
    %c0_99 = arith.constant 0 : index
    %277 = vector.load %arg20[%c0_98, %c0_99] : memref<1x128xf32, #tpu.memory_space<vmem>>, vector<1x128xf32>
    %c0_100 = arith.constant 0 : index
    %c0_101 = arith.constant 0 : index
    %c0_102 = arith.constant 0 : index
    %278 = vector.load %arg3[%c0_100, %c0_101, %c0_102] : memref<2x8x16xf32, #tpu.memory_space<vmem>>, vector<1x8x16xf32>
    %279 = vector.shape_cast %278 : vector<1x8x16xf32> to vector<8x16xf32>
    %cst_103 = arith.constant dense<0.000000e+00> : vector<8x128xf32>
    %280 = tpu.matmul %279, %275, %cst_103 {dimension_numbers = #tpu.dot_dimension_numbers<[1], [0], [0], [1], [0, 0, 1, 1], [], []>} : vector<8x16xf32>, vector<16x128xf32>, vector<8x128xf32> -> vector<8x128xf32>
    %281 = vector.broadcast %277 : vector<1x128xf32> to vector<8x128xf32>
    %282 = arith.addf %280, %281 : vector<8x128xf32>
    %c1_104 = arith.constant 1 : index
    %c0_105 = arith.constant 0 : index
    %c0_106 = arith.constant 0 : index
    %283 = vector.load %arg3[%c1_104, %c0_105, %c0_106] : memref<2x8x16xf32, #tpu.memory_space<vmem>>, vector<1x8x16xf32>
    %284 = vector.shape_cast %283 : vector<1x8x16xf32> to vector<8x16xf32>
    %cst_107 = arith.constant dense<0.000000e+00> : vector<8x128xf32>
    %285 = tpu.matmul %284, %275, %cst_107 {dimension_numbers = #tpu.dot_dimension_numbers<[1], [0], [0], [1], [0, 0, 1, 1], [], []>} : vector<8x16xf32>, vector<16x128xf32>, vector<8x128xf32> -> vector<8x128xf32>
    %286 = vector.broadcast %277 : vector<1x128xf32> to vector<8x128xf32>
    %287 = arith.addf %285, %286 : vector<8x128xf32>
    %cst_108 = arith.constant 0.000000e+00 : f32
    %288 = vector.broadcast %cst_108 : f32 to vector<2x32xf32>
    %cst_109 = arith.constant 0.000000e+00 : f32
    %289 = vector.broadcast %cst_109 : f32 to vector<2x32xf32>
    %290 = vector.extract_strided_slice %282 {offsets = [0, 0], sizes = [1, 128], strides = [1, 1]} : vector<8x128xf32> to vector<1x128xf32>
    %291 = vector.extract_strided_slice %287 {offsets = [0, 0], sizes = [1, 128], strides = [1, 1]} : vector<8x128xf32> to vector<1x128xf32>
    %292 = tpu.concatenate %290, %291 in 0 : vector<1x128xf32>, vector<1x128xf32> -> vector<2x128xf32>
    %cst_110 = arith.constant dense<0.000000e+00> : vector<2x128xf32>
    %293 = tpu.matmul %288, %276, %cst_110 {dimension_numbers = #tpu.dot_dimension_numbers<[1], [0], [0], [1], [0, 0, 1, 1], [], []>} : vector<2x32xf32>, vector<32x128xf32>, vector<2x128xf32> -> vector<2x128xf32>
    %294 = arith.addf %292, %293 : vector<2x128xf32>
    %295 = vector.extract_strided_slice %294 {offsets = [0, 0], sizes = [2, 96], strides = [1, 1]} : vector<2x128xf32> to vector<2x96xf32>
    %cst_111 = arith.constant 5.000000e-01 : f32
    %296 = vector.broadcast %cst_111 : f32 to vector<2x96xf32>
    %297 = arith.mulf %296, %295 : vector<2x96xf32>
    %298 = math.tanh %297 : vector<2x96xf32>
    %cst_112 = arith.constant 1.000000e+00 : f32
    %299 = vector.broadcast %cst_112 : f32 to vector<2x96xf32>
    %300 = arith.addf %298, %299 : vector<2x96xf32>
    %cst_113 = arith.constant 5.000000e-01 : f32
    %301 = vector.broadcast %cst_113 : f32 to vector<2x96xf32>
    %302 = arith.mulf %301, %300 : vector<2x96xf32>
    %303 = vector.extract_strided_slice %294 {offsets = [0, 96], sizes = [2, 32], strides = [1, 1]} : vector<2x128xf32> to vector<2x32xf32>
    %304 = math.tanh %303 : vector<2x32xf32>
    %305 = vector.extract_strided_slice %302 {offsets = [0, 32], sizes = [2, 32], strides = [1, 1]} : vector<2x96xf32> to vector<2x32xf32>
    %306 = arith.mulf %305, %289 : vector<2x32xf32>
    %307 = vector.extract_strided_slice %302 {offsets = [0, 0], sizes = [2, 32], strides = [1, 1]} : vector<2x96xf32> to vector<2x32xf32>
    %308 = arith.mulf %307, %304 : vector<2x32xf32>
    %309 = arith.addf %306, %308 : vector<2x32xf32>
    %310 = vector.extract_strided_slice %302 {offsets = [0, 64], sizes = [2, 32], strides = [1, 1]} : vector<2x96xf32> to vector<2x32xf32>
    %311 = math.tanh %309 : vector<2x32xf32>
    %312 = arith.mulf %310, %311 : vector<2x32xf32>
    %313 = vector.extract_strided_slice %282 {offsets = [1, 0], sizes = [1, 128], strides = [1, 1]} : vector<8x128xf32> to vector<1x128xf32>
    %314 = vector.extract_strided_slice %287 {offsets = [1, 0], sizes = [1, 128], strides = [1, 1]} : vector<8x128xf32> to vector<1x128xf32>
    %315 = tpu.concatenate %313, %314 in 0 : vector<1x128xf32>, vector<1x128xf32> -> vector<2x128xf32>
    %cst_114 = arith.constant dense<0.000000e+00> : vector<2x128xf32>
    %316 = tpu.matmul %312, %276, %cst_114 {dimension_numbers = #tpu.dot_dimension_numbers<[1], [0], [0], [1], [0, 0, 1, 1], [], []>} : vector<2x32xf32>, vector<32x128xf32>, vector<2x128xf32> -> vector<2x128xf32>
    %317 = arith.addf %315, %316 : vector<2x128xf32>
    %318 = vector.extract_strided_slice %317 {offsets = [0, 0], sizes = [2, 96], strides = [1, 1]} : vector<2x128xf32> to vector<2x96xf32>
    %cst_115 = arith.constant 5.000000e-01 : f32
    %319 = vector.broadcast %cst_115 : f32 to vector<2x96xf32>
    %320 = arith.mulf %319, %318 : vector<2x96xf32>
    %321 = math.tanh %320 : vector<2x96xf32>
    %cst_116 = arith.constant 1.000000e+00 : f32
    %322 = vector.broadcast %cst_116 : f32 to vector<2x96xf32>
    %323 = arith.addf %321, %322 : vector<2x96xf32>
    %cst_117 = arith.constant 5.000000e-01 : f32
    %324 = vector.broadcast %cst_117 : f32 to vector<2x96xf32>
    %325 = arith.mulf %324, %323 : vector<2x96xf32>
    %326 = vector.extract_strided_slice %317 {offsets = [0, 96], sizes = [2, 32], strides = [1, 1]} : vector<2x128xf32> to vector<2x32xf32>
    %327 = math.tanh %326 : vector<2x32xf32>
    %328 = vector.extract_strided_slice %325 {offsets = [0, 32], sizes = [2, 32], strides = [1, 1]} : vector<2x96xf32> to vector<2x32xf32>
    %329 = arith.mulf %328, %309 : vector<2x32xf32>
    %330 = vector.extract_strided_slice %325 {offsets = [0, 0], sizes = [2, 32], strides = [1, 1]} : vector<2x96xf32> to vector<2x32xf32>
    %331 = arith.mulf %330, %327 : vector<2x32xf32>
    %332 = arith.addf %329, %331 : vector<2x32xf32>
    %333 = vector.extract_strided_slice %325 {offsets = [0, 64], sizes = [2, 32], strides = [1, 1]} : vector<2x96xf32> to vector<2x32xf32>
    %334 = math.tanh %332 : vector<2x32xf32>
    %335 = arith.mulf %333, %334 : vector<2x32xf32>
    %336 = vector.extract_strided_slice %282 {offsets = [2, 0], sizes = [1, 128], strides = [1, 1]} : vector<8x128xf32> to vector<1x128xf32>
    %337 = vector.extract_strided_slice %287 {offsets = [2, 0], sizes = [1, 128], strides = [1, 1]} : vector<8x128xf32> to vector<1x128xf32>
    %338 = tpu.concatenate %336, %337 in 0 : vector<1x128xf32>, vector<1x128xf32> -> vector<2x128xf32>
    %cst_118 = arith.constant dense<0.000000e+00> : vector<2x128xf32>
    %339 = tpu.matmul %335, %276, %cst_118 {dimension_numbers = #tpu.dot_dimension_numbers<[1], [0], [0], [1], [0, 0, 1, 1], [], []>} : vector<2x32xf32>, vector<32x128xf32>, vector<2x128xf32> -> vector<2x128xf32>
    %340 = arith.addf %338, %339 : vector<2x128xf32>
    %341 = vector.extract_strided_slice %340 {offsets = [0, 0], sizes = [2, 96], strides = [1, 1]} : vector<2x128xf32> to vector<2x96xf32>
    %cst_119 = arith.constant 5.000000e-01 : f32
    %342 = vector.broadcast %cst_119 : f32 to vector<2x96xf32>
    %343 = arith.mulf %342, %341 : vector<2x96xf32>
    %344 = math.tanh %343 : vector<2x96xf32>
    %cst_120 = arith.constant 1.000000e+00 : f32
    %345 = vector.broadcast %cst_120 : f32 to vector<2x96xf32>
    %346 = arith.addf %344, %345 : vector<2x96xf32>
    %cst_121 = arith.constant 5.000000e-01 : f32
    %347 = vector.broadcast %cst_121 : f32 to vector<2x96xf32>
    %348 = arith.mulf %347, %346 : vector<2x96xf32>
    %349 = vector.extract_strided_slice %340 {offsets = [0, 96], sizes = [2, 32], strides = [1, 1]} : vector<2x128xf32> to vector<2x32xf32>
    %350 = math.tanh %349 : vector<2x32xf32>
    %351 = vector.extract_strided_slice %348 {offsets = [0, 32], sizes = [2, 32], strides = [1, 1]} : vector<2x96xf32> to vector<2x32xf32>
    %352 = arith.mulf %351, %332 : vector<2x32xf32>
    %353 = vector.extract_strided_slice %348 {offsets = [0, 0], sizes = [2, 32], strides = [1, 1]} : vector<2x96xf32> to vector<2x32xf32>
    %354 = arith.mulf %353, %350 : vector<2x32xf32>
    %355 = arith.addf %352, %354 : vector<2x32xf32>
    %356 = vector.extract_strided_slice %348 {offsets = [0, 64], sizes = [2, 32], strides = [1, 1]} : vector<2x96xf32> to vector<2x32xf32>
    %357 = math.tanh %355 : vector<2x32xf32>
    %358 = arith.mulf %356, %357 : vector<2x32xf32>
    %359 = vector.extract_strided_slice %282 {offsets = [3, 0], sizes = [1, 128], strides = [1, 1]} : vector<8x128xf32> to vector<1x128xf32>
    %360 = vector.extract_strided_slice %287 {offsets = [3, 0], sizes = [1, 128], strides = [1, 1]} : vector<8x128xf32> to vector<1x128xf32>
    %361 = tpu.concatenate %359, %360 in 0 : vector<1x128xf32>, vector<1x128xf32> -> vector<2x128xf32>
    %cst_122 = arith.constant dense<0.000000e+00> : vector<2x128xf32>
    %362 = tpu.matmul %358, %276, %cst_122 {dimension_numbers = #tpu.dot_dimension_numbers<[1], [0], [0], [1], [0, 0, 1, 1], [], []>} : vector<2x32xf32>, vector<32x128xf32>, vector<2x128xf32> -> vector<2x128xf32>
    %363 = arith.addf %361, %362 : vector<2x128xf32>
    %364 = vector.extract_strided_slice %363 {offsets = [0, 0], sizes = [2, 96], strides = [1, 1]} : vector<2x128xf32> to vector<2x96xf32>
    %cst_123 = arith.constant 5.000000e-01 : f32
    %365 = vector.broadcast %cst_123 : f32 to vector<2x96xf32>
    %366 = arith.mulf %365, %364 : vector<2x96xf32>
    %367 = math.tanh %366 : vector<2x96xf32>
    %cst_124 = arith.constant 1.000000e+00 : f32
    %368 = vector.broadcast %cst_124 : f32 to vector<2x96xf32>
    %369 = arith.addf %367, %368 : vector<2x96xf32>
    %cst_125 = arith.constant 5.000000e-01 : f32
    %370 = vector.broadcast %cst_125 : f32 to vector<2x96xf32>
    %371 = arith.mulf %370, %369 : vector<2x96xf32>
    %372 = vector.extract_strided_slice %363 {offsets = [0, 96], sizes = [2, 32], strides = [1, 1]} : vector<2x128xf32> to vector<2x32xf32>
    %373 = math.tanh %372 : vector<2x32xf32>
    %374 = vector.extract_strided_slice %371 {offsets = [0, 32], sizes = [2, 32], strides = [1, 1]} : vector<2x96xf32> to vector<2x32xf32>
    %375 = arith.mulf %374, %355 : vector<2x32xf32>
    %376 = vector.extract_strided_slice %371 {offsets = [0, 0], sizes = [2, 32], strides = [1, 1]} : vector<2x96xf32> to vector<2x32xf32>
    %377 = arith.mulf %376, %373 : vector<2x32xf32>
    %378 = arith.addf %375, %377 : vector<2x32xf32>
    %379 = vector.extract_strided_slice %371 {offsets = [0, 64], sizes = [2, 32], strides = [1, 1]} : vector<2x96xf32> to vector<2x32xf32>
    %380 = math.tanh %378 : vector<2x32xf32>
    %381 = arith.mulf %379, %380 : vector<2x32xf32>
    %382 = vector.extract_strided_slice %282 {offsets = [4, 0], sizes = [1, 128], strides = [1, 1]} : vector<8x128xf32> to vector<1x128xf32>
    %383 = vector.extract_strided_slice %287 {offsets = [4, 0], sizes = [1, 128], strides = [1, 1]} : vector<8x128xf32> to vector<1x128xf32>
    %384 = tpu.concatenate %382, %383 in 0 : vector<1x128xf32>, vector<1x128xf32> -> vector<2x128xf32>
    %cst_126 = arith.constant dense<0.000000e+00> : vector<2x128xf32>
    %385 = tpu.matmul %381, %276, %cst_126 {dimension_numbers = #tpu.dot_dimension_numbers<[1], [0], [0], [1], [0, 0, 1, 1], [], []>} : vector<2x32xf32>, vector<32x128xf32>, vector<2x128xf32> -> vector<2x128xf32>
    %386 = arith.addf %384, %385 : vector<2x128xf32>
    %387 = vector.extract_strided_slice %386 {offsets = [0, 0], sizes = [2, 96], strides = [1, 1]} : vector<2x128xf32> to vector<2x96xf32>
    %cst_127 = arith.constant 5.000000e-01 : f32
    %388 = vector.broadcast %cst_127 : f32 to vector<2x96xf32>
    %389 = arith.mulf %388, %387 : vector<2x96xf32>
    %390 = math.tanh %389 : vector<2x96xf32>
    %cst_128 = arith.constant 1.000000e+00 : f32
    %391 = vector.broadcast %cst_128 : f32 to vector<2x96xf32>
    %392 = arith.addf %390, %391 : vector<2x96xf32>
    %cst_129 = arith.constant 5.000000e-01 : f32
    %393 = vector.broadcast %cst_129 : f32 to vector<2x96xf32>
    %394 = arith.mulf %393, %392 : vector<2x96xf32>
    %395 = vector.extract_strided_slice %386 {offsets = [0, 96], sizes = [2, 32], strides = [1, 1]} : vector<2x128xf32> to vector<2x32xf32>
    %396 = math.tanh %395 : vector<2x32xf32>
    %397 = vector.extract_strided_slice %394 {offsets = [0, 32], sizes = [2, 32], strides = [1, 1]} : vector<2x96xf32> to vector<2x32xf32>
    %398 = arith.mulf %397, %378 : vector<2x32xf32>
    %399 = vector.extract_strided_slice %394 {offsets = [0, 0], sizes = [2, 32], strides = [1, 1]} : vector<2x96xf32> to vector<2x32xf32>
    %400 = arith.mulf %399, %396 : vector<2x32xf32>
    %401 = arith.addf %398, %400 : vector<2x32xf32>
    %402 = vector.extract_strided_slice %394 {offsets = [0, 64], sizes = [2, 32], strides = [1, 1]} : vector<2x96xf32> to vector<2x32xf32>
    %403 = math.tanh %401 : vector<2x32xf32>
    %404 = arith.mulf %402, %403 : vector<2x32xf32>
    %405 = vector.extract_strided_slice %282 {offsets = [5, 0], sizes = [1, 128], strides = [1, 1]} : vector<8x128xf32> to vector<1x128xf32>
    %406 = vector.extract_strided_slice %287 {offsets = [5, 0], sizes = [1, 128], strides = [1, 1]} : vector<8x128xf32> to vector<1x128xf32>
    %407 = tpu.concatenate %405, %406 in 0 : vector<1x128xf32>, vector<1x128xf32> -> vector<2x128xf32>
    %cst_130 = arith.constant dense<0.000000e+00> : vector<2x128xf32>
    %408 = tpu.matmul %404, %276, %cst_130 {dimension_numbers = #tpu.dot_dimension_numbers<[1], [0], [0], [1], [0, 0, 1, 1], [], []>} : vector<2x32xf32>, vector<32x128xf32>, vector<2x128xf32> -> vector<2x128xf32>
    %409 = arith.addf %407, %408 : vector<2x128xf32>
    %410 = vector.extract_strided_slice %409 {offsets = [0, 0], sizes = [2, 96], strides = [1, 1]} : vector<2x128xf32> to vector<2x96xf32>
    %cst_131 = arith.constant 5.000000e-01 : f32
    %411 = vector.broadcast %cst_131 : f32 to vector<2x96xf32>
    %412 = arith.mulf %411, %410 : vector<2x96xf32>
    %413 = math.tanh %412 : vector<2x96xf32>
    %cst_132 = arith.constant 1.000000e+00 : f32
    %414 = vector.broadcast %cst_132 : f32 to vector<2x96xf32>
    %415 = arith.addf %413, %414 : vector<2x96xf32>
    %cst_133 = arith.constant 5.000000e-01 : f32
    %416 = vector.broadcast %cst_133 : f32 to vector<2x96xf32>
    %417 = arith.mulf %416, %415 : vector<2x96xf32>
    %418 = vector.extract_strided_slice %409 {offsets = [0, 96], sizes = [2, 32], strides = [1, 1]} : vector<2x128xf32> to vector<2x32xf32>
    %419 = math.tanh %418 : vector<2x32xf32>
    %420 = vector.extract_strided_slice %417 {offsets = [0, 32], sizes = [2, 32], strides = [1, 1]} : vector<2x96xf32> to vector<2x32xf32>
    %421 = arith.mulf %420, %401 : vector<2x32xf32>
    %422 = vector.extract_strided_slice %417 {offsets = [0, 0], sizes = [2, 32], strides = [1, 1]} : vector<2x96xf32> to vector<2x32xf32>
    %423 = arith.mulf %422, %419 : vector<2x32xf32>
    %424 = arith.addf %421, %423 : vector<2x32xf32>
    %425 = vector.extract_strided_slice %417 {offsets = [0, 64], sizes = [2, 32], strides = [1, 1]} : vector<2x96xf32> to vector<2x32xf32>
    %426 = math.tanh %424 : vector<2x32xf32>
    %427 = arith.mulf %425, %426 : vector<2x32xf32>
    %428 = vector.extract_strided_slice %282 {offsets = [6, 0], sizes = [1, 128], strides = [1, 1]} : vector<8x128xf32> to vector<1x128xf32>
    %429 = vector.extract_strided_slice %287 {offsets = [6, 0], sizes = [1, 128], strides = [1, 1]} : vector<8x128xf32> to vector<1x128xf32>
    %430 = tpu.concatenate %428, %429 in 0 : vector<1x128xf32>, vector<1x128xf32> -> vector<2x128xf32>
    %cst_134 = arith.constant dense<0.000000e+00> : vector<2x128xf32>
    %431 = tpu.matmul %427, %276, %cst_134 {dimension_numbers = #tpu.dot_dimension_numbers<[1], [0], [0], [1], [0, 0, 1, 1], [], []>} : vector<2x32xf32>, vector<32x128xf32>, vector<2x128xf32> -> vector<2x128xf32>
    %432 = arith.addf %430, %431 : vector<2x128xf32>
    %433 = vector.extract_strided_slice %432 {offsets = [0, 0], sizes = [2, 96], strides = [1, 1]} : vector<2x128xf32> to vector<2x96xf32>
    %cst_135 = arith.constant 5.000000e-01 : f32
    %434 = vector.broadcast %cst_135 : f32 to vector<2x96xf32>
    %435 = arith.mulf %434, %433 : vector<2x96xf32>
    %436 = math.tanh %435 : vector<2x96xf32>
    %cst_136 = arith.constant 1.000000e+00 : f32
    %437 = vector.broadcast %cst_136 : f32 to vector<2x96xf32>
    %438 = arith.addf %436, %437 : vector<2x96xf32>
    %cst_137 = arith.constant 5.000000e-01 : f32
    %439 = vector.broadcast %cst_137 : f32 to vector<2x96xf32>
    %440 = arith.mulf %439, %438 : vector<2x96xf32>
    %441 = vector.extract_strided_slice %432 {offsets = [0, 96], sizes = [2, 32], strides = [1, 1]} : vector<2x128xf32> to vector<2x32xf32>
    %442 = math.tanh %441 : vector<2x32xf32>
    %443 = vector.extract_strided_slice %440 {offsets = [0, 32], sizes = [2, 32], strides = [1, 1]} : vector<2x96xf32> to vector<2x32xf32>
    %444 = arith.mulf %443, %424 : vector<2x32xf32>
    %445 = vector.extract_strided_slice %440 {offsets = [0, 0], sizes = [2, 32], strides = [1, 1]} : vector<2x96xf32> to vector<2x32xf32>
    %446 = arith.mulf %445, %442 : vector<2x32xf32>
    %447 = arith.addf %444, %446 : vector<2x32xf32>
    %448 = vector.extract_strided_slice %440 {offsets = [0, 64], sizes = [2, 32], strides = [1, 1]} : vector<2x96xf32> to vector<2x32xf32>
    %449 = math.tanh %447 : vector<2x32xf32>
    %450 = arith.mulf %448, %449 : vector<2x32xf32>
    %451 = vector.extract_strided_slice %282 {offsets = [7, 0], sizes = [1, 128], strides = [1, 1]} : vector<8x128xf32> to vector<1x128xf32>
    %452 = vector.extract_strided_slice %287 {offsets = [7, 0], sizes = [1, 128], strides = [1, 1]} : vector<8x128xf32> to vector<1x128xf32>
    %453 = tpu.concatenate %451, %452 in 0 : vector<1x128xf32>, vector<1x128xf32> -> vector<2x128xf32>
    %cst_138 = arith.constant dense<0.000000e+00> : vector<2x128xf32>
    %454 = tpu.matmul %450, %276, %cst_138 {dimension_numbers = #tpu.dot_dimension_numbers<[1], [0], [0], [1], [0, 0, 1, 1], [], []>} : vector<2x32xf32>, vector<32x128xf32>, vector<2x128xf32> -> vector<2x128xf32>
    %455 = arith.addf %453, %454 : vector<2x128xf32>
    %456 = vector.extract_strided_slice %455 {offsets = [0, 0], sizes = [2, 96], strides = [1, 1]} : vector<2x128xf32> to vector<2x96xf32>
    %cst_139 = arith.constant 5.000000e-01 : f32
    %457 = vector.broadcast %cst_139 : f32 to vector<2x96xf32>
    %458 = arith.mulf %457, %456 : vector<2x96xf32>
    %459 = math.tanh %458 : vector<2x96xf32>
    %cst_140 = arith.constant 1.000000e+00 : f32
    %460 = vector.broadcast %cst_140 : f32 to vector<2x96xf32>
    %461 = arith.addf %459, %460 : vector<2x96xf32>
    %cst_141 = arith.constant 5.000000e-01 : f32
    %462 = vector.broadcast %cst_141 : f32 to vector<2x96xf32>
    %463 = arith.mulf %462, %461 : vector<2x96xf32>
    %464 = vector.extract_strided_slice %455 {offsets = [0, 96], sizes = [2, 32], strides = [1, 1]} : vector<2x128xf32> to vector<2x32xf32>
    %465 = math.tanh %464 : vector<2x32xf32>
    %466 = vector.extract_strided_slice %463 {offsets = [0, 32], sizes = [2, 32], strides = [1, 1]} : vector<2x96xf32> to vector<2x32xf32>
    %467 = arith.mulf %466, %447 : vector<2x32xf32>
    %468 = vector.extract_strided_slice %463 {offsets = [0, 0], sizes = [2, 32], strides = [1, 1]} : vector<2x96xf32> to vector<2x32xf32>
    %469 = arith.mulf %468, %465 : vector<2x32xf32>
    %470 = arith.addf %467, %469 : vector<2x32xf32>
    %471 = vector.extract_strided_slice %463 {offsets = [0, 64], sizes = [2, 32], strides = [1, 1]} : vector<2x96xf32> to vector<2x32xf32>
    %472 = math.tanh %470 : vector<2x32xf32>
    %473 = arith.mulf %471, %472 : vector<2x32xf32>
    %474 = arith.addf %117, %274 : vector<2x32xf32>
    %475 = arith.addf %474, %473 : vector<2x32xf32>
    %c0_142 = arith.constant 0 : index
    %c0_143 = arith.constant 0 : index
    %476 = vector.load %arg21[%c0_142, %c0_143] : memref<1x32xf32, #tpu.memory_space<vmem>>, vector<1x32xf32>
    %477 = vector.broadcast %476 : vector<1x32xf32> to vector<2x32xf32>
    %478 = arith.mulf %475, %477 : vector<2x32xf32>
    %cst_144 = arith.constant dense<0.000000e+00> : vector<2xf32>
    %479 = vector.multi_reduction <add>, %478, %cst_144 [1] : vector<2x32xf32> to vector<2xf32>
    %480 = vector.shape_cast %479 : vector<2xf32> to vector<2x1xf32>
    %c0_145 = arith.constant 0 : index
    %c0_146 = arith.constant 0 : index
    %481 = vector.load %arg22[%c0_145, %c0_146] : memref<1x1xf32, #tpu.memory_space<vmem>>, vector<1x1xf32>
    %482 = vector.broadcast %481 : vector<1x1xf32> to vector<2x1xf32>
    %483 = arith.addf %480, %482 : vector<2x1xf32>
    %c0_147 = arith.constant 0 : index
    %c0_148 = arith.constant 0 : index
    %484 = vector.load %arg23[%c0_147, %c0_148] : memref<2x1xf32, #tpu.memory_space<vmem>>, vector<2x1xf32>
    tpu.vector_store %arg23[%c0_147, %c0_148], %483 {strides = array<i32>} : memref<2x1xf32, #tpu.memory_space<vmem>>, vector<2x1xf32>,
    return
  }
  func.func @transform_0(%arg0: i32) -> (i32, i32, i32) {
    %c0_i32 = arith.constant 0 : i32
    %c0_i32_0 = arith.constant 0 : i32
    %c0_i32_1 = arith.constant 0 : i32
    return %arg0, %c0_i32, %c0_i32_0 : i32, i32, i32
  }
  func.func @transform_1(%arg0: i32) -> (i32, i32) {
    %c0_i32 = arith.constant 0 : i32
    %c0_i32_0 = arith.constant 0 : i32
    return %arg0, %c0_i32 : i32, i32
  }
  func.func @transform_2(%arg0: i32) -> (i32, i32, i32) {
    %c0_i32 = arith.constant 0 : i32
    %c0_i32_0 = arith.constant 0 : i32
    %c0_i32_1 = arith.constant 0 : i32
    return %arg0, %c0_i32, %c0_i32_0 : i32, i32, i32
  }
  func.func @transform_3(%arg0: i32) -> (i32, i32) {
    %c0_i32 = arith.constant 0 : i32
    %c0_i32_0 = arith.constant 0 : i32
    %c0_i32_1 = arith.constant 0 : i32
    return %c0_i32, %c0_i32_0 : i32, i32
  }
  func.func @transform_4(%arg0: i32) -> (i32, i32) {
    %c0_i32 = arith.constant 0 : i32
    %c0_i32_0 = arith.constant 0 : i32
    %c0_i32_1 = arith.constant 0 : i32
    return %c0_i32, %c0_i32_0 : i32, i32
  }
  func.func @transform_5(%arg0: i32) -> (i32, i32) {
    %c0_i32 = arith.constant 0 : i32
    %c0_i32_0 = arith.constant 0 : i32
    %c0_i32_1 = arith.constant 0 : i32
    return %c0_i32, %c0_i32_0 : i32, i32
  }
  func.func @transform_6(%arg0: i32) -> (i32, i32) {
    %c0_i32 = arith.constant 0 : i32
    %c0_i32_0 = arith.constant 0 : i32
    %c0_i32_1 = arith.constant 0 : i32
    return %c0_i32, %c0_i32_0 : i32, i32
  }
  func.func @transform_7(%arg0: i32) -> (i32, i32) {
    %c0_i32 = arith.constant 0 : i32
    %c0_i32_0 = arith.constant 0 : i32
    %c0_i32_1 = arith.constant 0 : i32
    return %c0_i32, %c0_i32_0 : i32, i32
  }
  func.func @transform_8(%arg0: i32) -> (i32, i32) {
    %c0_i32 = arith.constant 0 : i32
    %c0_i32_0 = arith.constant 0 : i32
    %c0_i32_1 = arith.constant 0 : i32
    return %c0_i32, %c0_i32_0 : i32, i32
  }
  func.func @transform_9(%arg0: i32) -> (i32, i32) {
    %c0_i32 = arith.constant 0 : i32
    %c0_i32_0 = arith.constant 0 : i32
    %c0_i32_1 = arith.constant 0 : i32
    return %c0_i32, %c0_i32_0 : i32, i32
  }
  func.func @transform_10(%arg0: i32) -> (i32, i32) {
    %c0_i32 = arith.constant 0 : i32
    %c0_i32_0 = arith.constant 0 : i32
    %c0_i32_1 = arith.constant 0 : i32
    return %c0_i32, %c0_i32_0 : i32, i32
  }
  func.func @transform_11(%arg0: i32) -> (i32, i32) {
    %c0_i32 = arith.constant 0 : i32
    %c0_i32_0 = arith.constant 0 : i32
    %c0_i32_1 = arith.constant 0 : i32
    return %c0_i32, %c0_i32_0 : i32, i32
  }
  func.func @transform_12(%arg0: i32) -> (i32, i32) {
    %c0_i32 = arith.constant 0 : i32
    %c0_i32_0 = arith.constant 0 : i32
    %c0_i32_1 = arith.constant 0 : i32
    return %c0_i32, %c0_i32_0 : i32, i32
  }
  func.func @transform_13(%arg0: i32) -> (i32, i32) {
    %c0_i32 = arith.constant 0 : i32
    %c0_i32_0 = arith.constant 0 : i32
    %c0_i32_1 = arith.constant 0 : i32
    return %c0_i32, %c0_i32_0 : i32, i32
  }
  func.func @transform_14(%arg0: i32) -> (i32, i32) {
    %c0_i32 = arith.constant 0 : i32
    %c0_i32_0 = arith.constant 0 : i32
    %c0_i32_1 = arith.constant 0 : i32
    return %c0_i32, %c0_i32_0 : i32, i32
  }
  func.func @transform_15(%arg0: i32) -> (i32, i32) {
    %c0_i32 = arith.constant 0 : i32
    %c0_i32_0 = arith.constant 0 : i32
    %c0_i32_1 = arith.constant 0 : i32
    return %c0_i32, %c0_i32_0 : i32, i32
  }
  func.func @transform_16(%arg0: i32) -> (i32, i32) {
    %c0_i32 = arith.constant 0 : i32
    %c0_i32_0 = arith.constant 0 : i32
    %c0_i32_1 = arith.constant 0 : i32
    return %c0_i32, %c0_i32_0 : i32, i32
  }
  func.func @transform_17(%arg0: i32) -> (i32, i32) {
    %c0_i32 = arith.constant 0 : i32
    %c0_i32_0 = arith.constant 0 : i32
    %c0_i32_1 = arith.constant 0 : i32
    return %c0_i32, %c0_i32_0 : i32, i32
  }
  func.func @transform_18(%arg0: i32) -> (i32, i32) {
    %c0_i32 = arith.constant 0 : i32
    %c0_i32_0 = arith.constant 0 : i32
    %c0_i32_1 = arith.constant 0 : i32
    return %c0_i32, %c0_i32_0 : i32, i32
  }
  func.func @transform_19(%arg0: i32) -> (i32, i32) {
    %c0_i32 = arith.constant 0 : i32
    %c0_i32_0 = arith.constant 0 : i32
    %c0_i32_1 = arith.constant 0 : i32
    return %c0_i32, %c0_i32_0 : i32, i32
  }
  func.func @transform_20(%arg0: i32) -> (i32, i32) {
    %c0_i32 = arith.constant 0 : i32
    %c0_i32_0 = arith.constant 0 : i32
    %c0_i32_1 = arith.constant 0 : i32
    return %c0_i32, %c0_i32_0 : i32, i32
  }
  func.func @transform_21(%arg0: i32) -> (i32, i32) {
    %c0_i32 = arith.constant 0 : i32
    %c0_i32_0 = arith.constant 0 : i32
    %c0_i32_1 = arith.constant 0 : i32
    return %c0_i32, %c0_i32_0 : i32, i32
  }
  func.func @transform_22(%arg0: i32) -> (i32, i32) {
    %c0_i32 = arith.constant 0 : i32
    %c0_i32_0 = arith.constant 0 : i32
    return %arg0, %c0_i32 : i32, i32
  }
}

</mosaic_0001>

<bundles_post_ra>
// kernel: sep_rnn_forward.1
= control target key start
LH: loop header
LB: loop body
LE: loop exit
PB: predicated region body
PF: predicated region fallthrough
CT: control target
= control target key end

     0   :  { %vm87_vm0 = vcmask 1045504   ;;  %vm77_vm1 = vcmask 1046528   ;;  %vm97_vm2 = vcmask 1044480   ;;  %vm107_vm3 = vcmask 1043456   ;;  %s4785_s27 = smov 96   ;;  %s7192_s23 = smov 16   ;;  %s7163_s0 = inlined_call_operand.vmem [shape: f32[2,16,48], index: 0, kind: input, shape index: {}]   ;;  %s7164_s3 = inlined_call_operand.vmem [shape: f32[240,96], index: 3, kind: input, shape index: {}]   ;;  %s7165_s5 = inlined_call_operand.vmem [shape: f32[288,160], index: 5, kind: input, shape index: {}]   ;;  %s7166_s4 = inlined_call_operand.vmem [shape: f32[2,96], index: 4, kind: input, shape index: {}]   ;;  %s7167_s7 = inlined_call_operand.vmem [shape: f32[480,128], index: 7, kind: input, shape index: {}]   ;;  %s7168_s6 = inlined_call_operand.vmem [shape: f32[2,160], index: 6, kind: input, shape index: {}]   ;;  %s7169_s1 = inlined_call_operand.vmem [shape: f32[2,16], index: 1, kind: input, shape index: {}]   ;;  %s7170_s11 = inlined_call_operand.vmem [shape: f32[4,400], index: 11, kind: input, shape index: {}]   ;;  %s7171_s12 = inlined_call_operand.vmem [shape: f32[2,400], index: 12, kind: input, shape index: {}]   ;;  %s7172_s13 = inlined_call_operand.vmem [shape: f32[4,400], index: 13, kind: input, shape index: {}]   ;;  %s7173_s9 = inlined_call_operand.vmem [shape: f32[1024,32], index: 9, kind: input, shape index: {}]   ;;  %s7174_s15 = inlined_call_operand.vmem [shape: f32[400,32], index: 15, kind: input, shape index: {}]   ;;  %s7175_s14 = inlined_call_operand.vmem [shape: f32[2,400], index: 14, kind: input, shape index: {}]   ;;  %s7176_s8 = inlined_call_operand.vmem [shape: f32[2,128], index: 8, kind: input, shape index: {}]   ;;  %s7177_s17 = inlined_call_operand.vmem [shape: f32[16,128], index: 17, kind: input, shape index: {}]   ;;  %s7178_s2 = inlined_call_operand.vmem [shape: f32[2,8,16], index: 2, kind: input, shape index: {}]   ;;  %s7179_s18 = inlined_call_operand.vmem [shape: f32[32,128], index: 18, kind: input, shape index: {}]   ;;  %s7180_s10 = inlined_call_operand.vmem [shape: f32[1,32], index: 10, kind: input, shape index: {}]   ;;  %s7181_s19 = inlined_call_operand.vmem [shape: f32[1,128], index: 19, kind: input, shape index: {}]   ;;  %s7182_s16 = inlined_call_operand.vmem [shape: f32[1,32], index: 16, kind: input, shape index: {}]   ;;  %s7183_s21 = inlined_call_operand.<no memory space> [shape: f32[1,1], index: 21, kind: input, shape index: {}]   ;;  %s7184_s20 = inlined_call_operand.vmem [shape: f32[1,32], index: 20, kind: input, shape index: {}]   ;;  %s7185_s22 = inlined_call_operand.vmem [shape: f32[2,1], index: 22, kind: output, shape index: {}]  }
   0x1   :  { %7251 = sst [smem:[#allocation46_spill]] %s7163_s0  ;;  %v7194_v7 = vmov 0.0|0.0   ;;  %vm117_vm4 = vcmask 392192   ;;  %vm123_vm5 = vcmask 130048   ;;  %vm126_vm6 = vcmask 523264  }
   0x2   :  { %7252 = sst [smem:[#allocation47_spill]] %s7164_s3  ;;  %s7258_s29 = sld [smem:[#allocation46_spill]]  ;;  %4065 = vmatprep.subr.bf16.mxu0 %v7194_v7  ;;  %vm159_vm7 = vcmask 916480   ;;  %vm120_vm8 = vcmask 785408   ;;  %vm353_vm9 = vcmask 261120   ;;  %vm1339_vm10 = vcmask 1040384  }
   0x3   :  { %7253 = sst [smem:[#allocation48_spill]] %s7165_s5  ;;  %s7259_s3 = sld [smem:[#allocation47_spill]]  ;;  %vm4807_vm11 = vmmov 0   ;;  %vm3613_vm12 = vcmask 254976   ;;  %vm3625_vm13 = vcmask 1024  }
   0x4   :  { %7254 = sst [smem:[#allocation49_spill]] %s7166_s4  ;;  %s4786_s4 = smov 48  }
   0x5   :  { %7255 = sst [smem:[#allocation50_spill]] %s7167_s7  ;;  %s7260_s5 = sld [smem:[#allocation48_spill]] }
   0x6   :  { %7256 = sst [smem:[#allocation51_spill]] %s7168_s6  ;;  %s4788_s6 = smov 64  }
   0x7   :  { %7257 = sst [smem:[#allocation52_spill]] %s7169_s1  ;;  %s7276_s30 = sld [smem:[#allocation50_spill]] }
   0x8   :  { %v4926_v0 = vld [vmem:[%s7258_s29] sm:$0xff]  ;;  %v4931_v1 = vld [vmem:[%s7258_s29 + $0x8] sm:$0xff]  ;;  %s7300_s1 = sld [smem:[#allocation51_spill]]  ;;  %s7308_s7 = smov 16  }
   0x9   :  { %v129_v2 = vld [vmem:[%s7259_s3] sm:$0xff]  ;;  %v88_v3 = vrot.slane %v4926_v0, 2  ;;  %v89_v4 = vrot.slane %v4931_v1, 2  ;;  %v78_v5 = vrot.slane %v4926_v0, 1  ;;  %v79_v6 = vrot.slane %v4931_v1, 1  ;;  %v130_v8 = vld [vmem:[%s7259_s3 + $0x8] sm:$0xff] }
   0xa   :  { %v98_v9 = vrot.slane %v4926_v0, 3  ;;  %v99_v10 = vrot.slane %v4931_v1, 3  ;;  %v108_v11 = vrot.slane %v4926_v0, 4  ;;  %v109_v12 = vrot.slane %v4931_v1, 4  ;;  %v131_v13 = vld [vmem:[%s7259_s3 + $0x10] sm:$0xff]  ;;  %v132_v14 = vld [vmem:[%s7259_s3 + $0x18] sm:$0xff] }
   0xb   :  { %v90_v15 = vsel %vm87_vm0, %v88_v3, %v89_v4  ;;  %v80_v16 = vsel %vm77_vm1, %v78_v5, %v79_v6  ;;  %v4956_v17 = vpack.c.bf16 %v130_v8, %v129_v2  ;;  %v4963_v20 = vpack.c.bf16 %v132_v14, %v131_v13  ;;  %v133_v21 = vld [vmem:[%s7259_s3 + $0x20] sm:$0xff]  ;;  %v134_v22 = vld [vmem:[%s7259_s3 + $0x28] sm:$0xff]  ;;  %v135_v24 = vld [vmem:[%s7259_s3 + $0x30] sm:$0xff] }
   0xc   :  { %91 = vrot.lane.b32.xlu0 %v90_v15, %s4785_s27  ;;  %81 = vrot.lane.b32.xlu1 %v80_v16, %s4786_s4  ;;  %v100_v18 = vsel %vm97_vm2, %v98_v9, %v99_v10  ;;  %v110_v19 = vsel %vm107_vm3, %v108_v11, %v109_v12  ;;  %v4975_v23 = vpack.c.bf16 %v134_v22, %v133_v21  ;;  %v136_v25 = vld [vmem:[%s7259_s3 + $0x38] sm:$0xff]  ;;  %v137_v27 = vld [vmem:[%s7259_s3 + $0x40] sm:$0xff] }
   0xd   :  { %4067 = vmatpush1.bf16.msra.mxu0 %v4956_v17  ;;  %v4987_v26 = vpack.c.bf16 %v136_v25, %v135_v24  ;;  %v138_v28 = vld [vmem:[%s7259_s3 + $0x48] sm:$0xff]  ;;  %v139_v30 = vld [vmem:[%s7259_s3 + $0x50] sm:$0xff]  ;;  %v140_v31 = vld [vmem:[%s7259_s3 + $0x58] sm:$0xff] }
   0xe   :  { %4068 = vmatprep.subr.bf16.mxu0 %v7194_v7  ;;  %v4999_v29 = vpack.c.bf16 %v138_v28, %v137_v27  ;;  %v5009_v32 = vpack.c.bf16 %v140_v31, %v139_v30  ;;  %v141_v33 = vld [vmem:[%s7259_s3 + $0x60] sm:$0xff]  ;;  %v142_v34 = vld [vmem:[%s7259_s3 + $0x68] sm:$0xff]  ;;  %v143_v36 = vld [vmem:[%s7259_s3 + $0x70] sm:$0xff] }
   0xf   :  { %v5019_v35 = vpack.c.bf16 %v142_v34, %v141_v33  ;;  %v144_v37 = vld [vmem:[%s7259_s3 + $0x78] sm:$0xff]  ;;  %v145_v39 = vld [vmem:[%s7259_s3 + $0x80] sm:$0xff]  ;;  %v146_v40 = vld [vmem:[%s7259_s3 + $0x88] sm:$0xff] }
  0x10   :  { %101 = vrot.lane.b32.xlu0 %v100_v18, %s7192_s23  ;;  %111 = vrot.lane.b32.xlu1 %v110_v19, %s4788_s6  ;;  %v5029_v38 = vpack.c.bf16 %v144_v37, %v143_v36  ;;  %v5039_v41 = vpack.c.bf16 %v146_v40, %v145_v39  ;;  %v147_v42 = vld [vmem:[%s7259_s3 + $0x90] sm:$0xff]  ;;  %v148_v43 = vld [vmem:[%s7259_s3 + $0x98] sm:$0xff] }
  0x11   :  { %4070 = vmatpush1.bf16.msra.mxu0 %v4963_v20  ;;  %v5049_v44 = vpack.c.bf16 %v148_v43, %v147_v42  ;;  %v149_v45 = vld [vmem:[%s7259_s3 + $0xa0] sm:$0xff]  ;;  %v150_v46 = vld [vmem:[%s7259_s3 + $0xa8] sm:$0xff]  ;;  %v151_v48 = vld [vmem:[%s7259_s3 + $0xb0] sm:$0xff] }
  0x12   :  { %4071 = vmatprep.subr.bf16.mxu0 %v7194_v7  ;;  %v5059_v47 = vpack.c.bf16 %v150_v46, %v149_v45  ;;  %v152_v49 = vld [vmem:[%s7259_s3 + $0xb8] sm:$0xff]  ;;  %v153_v51 = vld [vmem:[%s7259_s3 + $0xc0] sm:$0xff]  ;;  %v154_v52 = vld [vmem:[%s7259_s3 + $0xc8] sm:$0xff] }
  0x13   :  { %v5069_v50 = vpack.c.bf16 %v152_v49, %v151_v48  ;;  %v5079_v53 = vpack.c.bf16 %v154_v52, %v153_v51  ;;  %v155_v54 = vld [vmem:[%s7259_s3 + $0xd0] sm:$0xff]  ;;  %v156_v55 = vld [vmem:[%s7259_s3 + $0xd8] sm:$0xff]  ;;  %v157_v57 = vld [vmem:[%s7259_s3 + $0xe0] sm:$0xff] }
  0x14   :  { %93 = vrot.lane.b32.xlu0 %v89_v4, %s4785_s27  ;;  %103 = vrot.lane.b32.xlu1 %v99_v10, %s7192_s23  ;;  %v5089_v56 = vpack.c.bf16 %v156_v55, %v155_v54  ;;  %v158_v58 = vld [vmem:[%s7259_s3 + $0xe8] sm:$0xff]  ;;  %v284_v15 = vld [vmem:[%s7260_s5 + $0x18] sm:$0xff]  ;;  %s7268_s3 = sld [smem:[#allocation49_spill]]  ;;  %s7339_s23 = sld [smem:[#allocation52_spill]] }
  0x15   :  { %4073 = vmatpush1.bf16.msra.mxu0 %v4975_v23  ;;  %v5099_v59 = vpack.c.bf16 %v158_v58, %v157_v57  ;;  %v282_v14 = vld [vmem:[%s7260_s5 + $0x8] sm:$0xff]  ;;  %v281_v16 = vld [vmem:[%s7260_s5] sm:$0xff]  ;;  %v283_v18 = vld [vmem:[%s7260_s5 + $0x10] sm:$0xff] }
  0x16   :  { %4074 = vmatprep.subr.bf16.mxu0 %v7194_v7  ;;  %v286_v19 = vld [vmem:[%s7260_s5 + $0x28] sm:$0xff]  ;;  %v288_v21 = vld [vmem:[%s7260_s5 + $0x38] sm:$0xff]  ;;  %v5135_v22 = vpack.c.bf16 %v283_v18, %v281_v16  ;;  %v285_v25 = vld [vmem:[%s7260_s5 + $0x20] sm:$0xff] }
  0x17   :  { %v5137_v24 = vpack.c.bf16 %v288_v21, %v286_v19  ;;  %v287_v27 = vld [vmem:[%s7260_s5 + $0x30] sm:$0xff]  ;;  %v290_v28 = vld [vmem:[%s7260_s5 + $0x48] sm:$0xff]  ;;  %v292_v30 = vld [vmem:[%s7260_s5 + $0x58] sm:$0xff] }
  0x18   :  { %83 = vrot.lane.b32.xlu0 %v79_v6, %s4786_s4  ;;  %113 = vrot.lane.b32.xlu1 %v109_v12, %s4788_s6  ;;  %v5153_v31 = vpack.c.bf16 %v287_v27, %v285_v25  ;;  %v5156_v33 = vpack.c.bf16 %v292_v30, %v290_v28  ;;  %v289_v34 = vld [vmem:[%s7260_s5 + $0x40] sm:$0xff]  ;;  %v291_v36 = vld [vmem:[%s7260_s5 + $0x50] sm:$0xff] }
  0x19   :  { %4076 = vmatpush1.bf16.msra.mxu0 %v4987_v26  ;;  %v294_v37 = vld [vmem:[%s7260_s5 + $0x68] sm:$0xff]  ;;  %v296_v39 = vld [vmem:[%s7260_s5 + $0x78] sm:$0xff]  ;;  %v5171_v40 = vpack.c.bf16 %v291_v36, %v289_v34  ;;  %v293_v43 = vld [vmem:[%s7260_s5 + $0x60] sm:$0xff] }
  0x1a   :  { %4077 = vmatprep.subr.bf16.mxu0 %v7194_v7  ;;  %v5174_v42 = vpack.c.bf16 %v296_v39, %v294_v37  ;;  %v295_v45 = vld [vmem:[%s7260_s5 + $0x70] sm:$0xff]  ;;  %v298_v46 = vld [vmem:[%s7260_s5 + $0x88] sm:$0xff]  ;;  %v300_v48 = vld [vmem:[%s7260_s5 + $0x98] sm:$0xff] }
  0x1b   :  { %v5189_v49 = vpack.c.bf16 %v295_v45, %v293_v43  ;;  %v5192_v51 = vpack.c.bf16 %v300_v48, %v298_v46  ;;  %v297_v52 = vld [vmem:[%s7260_s5 + $0x80] sm:$0xff]  ;;  %v299_v54 = vld [vmem:[%s7260_s5 + $0x90] sm:$0xff]  ;;  %v302_v55 = vld [vmem:[%s7260_s5 + $0xa8] sm:$0xff] }
  0x1c   :  { %v304_v57 = vld [vmem:[%s7260_s5 + $0xb8] sm:$0xff]  ;;  %v5207_v58 = vpack.c.bf16 %v299_v54, %v297_v52  ;;  %v313_v18 = vld [vmem:[%s7260_s5 + $0x100] sm:$0xff]  ;;  %v315_v19 = vld [vmem:[%s7260_s5 + $0x110] sm:$0xff] }
  0x1d   :  { %4079 = vmatpush1.bf16.msra.mxu0 %v4999_v29  ;;  %v318_v21 = vld [vmem:[%s7260_s5 + $0x128] sm:$0xff]  ;;  %v320_v25 = vld [vmem:[%s7260_s5 + $0x138] sm:$0xff]  ;;  %v5279_v27 = vpack.c.bf16 %v315_v19, %v313_v18  ;;  %v317_v30 = vld [vmem:[%s7260_s5 + $0x120] sm:$0xff] }
  0x1e   :  { %4080 = vmatprep.subr.bf16.mxu0 %v7194_v7  ;;  %v5282_v28 = vpack.c.bf16 %v320_v25, %v318_v21  ;;  %v319_v34 = vld [vmem:[%s7260_s5 + $0x130] sm:$0xff]  ;;  %v322_v36 = vld [vmem:[%s7260_s5 + $0x148] sm:$0xff]  ;;  %v324_v37 = vld [vmem:[%s7260_s5 + $0x158] sm:$0xff] }
  0x1f   :  { %v5297_v39 = vpack.c.bf16 %v319_v34, %v317_v30  ;;  %v5300_v43 = vpack.c.bf16 %v324_v37, %v322_v36  ;;  %v321_v45 = vld [vmem:[%s7260_s5 + $0x140] sm:$0xff]  ;;  %v323_v46 = vld [vmem:[%s7260_s5 + $0x150] sm:$0xff]  ;;  %v326_v48 = vld [vmem:[%s7260_s5 + $0x168] sm:$0xff] }
  0x20   :  { %v328_v52 = vld [vmem:[%s7260_s5 + $0x178] sm:$0xff]  ;;  %v5315_v54 = vpack.c.bf16 %v323_v46, %v321_v45  ;;  %v335_v18 = vld [vmem:[%s7260_s5 + $0x1b0] sm:$0xff]  ;;  %v338_v19 = vld [vmem:[%s7260_s5 + $0x1c8] sm:$0xff] }
  0x21   :  { %4082 = vmatpush1.bf16.msra.mxu0 %v5009_v32  ;;  %v340_v21 = vld [vmem:[%s7260_s5 + $0x1d8] sm:$0xff]  ;;  %v337_v34 = vld [vmem:[%s7260_s5 + $0x1c0] sm:$0xff]  ;;  %v339_v36 = vld [vmem:[%s7260_s5 + $0x1d0] sm:$0xff] }
  0x22   :  { %4083 = vmatprep.subr.bf16.mxu0 %v7194_v7  ;;  %v5372_v30 = vpack.c.bf16 %v340_v21, %v338_v19  ;;  %v342_v37 = vld [vmem:[%s7260_s5 + $0x1e8] sm:$0xff]  ;;  %v344_v45 = vld [vmem:[%s7260_s5 + $0x1f8] sm:$0xff]  ;;  %v5387_v46 = vpack.c.bf16 %v339_v36, %v337_v34 }
  0x24   :  { %7264 = vst [vmem:[#allocation6_spill] sm:$0xff] %v5372_v30  ;;  %7265 = vst [vmem:[#allocation7_spill] sm:$0xff] %v5387_v46 }
  0x25   :  { %4085 = vmatpush1.bf16.msra.mxu0 %v5019_v35 }
  0x26   :  { %4086 = vmatprep.subr.bf16.mxu0 %v7194_v7 }
  0x29   :  { %4088 = vmatpush1.bf16.msra.mxu0 %v5029_v38 }
  0x2a   :  { %4089 = vmatprep.subr.bf16.mxu0 %v7194_v7 }
  0x2d   :  { %4091 = vmatpush1.bf16.msra.mxu0 %v5039_v41 }
  0x2e   :  { %4092 = vmatprep.subr.bf16.mxu0 %v7194_v7 }
  0x31   :  { %4094 = vmatpush1.bf16.msra.mxu0 %v5049_v44 }
  0x32   :  { %4095 = vmatprep.subr.bf16.mxu0 %v7194_v7 }
  0x35   :  { %4097 = vmatpush1.bf16.msra.mxu0 %v5059_v47 }
  0x36   :  { %4098 = vmatprep.subr.bf16.mxu0 %v7194_v7 }
  0x39   :  { %4100 = vmatpush1.bf16.msra.mxu0 %v5069_v50 }
  0x3a   :  { %4101 = vmatprep.subr.bf16.mxu0 %v7194_v7 }
  0x3d   :  { %4103 = vmatpush1.bf16.msra.mxu0 %v5079_v53 }
  0x3e   :  { %4104 = vmatprep.subr.bf16.mxu0 %v7194_v7 }
  0x41   :  { %4106 = vmatpush1.bf16.msra.mxu0 %v5089_v56 }
  0x42   :  { %4107 = vmatprep.subr.bf16.mxu0 %v7194_v7 }
  0x45   :  { %4109 = vmatpush1.bf16.msra.mxu0 %v5099_v59 }
  0x7e   :  { %v92_v60 = vpop.permute.xlu0 %91  ;;  %v82_v61 = vpop.permute.xlu1 %81 }
  0x7f   :  { %v118_v62 = vsel %vm117_vm4, %v4926_v0, %v82_v61  ;;  %v301_v61 = vld [vmem:[%s7260_s5 + $0xa0] sm:$0xff] }
  0x80   :  { %v121_v5 = vsel %vm120_vm8, %v118_v62, %v92_v60  ;;  %v303_v62 = vld [vmem:[%s7260_s5 + $0xb0] sm:$0xff] }
  0x82   :  { %v102_v63 = vpop.permute.xlu0 %101  ;;  %v112_v2 = vpop.permute.xlu1 %111 }
  0x83   :  { %v124_v3 = vsel %vm123_vm5, %v92_v60, %v102_v63  ;;  %v5210_v60 = vpack.c.bf16 %v304_v57, %v302_v55  ;;  %v306_v63 = vld [vmem:[%s7260_s5 + $0xc8] sm:$0xff]  ;;  %v5318_v55 = vpack.c.bf16 %v328_v52, %v326_v48  ;;  %v325_v57 = vld [vmem:[%s7260_s5 + $0x160] sm:$0xff]  ;;  %v5390_v48 = vpack.c.bf16 %v344_v45, %v342_v37 }
  0x84   :  { %v127_v4 = vsel %vm126_vm6, %v124_v3, %v112_v2  ;;  %v308_v2 = vld [vmem:[%s7260_s5 + $0xd8] sm:$0xff]  ;;  %v5225_v3 = vpack.c.bf16 %v303_v62, %v301_v61  ;;  %v327_v61 = vld [vmem:[%s7260_s5 + $0x170] sm:$0xff]  ;;  %v330_v62 = vld [vmem:[%s7260_s5 + $0x188] sm:$0xff] }
  0x85   :  { %3631 = vmatprep.mubr.msk.f32.mxu0 %vm159_vm7, %v127_v4  ;;  %v5228_v4 = vpack.c.bf16 %v308_v2, %v306_v63  ;;  %v332_v63 = vld [vmem:[%s7260_s5 + $0x198] sm:$0xff]  ;;  %v5333_v2 = vpack.c.bf16 %v327_v61, %v325_v57  ;;  %7266 = vst [vmem:[#allocation8_spill] sm:$0xff] %v5390_v48  ;;  %v341_v52 = vld [vmem:[%s7260_s5 + $0x1e0] sm:$0xff]  ;;  %v343_v57 = vld [vmem:[%s7260_s5 + $0x1f0] sm:$0xff] }
  0x86   :  { %v94_v6 = vpop.permute.xlu0 %93  ;;  %231 = vmatmul.mubr.f32.vlgmr.msra.gmra.mrb[0].mxu0 %v121_v5  ;;  %v104_v8 = vpop.permute.xlu1 %103  ;;  %v305_v5 = vld [vmem:[%s7260_s5 + $0xc0] sm:$0xff]  ;;  %v5399_v61 = vpack.c.bf16 %v343_v57, %v341_v52 }
  0x87   :  { %v125_v9 = vsel %vm123_vm5, %v94_v6, %v104_v8  ;;  %v310_v8 = vld [vmem:[%s7260_s5 + $0xe8] sm:$0xff] }
  0x88   :  { %7267 = vst [vmem:[#allocation9_spill] sm:$0xff] %v5399_v61 }
  0x8a   :  { %v84_v10 = vpop.permute.xlu0 %83  ;;  %v114_v11 = vpop.permute.xlu1 %113 }
  0x8b   :  { %v119_v0 = vsel %vm117_vm4, %v4931_v1, %v84_v10  ;;  %v128_v12 = vsel %vm126_vm6, %v125_v9, %v114_v11  ;;  %v5124_v1 = vpack.c.bf16 %v284_v15, %v282_v14  ;;  %v312_v9 = vld [vmem:[%s7260_s5 + $0xf8] sm:$0xff] }
  0x8c   :  { %3632 = vmatprep.mubr.msk.f32.mxu0 %vm159_vm7, %v128_v12  ;;  %v122_v13 = vsel %vm120_vm8, %v119_v0, %v94_v6  ;;  %v307_v6 = vld [vmem:[%s7260_s5 + $0xd0] sm:$0xff]  ;;  %v5246_v11 = vpack.c.bf16 %v312_v9, %v310_v8  ;;  %v309_v0 = vld [vmem:[%s7260_s5 + $0xe0] sm:$0xff]  ;;  %v316_v14 = vld [vmem:[%s7260_s5 + $0x118] sm:$0xff] }
  0x8d   :  { %236 = vmatmul.mubr.f32.gmra.mrb[2].mxu0 %v122_v13  ;;  %4111 = vmatprep.subr.bf16.mxu1 %v5124_v1  ;;  %v5243_v10 = vpack.c.bf16 %v307_v6, %v305_v5  ;;  %v311_v12 = vld [vmem:[%s7260_s5 + $0xf0] sm:$0xff]  ;;  %v314_v13 = vld [vmem:[%s7260_s5 + $0x108] sm:$0xff]  ;;  %v5336_v5 = vpack.c.bf16 %v332_v63, %v330_v62  ;;  %v329_v6 = vld [vmem:[%s7260_s5 + $0x180] sm:$0xff] }
  0x8e   :  { %4113 = vmatpush1.bf16.msra.mxu1 %v5135_v22  ;;  %v5261_v15 = vpack.c.bf16 %v311_v12, %v309_v0  ;;  %v5264_v16 = vpack.c.bf16 %v316_v14, %v314_v13  ;;  %v331_v8 = vld [vmem:[%s7260_s5 + $0x190] sm:$0xff]  ;;  %v334_v9 = vld [vmem:[%s7260_s5 + $0x1a8] sm:$0xff]  ;;  %v336_v0 = vld [vmem:[%s7260_s5 + $0x1b8] sm:$0xff] }
  0x8f   :  { %4115 = vmatprep.subr.bf16.mxu1 %v5137_v24  ;;  %v5351_v12 = vpack.c.bf16 %v331_v8, %v329_v6  ;;  %v5354_v13 = vpack.c.bf16 %v336_v0, %v334_v9  ;;  %v333_v14 = vld [vmem:[%s7260_s5 + $0x1a0] sm:$0xff]  ;;  %v346_v0 = vld [vmem:[%s7260_s5 + $0x208] sm:$0xff] }
  0x90   :  { %v5369_v25 = vpack.c.bf16 %v335_v18, %v333_v14  ;;  %v5406_v62 = vld [vmem:[%s7268_s3] ss:$0 sm:$0xff]  ;;  %v5412_v9 = vld [vmem:[%s7268_s3 + $0x1] ss:$0 sm:$0xff]  ;;  %v348_v14 = vld [vmem:[%s7260_s5 + $0x218] sm:$0xff] }
  0x91   :  { %7261 = vst [vmem:[#allocation3_spill] sm:$0xff] %v5351_v12  ;;  %7262 = vst [vmem:[#allocation4_spill] sm:$0xff] %v5354_v13  ;;  %v5420_v18 = vpack.c.bf16 %v348_v14, %v346_v0  ;;  %v5438_v14 = vld [vmem:[%s7258_s29 + $0x18] sm:$0xff] }
  0x92   :  { %4117 = vmatpush1.bf16.msra.mxu1 %v5153_v31  ;;  %7263 = vst [vmem:[#allocation5_spill] sm:$0xff] %v5369_v25  ;;  %7269 = vst [vmem:[#allocation10_spill] sm:$0xff] %v5406_v62 }
  0x93   :  { %4119 = vmatprep.subr.bf16.mxu1 %v5156_v33  ;;  %7270 = vst [vmem:[#allocation11_spill] sm:$0xff] %v5412_v9  ;;  %7271 = vst [vmem:[#allocation12_spill] sm:$0xff] %v5420_v18 }
  0x96   :  { %4121 = vmatpush1.bf16.msra.mxu1 %v5171_v40 }
  0x97   :  { %4123 = vmatprep.subr.bf16.mxu1 %v5174_v42 }
  0x9a   :  { %4125 = vmatpush1.bf16.msra.mxu1 %v5189_v49 }
  0x9b   :  { %4127 = vmatprep.subr.bf16.mxu1 %v5192_v51 }
  0x9e   :  { %4129 = vmatpush1.bf16.msra.mxu1 %v5207_v58 }
  0x9f   :  { %4131 = vmatprep.subr.bf16.mxu1 %v5210_v60 }
  0xa2   :  { %4133 = vmatpush1.bf16.msra.mxu1 %v5225_v3 }
  0xa3   :  { %4135 = vmatprep.subr.bf16.mxu1 %v5228_v4 }
  0xa6   :  { %4137 = vmatpush1.bf16.msra.mxu1 %v5243_v10 }
  0xa7   :  { %4139 = vmatprep.subr.bf16.mxu1 %v5246_v11 }
  0xaa   :  { %4141 = vmatpush1.bf16.msra.mxu1 %v5261_v15 }
  0xab   :  { %4143 = vmatprep.subr.bf16.mxu1 %v5264_v16 }
  0xae   :  { %4145 = vmatpush1.bf16.msra.mxu1 %v5279_v27 }
  0xaf   :  { %4147 = vmatprep.subr.bf16.mxu1 %v5282_v28 }
  0xb2   :  { %4149 = vmatpush1.bf16.msra.mxu1 %v5297_v39 }
  0xb3   :  { %4151 = vmatprep.subr.bf16.mxu1 %v5300_v43 }
  0xb6   :  { %4153 = vmatpush1.bf16.msra.mxu1 %v5315_v54 }
  0xb7   :  { %4155 = vmatprep.subr.bf16.mxu1 %v5318_v55 }
  0xba   :  { %4157 = vmatpush1.bf16.msra.mxu1 %v5333_v2 }
  0xbb   :  { %4159 = vmatprep.subr.bf16.mxu1 %v5336_v5 }
  0xbe   :  { %4161 = vmatpush1.bf16.msra.mxu1 %v5351_v12  ;;  %v632_v12 = vld [vmem:[%s7276_s30 + $0x1a0] sm:$0xff] }
  0xbf   :  { %4163 = vmatprep.subr.bf16.mxu1 %v5354_v13 }
  0xc2   :  { %4165 = vmatpush1.bf16.msra.mxu1 %v5369_v25 }
  0xc3   :  { %4167 = vmatprep.subr.bf16.mxu1 %v5372_v30  ;;  %v589_v30 = vld [vmem:[%s7276_s30 + $0x48] sm:$0xff] }
  0xc6   :  { %4169 = vmatpush1.bf16.msra.mxu1 %v5387_v46 }
  0xc7   :  { %4171 = vmatprep.subr.bf16.mxu1 %v5390_v48  ;;  %v587_v48 = vld [vmem:[%s7276_s30 + $0x38] sm:$0xff] }
  0xca   :  { %4173 = vmatpush1.bf16.msra.mxu1 %v5399_v61 }
  0xcb   :  { %4175 = vmatprep.subr.bf16.mxu1 %v5420_v18 }
 0x159   :  { %v232_v63 = vpop.f32.mrb[0].mxu0 }
 0x15a   :  { %v234_v6 = vpop.f32.mrb[1].mxu0  ;;  %v246_v8 = vmul.f32 %v5406_v62, %v232_v63 }
 0x15c   :  { %v253_v19 = vadd.f32 %v5412_v9, %v246_v8  ;;  %v5433_v8 = vld [vmem:[%s7258_s29 + $0x10] sm:$0xff] }
 0x15e   :  { %v255_v37 = vmax.f32 %v253_v19, 0.0  ;;  %v824_v19 = vrot.slane %v5433_v8, 2 }
 0x160   :  { %v237_v21 = vpop.f32.mrb[2].mxu0  ;;  %v268_v57 = vrot.slane %v255_v37, 2  ;;  %v259_v6 = vrot.slane %v255_v37, 1 }
 0x161   :  { %v247_v34 = vmul.f32 %v5406_v62, %v237_v21  ;;  %v239_v36 = vpop.f32.mrb[3].mxu0  ;;  %v825_v21 = vrot.slane %v5438_v14, 2  ;;  %v351_v62 = vld [vmem:[%s7260_s5 + $0x230] sm:$0xff] }
 0x162   :  { %v347_v36 = vld [vmem:[%s7260_s5 + $0x210] sm:$0xff] }
 0x163   :  { %v254_v45 = vadd.f32 %v5412_v9, %v247_v34  ;;  %v345_v34 = vld [vmem:[%s7260_s5 + $0x200] sm:$0xff] }
 0x164   :  { %v349_v9 = vld [vmem:[%s7260_s5 + $0x220] sm:$0xff] }
 0x165   :  { %v256_v52 = vmax.f32 %v254_v45, 0.0  ;;  %v350_v45 = vld [vmem:[%s7260_s5 + $0x228] sm:$0xff]  ;;  %v5471_v18 = vpack.c.bf16 %v351_v62, %v349_v9  ;;  %v815_v62 = vrot.slane %v5433_v8, 1  ;;  %v816_v9 = vrot.slane %v5438_v14, 1 }
 0x167   :  { %v269_v63 = vrot.slane %v256_v52, 2  ;;  %v260_v7 = vrot.slane %v256_v52, 1  ;;  %7274 = vst [vmem:[#allocation15_spill] sm:$0xff] %v5471_v18 }
 0x169   :  { %v270_v61 = vsel %vm87_vm0, %v268_v57, %v269_v63  ;;  %v261_v0 = vsel %vm77_vm1, %v259_v6, %v260_v7  ;;  %v5458_v6 = vpack.c.bf16 %v347_v36, %v345_v34 }
 0x16a   :  { %271 = vrot.lane.b32.xlu1 %v270_v61, %s4788_s6  ;;  %262 = vrot.lane.b32.xlu0 %v261_v0, %s4785_s27  ;;  %v826_v61 = vsel %vm87_vm0, %v824_v19, %v825_v21 }
 0x16b   :  { %7272 = vst [vmem:[#allocation13_spill] sm:$0xff] %v5458_v6 }
 0x16e   :  { %273 = vrot.lane.b32.xlu1 %v269_v63, %s4788_s6  ;;  %264 = vrot.lane.b32.xlu0 %v260_v7, %s4785_s27  ;;  %v352_v7 = vld [vmem:[%s7260_s5 + $0x238] sm:$0xff] }
 0x172   :  { %827 = vrot.lane.b32.xlu1 %v826_v61, %s4785_s27  ;;  %v5462_v61 = vpack.c.bf16 %v352_v7, %v350_v45  ;;  %v7202_v7 = vmov 0.0  }
 0x174   :  { %7273 = vst [vmem:[#allocation14_spill] sm:$0xff] %v5462_v61 }
 0x1dc   :  { %v272_v57 = vpop.permute.xlu1 %271  ;;  %v263_v63 = vpop.permute.xlu0 %262 }
 0x1dd   :  { %v279_v0 = vsel %vm126_vm6, %v263_v63, %v272_v57  ;;  %v277_v19 = vsel %vm120_vm8, %v255_v37, %v263_v63  ;;  %v7275_v63 = vmov 0.0|0.0  }
 0x1de   :  { %422 = vmatprep.mubr.f32.mxu1 %v279_v0  ;;  %v613_v0 = vld [vmem:[%s7276_s30 + $0x108] sm:$0xff] }
 0x1df   :  { %423 = vmatmul.mubr.f32.vlgmr.msra.gmra.mrb[0].mxu1 %v277_v19  ;;  %v596_v19 = vld [vmem:[%s7276_s30 + $0x80] sm:$0xff] }
 0x1e0   :  { %4177 = vmatpush1.bf16.msra.mxu1 %v5458_v6  ;;  %v274_v34 = vpop.permute.xlu1 %273  ;;  %v265_v36 = vpop.permute.xlu0 %264  ;;  %v586_v6 = vld [vmem:[%s7276_s30 + $0x30] sm:$0xff] }
 0x1e1   :  { %v280_v37 = vsel %vm126_vm6, %v265_v36, %v274_v34  ;;  %4179 = vmatprep.subr.bf16.mxu1 %v5462_v61  ;;  %v278_v45 = vsel %vm120_vm8, %v256_v52, %v265_v36  ;;  %v817_v52 = vsel %vm77_vm1, %v815_v62, %v816_v9  ;;  %v580_v36 = vld [vmem:[%s7276_s30] sm:$0xff]  ;;  %v585_v61 = vld [vmem:[%s7276_s30 + $0x28] sm:$0xff] }
 0x1e2   :  { %428 = vmatprep.mubr.f32.mxu1 %v280_v37  ;;  %818 = vrot.lane.b32.xlu1 %v817_v52, %s4786_s4  ;;  %v581_v37 = vld [vmem:[%s7276_s30 + $0x8] sm:$0xff]  ;;  %v615_v52 = vld [vmem:[%s7276_s30 + $0x118] sm:$0xff] }
 0x1e3   :  { %429 = vmatmul.mubr.f32.gmra.mrb[2].mxu1 %v278_v45  ;;  %v5510_v62 = vpack.c.bf16 %v581_v37, %v580_v36  ;;  %v583_v36 = vld [vmem:[%s7276_s30 + $0x18] sm:$0xff] }
 0x1e4   :  { %4181 = vmatpush1.bf16.msra.mxu1 %v5471_v18  ;;  %499 = vmatprep.mubr.f32.mxu1 %v7202_v7  ;;  %v584_v18 = vld [vmem:[%s7276_s30 + $0x20] sm:$0xff] }
 0x1e5   :  { %4214 = vmatprep.subr.bf16.mxu1 %v7275_v63 }
 0x1e6   :  { %829 = vrot.lane.b32.xlu1 %v825_v21, %s4785_s27  ;;  %v597_v21 = vld [vmem:[%s7276_s30 + $0x88] sm:$0xff] }
 0x1e7   :  { %3635 = vmatmul.mubr.msk.f32.vlgmr.msra.gmra.mrb[0].mxu1 %vm353_vm9, %v272_v57  ;;  %v612_v57 = vld [vmem:[%s7276_s30 + $0x100] sm:$0xff]  ;;  %v5508_v45 = vpack.c.bf16 %v597_v21, %v596_v19  ;;  %v599_v19 = vld [vmem:[%s7276_s30 + $0x98] sm:$0xff]  ;;  %v582_v21 = vld [vmem:[%s7276_s30 + $0x10] sm:$0xff] }
 0x1e8   :  { %505 = vmatprep.mubr.f32.mxu1 %v7202_v7  ;;  %v600_v7 = vld [vmem:[%s7276_s30 + $0xa0] sm:$0xff] }
 0x1e9   :  { %4183 = vmatprep.subr.bf16.mxu0 %v5508_v45 }
 0x1ea   :  { %820 = vrot.lane.b32.xlu1 %v816_v9, %s4786_s4  ;;  %v614_v9 = vld [vmem:[%s7276_s30 + $0x110] sm:$0xff]  ;;  %4185 = vmatpush3.bf16.msra.mxu0 %v5510_v62  ;;  %s4790_s4 = smov 32  }
 0x1eb   :  { %3636 = vmatmul.mubr.msk.f32.gmra.mrb[2].mxu1 %vm353_vm9, %v274_v34  ;;  %v5497_v34 = vpack.c.bf16 %v613_v0, %v612_v57  ;;  %v598_v57 = vld [vmem:[%s7276_s30 + $0x90] sm:$0xff]  ;;  %v5522_v0 = vpack.c.bf16 %v615_v52, %v614_v9  ;;  %v616_v9 = vld [vmem:[%s7276_s30 + $0x120] sm:$0xff]  ;;  %v617_v52 = vld [vmem:[%s7276_s30 + $0x128] sm:$0xff] }
 0x1ec   :  { %v5535_v37 = vpack.c.bf16 %v599_v19, %v598_v57  ;;  %v601_v57 = vld [vmem:[%s7276_s30 + $0xa8] sm:$0xff] }
 0x1ed   :  { %7277 = vst [vmem:[#allocation16_spill] sm:$0xff] %v5497_v34  ;;  %4216 = vmatpush1.bf16.msra.mxu1 %v5497_v34  ;;  %7278 = vst [vmem:[#allocation17_spill] sm:$0xff] %v5522_v0  ;;  %v5547_v34 = vpack.c.bf16 %v583_v36, %v582_v21  ;;  %v5553_v19 = vpack.c.bf16 %v601_v57, %v600_v7  ;;  %v5562_v21 = vpack.c.bf16 %v617_v52, %v616_v9  ;;  %v602_v36 = vld [vmem:[%s7276_s30 + $0xb0] sm:$0xff]  ;;  %v603_v7 = vld [vmem:[%s7276_s30 + $0xb8] sm:$0xff] }
 0x1ee   :  { %4217 = vmatprep.subr.bf16.mxu1 %v7275_v63  ;;  %4187 = vmatprep.subr.bf16.mxu0 %v5535_v37  ;;  %v618_v57 = vld [vmem:[%s7276_s30 + $0x130] sm:$0xff]  ;;  %v5578_v9 = vpack.c.bf16 %v585_v61, %v584_v18  ;;  %v5581_v52 = vpack.c.bf16 %v603_v7, %v602_v36  ;;  %v604_v18 = vld [vmem:[%s7276_s30 + $0xc0] sm:$0xff]  ;;  %v605_v61 = vld [vmem:[%s7276_s30 + $0xc8] sm:$0xff] }
 0x1ef   :  { %7279 = vst [vmem:[#allocation18_spill] sm:$0xff] %v5553_v19  ;;  %7280 = vst [vmem:[#allocation19_spill] sm:$0xff] %v5562_v21  ;;  %4189 = vmatpush3.bf16.msra.mxu0 %v5547_v34  ;;  %v620_v36 = vld [vmem:[%s7276_s30 + $0x140] sm:$0xff]  ;;  %v621_v7 = vld [vmem:[%s7276_s30 + $0x148] sm:$0xff] }
 0x1f0   :  { %7281 = vst [vmem:[#allocation20_spill] sm:$0xff] %v5578_v9  ;;  %4191 = vmatprep.subr.bf16.mxu0 %v5553_v19  ;;  %7282 = vst [vmem:[#allocation21_spill] sm:$0xff] %v5581_v52  ;;  %v5618_v25 = vpack.c.bf16 %v621_v7, %v620_v36  ;;  %v634_v19 = vld [vmem:[%s7276_s30 + $0x1b0] sm:$0xff] }
 0x1f1   :  { %4219 = vmatpush1.bf16.msra.mxu1 %v5522_v0  ;;  %v619_v0 = vld [vmem:[%s7276_s30 + $0x138] sm:$0xff] }
 0x1f2   :  { %4220 = vmatprep.subr.bf16.mxu1 %v7275_v63  ;;  %v5590_v46 = vpack.c.bf16 %v619_v0, %v618_v57  ;;  %v5606_v0 = vpack.c.bf16 %v587_v48, %v586_v6  ;;  %v5609_v57 = vpack.c.bf16 %v605_v61, %v604_v18  ;;  %7286 = vst [vmem:[#allocation25_spill] sm:$0xff] %v5618_v25  ;;  %v606_v48 = vld [vmem:[%s7276_s30 + $0xd0] sm:$0xff]  ;;  %v607_v6 = vld [vmem:[%s7276_s30 + $0xd8] sm:$0xff] }
 0x1f3   :  { %4193 = vmatpush3.bf16.msra.mxu0 %v5578_v9  ;;  %v622_v18 = vld [vmem:[%s7276_s30 + $0x150] sm:$0xff]  ;;  %v623_v61 = vld [vmem:[%s7276_s30 + $0x158] sm:$0xff]  ;;  %v5637_v7 = vpack.c.bf16 %v607_v6, %v606_v48  ;;  %v624_v48 = vld [vmem:[%s7276_s30 + $0x160] sm:$0xff] }
 0x1f4   :  { %7283 = vst [vmem:[#allocation22_spill] sm:$0xff] %v5590_v46  ;;  %7284 = vst [vmem:[#allocation23_spill] sm:$0xff] %v5606_v0  ;;  %4195 = vmatprep.subr.bf16.mxu0 %v5581_v52  ;;  %v591_v52 = vld [vmem:[%s7276_s30 + $0x58] sm:$0xff]  ;;  %v5646_v9 = vpack.c.bf16 %v623_v61, %v622_v18  ;;  %v625_v6 = vld [vmem:[%s7276_s30 + $0x168] sm:$0xff] }
 0x1f5   :  { %4222 = vmatpush1.bf16.msra.mxu1 %v5562_v21  ;;  %7285 = vst [vmem:[#allocation24_spill] sm:$0xff] %v5609_v57  ;;  %v588_v21 = vld [vmem:[%s7276_s30 + $0x40] sm:$0xff]  ;;  %7288 = vst [vmem:[#allocation27_spill] sm:$0xff] %v5637_v7 }
 0x1f6   :  { %4223 = vmatprep.subr.bf16.mxu1 %v7275_v63  ;;  %v5634_v36 = vpack.c.bf16 %v589_v30, %v588_v21  ;;  %7289 = vst [vmem:[#allocation28_spill] sm:$0xff] %v5646_v9  ;;  %v608_v30 = vld [vmem:[%s7276_s30 + $0xe0] sm:$0xff]  ;;  %v609_v21 = vld [vmem:[%s7276_s30 + $0xe8] sm:$0xff] }
 0x1f7   :  { %4197 = vmatpush3.bf16.msra.mxu0 %v5606_v0  ;;  %v5665_v61 = vpack.c.bf16 %v609_v21, %v608_v30  ;;  %v5674_v0 = vpack.c.bf16 %v625_v6, %v624_v48  ;;  %v626_v30 = vld [vmem:[%s7276_s30 + $0x170] sm:$0xff]  ;;  %v627_v21 = vld [vmem:[%s7276_s30 + $0x178] sm:$0xff] }
 0x1f8   :  { %7287 = vst [vmem:[#allocation26_spill] sm:$0xff] %v5634_v36  ;;  %4199 = vmatprep.subr.bf16.mxu0 %v5609_v57  ;;  %v593_v57 = vld [vmem:[%s7276_s30 + $0x68] sm:$0xff] }
 0x1f9   :  { %4225 = vmatpush1.bf16.msra.mxu1 %v5590_v46  ;;  %v590_v46 = vld [vmem:[%s7276_s30 + $0x50] sm:$0xff]  ;;  %7291 = vst [vmem:[#allocation30_spill] sm:$0xff] %v5665_v61  ;;  %7292 = vst [vmem:[#allocation31_spill] sm:$0xff] %v5674_v0 }
 0x1fa   :  { %4226 = vmatprep.subr.bf16.mxu1 %v7275_v63  ;;  %v5662_v18 = vpack.c.bf16 %v591_v52, %v590_v46  ;;  %v610_v46 = vld [vmem:[%s7276_s30 + $0xf0] sm:$0xff]  ;;  %v611_v52 = vld [vmem:[%s7276_s30 + $0xf8] sm:$0xff] }
 0x1fb   :  { %4201 = vmatpush3.bf16.msra.mxu0 %v5634_v36  ;;  %v5693_v6 = vpack.c.bf16 %v611_v52, %v610_v46  ;;  %v5702_v36 = vpack.c.bf16 %v627_v21, %v626_v30  ;;  %v514_v30 = vlaneseq }
 0x1fc   :  { %7290 = vst [vmem:[#allocation29_spill] sm:$0xff] %v5662_v18  ;;  %4203 = vmatprep.subr.bf16.mxu0 %v5637_v7  ;;  %v595_v7 = vld [vmem:[%s7276_s30 + $0x78] sm:$0xff] }
 0x1fd   :  { %4228 = vmatpush1.bf16.msra.mxu1 %v5618_v25  ;;  %v592_v25 = vld [vmem:[%s7276_s30 + $0x60] sm:$0xff]  ;;  %7294 = vst [vmem:[#allocation33_spill] sm:$0xff] %v5693_v6  ;;  %7295 = vst [vmem:[#allocation34_spill] sm:$0xff] %v5702_v36  ;;  %v5723_v21 = vshrl.u32 %v514_v30, 7 }
 0x1fe   :  { %4229 = vmatprep.subr.bf16.mxu1 %v7275_v63  ;;  %v5690_v48 = vpack.c.bf16 %v593_v57, %v592_v25  ;;  %v628_v25 = vld [vmem:[%s7276_s30 + $0x180] sm:$0xff]  ;;  %v629_v57 = vld [vmem:[%s7276_s30 + $0x188] sm:$0xff] }
 0x1ff   :  { %4205 = vmatpush3.bf16.msra.mxu0 %v5662_v18  ;;  %v5716_v52 = vpack.c.bf16 %v629_v57, %v628_v25  ;;  %7298 = vst [vmem:[#allocation37_spill] sm:$0xff] %v5723_v21  ;;  %v5732_v25 = vsub.s32 1, %v5723_v21  ;;  %v3637_v57 = vld [vmem:[%s7300_s1 + $0x1] ss:$2 sm:$0x3] }
 0x200   :  { %7293 = vst [vmem:[#allocation32_spill] sm:$0xff] %v5690_v48  ;;  %4207 = vmatprep.subr.bf16.mxu0 %v5665_v61  ;;  %v630_v61 = vld [vmem:[%s7276_s30 + $0x190] sm:$0xff] }
 0x201   :  { %4231 = vmatpush1.bf16.msra.mxu1 %v5646_v9  ;;  %v594_v9 = vld [vmem:[%s7276_s30 + $0x70] sm:$0xff]  ;;  %7297 = vst [vmem:[#allocation36_spill] sm:$0xff] %v5716_v52  ;;  %7301 = vst [vmem:[#allocation39_spill] sm:$0xff] %v5732_v25 }
 0x202   :  { %4232 = vmatprep.subr.bf16.mxu1 %v7275_v63  ;;  %v5712_v46 = vpack.c.bf16 %v595_v7, %v594_v9  ;;  %v5726_v9 = vsub.s32 0, %v5723_v21  ;;  %v512_v7 = vld [vmem:[%s7300_s1] ss:$2 sm:$0x3] }
 0x203   :  { %4209 = vmatpush3.bf16.msra.mxu0 %v5690_v48  ;;  %v5741_v30 = vrot.slane %v512_v7, %v5732_v25 }
 0x204   :  { %7296 = vst [vmem:[#allocation35_spill] sm:$0xff] %v5712_v46  ;;  %4211 = vmatprep.subr.bf16.mxu0 %v5693_v6  ;;  %7299 = vst [vmem:[#allocation38_spill] sm:$0xff] %v5726_v9 }
 0x205   :  { %4234 = vmatpush1.bf16.msra.mxu1 %v5674_v0  ;;  %7303 = vst [vmem:[#allocation41_spill] sm:$0xff] %v5741_v30 }
 0x206   :  { %4235 = vmatprep.subr.bf16.mxu1 %v7275_v63 }
 0x207   :  { %4213 = vmatpush3.bf16.msra.mxu0 %v5712_v46  ;;  %v5747_v46 = vrot.slane %v3637_v57, %v5732_v25 }
 0x208   :  { %4256 = vmatprep.subr.bf16.mxu0 %v7275_v63 }
 0x209   :  { %4237 = vmatpush1.bf16.msra.mxu1 %v5702_v36  ;;  %v5744_v36 = vrot.slane %v3637_v57, %v5726_v9  ;;  %7305 = vst [vmem:[#allocation43_spill] sm:$0xff] %v5747_v46 }
 0x20a   :  { %4238 = vmatprep.subr.bf16.mxu1 %v7275_v63 }
 0x20b   :  { %7304 = vst [vmem:[#allocation42_spill] sm:$0xff] %v5744_v36 }
 0x20d   :  { %4240 = vmatpush1.bf16.msra.mxu1 %v5716_v52  ;;  %v5738_v52 = vrot.slane %v512_v7, %v5726_v9  ;;  %v631_v7 = vld [vmem:[%s7276_s30 + $0x198] sm:$0xff] }
 0x20e   :  { %4241 = vmatprep.subr.bf16.mxu1 %v7275_v63  ;;  %v5758_v18 = vpack.c.bf16 %v631_v7, %v630_v61  ;;  %v633_v61 = vld [vmem:[%s7276_s30 + $0x1a8] sm:$0xff] }
 0x20f   :  { %7302 = vst [vmem:[#allocation40_spill] sm:$0xff] %v5738_v52  ;;  %v5772_v7 = vpack.c.bf16 %v633_v61, %v632_v12  ;;  %v635_v12 = vld [vmem:[%s7276_s30 + $0x1b8] sm:$0xff] }
 0x210   :  { %7306 = vst [vmem:[#allocation44_spill] sm:$0xff] %v5758_v18 }
 0x211   :  { %4243 = vmatpush1.bf16.msra.mxu1 %v5758_v18  ;;  %7307 = vst [vmem:[#allocation45_spill] sm:$0xff] %v5772_v7 }
 0x212   :  { %4244 = vmatprep.subr.bf16.mxu1 %v7275_v63 }
 0x215   :  { %4246 = vmatpush1.bf16.msra.mxu1 %v5772_v7 }
 0x216   :  { %4247 = vmatprep.subr.bf16.mxu1 %v7275_v63 }
 0x2ba   :  { %v501_v0 = vpop.f32.mrb[0].mxu1 }
 0x2bb   :  { %v524_v21 = vmul.f32 %v5738_v52, %v501_v0  ;;  %v503_v6 = vpop.f32.mrb[1].mxu1 }
 0x2bc   :  { %v525_v48 = vmul.f32 %v5741_v30, %v503_v6 }
 0x2bd   :  { %v541_v9 = vadd.f32 %v5744_v36, %v524_v21 }
 0x2be   :  { %v542_v57 = vadd.f32 %v5747_v46, %v525_v48  ;;  %v507_v25 = vpop.f32.mrb[2].mxu1 }
 0x2bf   :  { %v526_v0 = vmul.f32 %v5738_v52, %v507_v25  ;;  %v509_v13 = vpop.f32.mrb[3].mxu1  ;;  %v545_v21 = vmax.f32 %v541_v9, 0.0 }
 0x2c0   :  { %v527_v6 = vmul.f32 %v5741_v30, %v509_v13  ;;  %v546_v25 = vmax.f32 %v542_v57, 0.0  ;;  %v833_v30 = vrot.slane %v5433_v8, 3 }
 0x2c1   :  { %v543_v48 = vadd.f32 %v5744_v36, %v526_v0  ;;  %v553_v57 = vrot.slane %v545_v21, 1  ;;  %v834_v0 = vrot.slane %v5438_v14, 3  ;;  %v636_v36 = vld [vmem:[%s7276_s30 + $0x1c0] sm:$0xff] }
 0x2c2   :  { %v544_v18 = vadd.f32 %v5747_v46, %v527_v6  ;;  %v5785_v6 = vpack.c.bf16 %v635_v12, %v634_v19  ;;  %v637_v19 = vld [vmem:[%s7276_s30 + $0x1c8] sm:$0xff] }
 0x2c3   :  { %v547_v52 = vmax.f32 %v543_v48, 0.0  ;;  %v835_v12 = vsel %vm97_vm2, %v833_v30, %v834_v0  ;;  %v639_v30 = vld [vmem:[%s7276_s30 + $0x1d8] sm:$0xff] }
 0x2c4   :  { %v548_v13 = vmax.f32 %v544_v18, 0.0  ;;  %v556_v18 = vrot.slane %v546_v25, 1  ;;  %4249 = vmatpush1.bf16.msra.mxu1 %v5785_v6 }
 0x2c5   :  { %v554_v9 = vrot.slane %v547_v52, 1  ;;  %4250 = vmatprep.subr.bf16.mxu1 %v7275_v63 }
 0x2c6   :  { %v557_v61 = vrot.slane %v548_v13, 1  ;;  %v570_v7 = vrot.slane %v548_v13, 2  ;;  %v842_v13 = vrot.slane %v5433_v8, 4 }
 0x2c7   :  { %v555_v48 = vsel %vm77_vm1, %v553_v57, %v554_v9  ;;  %v843_v9 = vrot.slane %v5438_v14, 4  ;;  %v5802_v57 = vpack.c.bf16 %v637_v19, %v636_v36  ;;  %v566_v19 = vrot.slane %v545_v21, 2 }
 0x2c8   :  { %559 = vrot.lane.b32.xlu0 %v555_v48, %s4790_s4  ;;  %v558_v46 = vsel %vm77_vm1, %v556_v18, %v557_v61  ;;  %v569_v61 = vrot.slane %v546_v25, 2 }
 0x2c9   :  { %561 = vrot.lane.b32.xlu1 %v558_v46, %s4790_s4  ;;  %4252 = vmatpush1.bf16.msra.mxu1 %v5802_v57  ;;  %v638_v46 = vld [vmem:[%s7276_s30 + $0x1d0] sm:$0xff]  ;;  %v844_v36 = vsel %vm107_vm3, %v842_v13, %v843_v9 }
 0x2ca   :  { %v571_v18 = vsel %vm87_vm0, %v569_v61, %v570_v7  ;;  %4253 = vmatprep.subr.bf16.mxu1 %v7275_v63  ;;  %v5816_v48 = vpack.c.bf16 %v639_v30, %v638_v46  ;;  %v567_v7 = vrot.slane %v547_v52, 2  ;;  %v5825_v61 = vpop.permute.xlu1 %827 }
 0x2cc   :  { %836 = vrot.lane.b32.xlu0 %v835_v12, %s7308_s7  ;;  %v568_v12 = vsel %vm87_vm0, %v566_v19, %v567_v7 }
 0x2cd   :  { %574 = vrot.lane.b32.xlu1 %v571_v18, %s4788_s6  ;;  %4255 = vmatpush1.bf16.msra.mxu1 %v5816_v48 }
 0x2ce   :  { %4302 = vmatprep.subr.bf16.mxu1 %v5124_v1  ;;  %v5827_v13 = vpop.permute.xlu1 %818 }
 0x2d0   :  { %845 = vrot.lane.b32.xlu0 %v844_v36, %s4788_s6 }
 0x2d2   :  { %v5830_v30 = vpop.permute.xlu1 %829 }
 0x2d4   :  { %838 = vrot.lane.b32.xlu0 %v834_v0, %s7308_s7 }
 0x2d6   :  { %v5836_v0 = vpop.permute.xlu1 %820 }
 0x2d8   :  { %847 = vrot.lane.b32.xlu0 %v843_v9, %s4788_s6 }
 0x2dc   :  { %572 = vrot.lane.b32.xlu0 %v568_v12, %s4788_s6 }
 0x33a   :  { %v560_v18 = vpop.permute.xlu0 %559 }
 0x33b   :  { %v578_v46 = vsel %vm353_vm9, %v546_v25, %v560_v18 }
 0x33c   :  { %706 = vmatprep.mubr.f32.mxu0 %v578_v46 }
 0x33d   :  { %707 = vmatmul.mubr.f32.vlgmr.msra.gmra.mrb[4].mxu0 %v545_v21  ;;  %v562_v21 = vpop.permute.xlu1 %561 }
 0x33e   :  { %4258 = vmatpush1.bf16.msra.mxu0 %v4956_v17  ;;  %v837_v1 = vpop.permute.xlu0 %836 }
 0x33f   :  { %4259 = vmatprep.subr.bf16.mxu0 %v7275_v63  ;;  %v855_v52 = vsel %vm123_vm5, %v5825_v61, %v837_v1 }
 0x341   :  { %v575_v7 = vpop.permute.xlu1 %574 }
 0x342   :  { %4261 = vmatpush1.bf16.msra.mxu0 %v4963_v20  ;;  %v846_v9 = vpop.permute.xlu0 %845  ;;  %v563_v20 = vsel %vm353_vm9, %v560_v18, %v562_v21 }
 0x343   :  { %v857_v36 = vsel %vm126_vm6, %v855_v52, %v846_v9  ;;  %4262 = vmatprep.subr.bf16.mxu0 %v7275_v63 }
 0x344   :  { %3643 = vmatprep.mubr.msk.f32.mxu0 %vm159_vm7, %v857_v36 }
 0x346   :  { %4264 = vmatpush1.bf16.msra.mxu0 %v4975_v23  ;;  %v839_v17 = vpop.permute.xlu0 %838 }
 0x347   :  { %4265 = vmatprep.subr.bf16.mxu0 %v7275_v63  ;;  %v856_v23 = vsel %vm123_vm5, %v5830_v30, %v839_v17 }
 0x34a   :  { %4267 = vmatpush1.bf16.msra.mxu0 %v4987_v26  ;;  %v848_v25 = vpop.permute.xlu0 %847  ;;  %v851_v26 = vsel %vm117_vm4, %v5433_v8, %v5827_v13 }
 0x34b   :  { %4268 = vmatprep.subr.bf16.mxu0 %v7275_v63 }
 0x34e   :  { %4270 = vmatpush1.bf16.msra.mxu0 %v4999_v29  ;;  %v573_v19 = vpop.permute.xlu0 %572  ;;  %v858_v29 = vsel %vm126_vm6, %v856_v23, %v848_v25  ;;  %v7331_v25 = vld [vmem:[#allocation13_spill] sm:$0xff]  ;;  %v7333_v23 = vld [vmem:[#allocation15_spill] sm:$0xff] }
 0x34f   :  { %v576_v12 = vsel %vm126_vm6, %v573_v19, %v575_v7  ;;  %v579_v46 = vsel %vm126_vm6, %v563_v20, %v573_v19  ;;  %4271 = vmatprep.subr.bf16.mxu0 %v7275_v63 }
 0x350   :  { %3638 = vmatprep.mubr.msk.f32.mxu1 %vm120_vm8, %v576_v12  ;;  %v7332_v12 = vld [vmem:[#allocation14_spill] sm:$0xff] }
 0x351   :  { %777 = vmatmul.mubr.f32.vlgmr.msra.gmra.mrb[4].mxu1 %v579_v46 }
 0x352   :  { %4273 = vmatpush1.bf16.msra.mxu0 %v5009_v32  ;;  %4304 = vmatpush1.bf16.msra.mxu1 %v5135_v22  ;;  %v853_v32 = vsel %vm120_vm8, %v851_v26, %v5825_v61  ;;  %v7316_v22 = vld [vmem:[#allocation23_spill] sm:$0xff]  ;;  %v7334_v26 = vmov 0.0  }
 0x353   :  { %4274 = vmatprep.subr.bf16.mxu0 %v7275_v63  ;;  %4306 = vmatprep.subr.bf16.mxu1 %v5137_v24  ;;  %v7317_v24 = vld [vmem:[#allocation24_spill] sm:$0xff] }
 0x356   :  { %4276 = vmatpush1.bf16.msra.mxu0 %v5019_v35  ;;  %4308 = vmatpush1.bf16.msra.mxu1 %v5153_v31  ;;  %v852_v35 = vsel %vm117_vm4, %v5438_v14, %v5836_v0  ;;  %v7318_v31 = vld [vmem:[#allocation7_spill] sm:$0xff] }
 0x357   :  { %4277 = vmatprep.subr.bf16.mxu0 %v7275_v63  ;;  %4310 = vmatprep.subr.bf16.mxu1 %v5156_v33  ;;  %v7319_v33 = vld [vmem:[#allocation8_spill] sm:$0xff] }
 0x35a   :  { %4279 = vmatpush1.bf16.msra.mxu0 %v5029_v38  ;;  %4312 = vmatpush1.bf16.msra.mxu1 %v5171_v40  ;;  %v854_v38 = vsel %vm120_vm8, %v852_v35, %v5830_v30  ;;  %v7320_v40 = vld [vmem:[#allocation26_spill] sm:$0xff] }
 0x35b   :  { %4280 = vmatprep.subr.bf16.mxu0 %v7275_v63  ;;  %4314 = vmatprep.subr.bf16.mxu1 %v5174_v42  ;;  %v7321_v42 = vld [vmem:[#allocation27_spill] sm:$0xff] }
 0x35e   :  { %4282 = vmatpush1.bf16.msra.mxu0 %v5039_v41  ;;  %4316 = vmatpush1.bf16.msra.mxu1 %v5189_v49  ;;  %v7309_v41 = vld [vmem:[#allocation18_spill] sm:$0xff]  ;;  %v7322_v49 = vld [vmem:[#allocation9_spill] sm:$0xff] }
 0x35f   :  { %4283 = vmatprep.subr.bf16.mxu0 %v7275_v63  ;;  %4318 = vmatprep.subr.bf16.mxu1 %v5192_v51  ;;  %v7323_v51 = vld [vmem:[#allocation12_spill] sm:$0xff] }
 0x362   :  { %4285 = vmatpush1.bf16.msra.mxu0 %v5049_v44  ;;  %4320 = vmatpush1.bf16.msra.mxu1 %v5207_v58  ;;  %v7310_v44 = vld [vmem:[#allocation3_spill] sm:$0xff]  ;;  %v7324_v58 = vld [vmem:[#allocation29_spill] sm:$0xff] }
 0x363   :  { %4286 = vmatprep.subr.bf16.mxu0 %v7275_v63  ;;  %4322 = vmatprep.subr.bf16.mxu1 %v5210_v60  ;;  %v7325_v60 = vld [vmem:[#allocation30_spill] sm:$0xff] }
 0x366   :  { %4288 = vmatpush1.bf16.msra.mxu0 %v5059_v47  ;;  %4324 = vmatpush1.bf16.msra.mxu1 %v5225_v3  ;;  %v7311_v47 = vld [vmem:[#allocation4_spill] sm:$0xff] }
 0x367   :  { %4289 = vmatprep.subr.bf16.mxu0 %v7275_v63  ;;  %4326 = vmatprep.subr.bf16.mxu1 %v5228_v4  ;;  %v7326_v3 = vld [vmem:[#allocation32_spill] sm:$0xff]  ;;  %v7327_v4 = vld [vmem:[#allocation33_spill] sm:$0xff] }
 0x36a   :  { %4291 = vmatpush1.bf16.msra.mxu0 %v5069_v50  ;;  %4328 = vmatpush1.bf16.msra.mxu1 %v5243_v10  ;;  %v7312_v50 = vld [vmem:[#allocation20_spill] sm:$0xff]  ;;  %v7328_v10 = vld [vmem:[#allocation35_spill] sm:$0xff] }
 0x36b   :  { %4292 = vmatprep.subr.bf16.mxu0 %v7275_v63  ;;  %4330 = vmatprep.subr.bf16.mxu1 %v5246_v11 }
 0x36e   :  { %4294 = vmatpush1.bf16.msra.mxu0 %v5079_v53  ;;  %4332 = vmatpush1.bf16.msra.mxu1 %v5261_v15  ;;  %v7313_v53 = vld [vmem:[#allocation21_spill] sm:$0xff] }
 0x36f   :  { %4295 = vmatprep.subr.bf16.mxu0 %v7275_v63  ;;  %4334 = vmatprep.subr.bf16.mxu1 %v5264_v16 }
 0x372   :  { %4297 = vmatpush1.bf16.msra.mxu0 %v5089_v56  ;;  %4336 = vmatpush1.bf16.msra.mxu1 %v5279_v27  ;;  %v7314_v56 = vld [vmem:[#allocation5_spill] sm:$0xff] }
 0x373   :  { %4298 = vmatprep.subr.bf16.mxu0 %v7275_v63  ;;  %4338 = vmatprep.subr.bf16.mxu1 %v5282_v28 }
 0x376   :  { %4300 = vmatpush1.bf16.msra.mxu0 %v5099_v59  ;;  %4340 = vmatpush1.bf16.msra.mxu1 %v5297_v39  ;;  %v7315_v59 = vld [vmem:[#allocation6_spill] sm:$0xff] }
 0x377   :  { %4342 = vmatprep.subr.bf16.mxu1 %v5300_v43  ;;  %4374 = vmatprep.subr.bf16.mxu0 %v5508_v45 }
 0x379   :  { %930 = vmatmul.mubr.f32.vlgmr.msra.gmra.mrb[6].mxu0 %v853_v32  ;;  %v7335_v32 = vld [vmem:[#allocation40_spill] sm:$0xff] }
 0x37a   :  { %3644 = vmatprep.mubr.msk.f32.mxu0 %vm159_vm7, %v858_v29  ;;  %4344 = vmatpush1.bf16.msra.mxu1 %v5315_v54  ;;  %v7329_v54 = vld [vmem:[#allocation10_spill] sm:$0xff] }
 0x37b   :  { %4346 = vmatprep.subr.bf16.mxu1 %v5318_v55  ;;  %4376 = vmatpush3.bf16.msra.mxu0 %v5510_v62 }
 0x37c   :  { %4378 = vmatprep.subr.bf16.mxu0 %v5535_v37 }
 0x37d   :  { %935 = vmatmul.mubr.f32.gmra.mrb[8].mxu0 %v854_v38 }
 0x37e   :  { %4348 = vmatpush1.bf16.msra.mxu1 %v5333_v2 }
 0x37f   :  { %4350 = vmatprep.subr.bf16.mxu1 %v5336_v5  ;;  %4380 = vmatpush3.bf16.msra.mxu0 %v5547_v34  ;;  %v7330_v5 = vld [vmem:[#allocation11_spill] sm:$0xff] }
 0x380   :  { %4382 = vmatprep.subr.bf16.mxu0 %v7309_v41  ;;  %v7336_v41 = vld [vmem:[#allocation41_spill] sm:$0xff] }
 0x382   :  { %4352 = vmatpush1.bf16.msra.mxu1 %v7310_v44 }
 0x383   :  { %4354 = vmatprep.subr.bf16.mxu1 %v7311_v47  ;;  %4384 = vmatpush3.bf16.msra.mxu0 %v7312_v50  ;;  %v7337_v47 = vld [vmem:[#allocation42_spill] sm:$0xff] }
 0x384   :  { %4386 = vmatprep.subr.bf16.mxu0 %v7313_v53  ;;  %v7338_v53 = vld [vmem:[#allocation43_spill] sm:$0xff] }
 0x386   :  { %4356 = vmatpush1.bf16.msra.mxu1 %v7314_v56 }
 0x387   :  { %4358 = vmatprep.subr.bf16.mxu1 %v7315_v59  ;;  %4388 = vmatpush3.bf16.msra.mxu0 %v7316_v22 }
 0x388   :  { %4390 = vmatprep.subr.bf16.mxu0 %v7317_v24 }
 0x38a   :  { %4360 = vmatpush1.bf16.msra.mxu1 %v7318_v31 }
 0x38b   :  { %4362 = vmatprep.subr.bf16.mxu1 %v7319_v33  ;;  %4392 = vmatpush3.bf16.msra.mxu0 %v7320_v40 }
 0x38c   :  { %4394 = vmatprep.subr.bf16.mxu0 %v7321_v42 }
 0x38e   :  { %4364 = vmatpush1.bf16.msra.mxu1 %v7322_v49 }
 0x38f   :  { %4366 = vmatprep.subr.bf16.mxu1 %v7323_v51  ;;  %4396 = vmatpush3.bf16.msra.mxu0 %v7324_v58 }
 0x390   :  { %4398 = vmatprep.subr.bf16.mxu0 %v7325_v60 }
 0x393   :  { %4400 = vmatpush3.bf16.msra.mxu0 %v7326_v3 }
 0x394   :  { %4402 = vmatprep.subr.bf16.mxu0 %v7327_v4 }
 0x397   :  { %4404 = vmatpush3.bf16.msra.mxu0 %v7328_v10 }
 0x398   :  { %4405 = vmatprep.subr.bf16.mxu0 %v7275_v63 }
 0x410   :  { %v3704_v11 = vpop.f32.mrb[4].mxu0 }
 0x411   :  { %v3705_v15 = vpop.f32.mrb[5].mxu0 }
 0x412   :  { %v3706_v16 = vadd.f32 %v3705_v15, %v3704_v11 }
 0x424   :  { %v778_v27 = vpop.f32.mrb[4].mxu1 }
 0x425   :  { %v5934_v28 = vadd.f32 %v3706_v16, %v778_v27  ;;  %v780_v39 = vpop.f32.mrb[5].mxu1 }
 0x44c   :  { %v931_v43 = vpop.f32.mrb[6].mxu0 }
 0x44d   :  { %v940_v55 = vmul.f32 %v7329_v54, %v931_v43  ;;  %v933_v2 = vpop.f32.mrb[7].mxu0 }
 0x44e   :  { %v4791_v2 = vmov 4  }
 0x44f   :  { %v942_v8 = vadd.f32 %v7330_v5, %v940_v55  ;;  %4721 = vset.pattern.permute.xlu1 %v4791_v2 }
 0x450   :  { %v936_v14 = vpop.f32.mrb[8].mxu0 }
 0x451   :  { %v941_v34 = vmul.f32 %v7329_v54, %v936_v14  ;;  %v938_v45 = vpop.f32.mrb[9].mxu0  ;;  %v944_v62 = vmax.f32 %v942_v8, 0.0  ;;  %v4792_v8 = vmov 0   ;;  %v4793_v14 = vmov 1  }
 0x452   :  { %4720 = vset.pattern.permute.xlu0 %v4792_v8  ;;  %v4795_v45 = vmov 8  }
 0x453   :  { %v943_v37 = vadd.f32 %v7330_v5, %v941_v34  ;;  %v957_v13 = vrot.slane %v944_v62, 2  ;;  %v948_v30 = vrot.slane %v944_v62, 1  ;;  %v1764_v5 = vld [vmem:[%s7339_s23] sm:$0x3]  ;;  %v4794_v34 = vmov 5  }
 0x455   :  { %v945_v61 = vmax.f32 %v943_v37, 0.0  ;;  %v4797_v37 = vmov 9  }
 0x457   :  { %v958_v18 = vrot.slane %v945_v61, 2  ;;  %v949_v1 = vrot.slane %v945_v61, 1 }
 0x459   :  { %v959_v52 = vsel %vm87_vm0, %v957_v13, %v958_v18  ;;  %v950_v0 = vsel %vm77_vm1, %v948_v30, %v949_v1  ;;  %v4799_v13 = vmov 6   ;;  %v4801_v30 = vmov 12  }
 0x45a   :  { %960 = vrot.lane.b32.xlu1 %v959_v52, %s4788_s6  ;;  %951 = vrot.lane.b32.xlu0 %v950_v0, %s4785_s27  ;;  %v4803_v52 = vmov 10   ;;  %v4804_v0 = vmov 3  }
 0x45e   :  { %962 = vrot.lane.b32.xlu1 %v958_v18, %s4788_s6  ;;  %953 = vrot.lane.b32.xlu0 %v949_v1, %s4785_s27  ;;  %v4800_v18 = vmov 7   ;;  %v4802_v1 = vmov 15  }
 0x4cc   :  { %v961_v9 = vpop.permute.xlu1 %960  ;;  %v952_v36 = vpop.permute.xlu0 %951 }
 0x4cd   :  { %v966_v17 = vsel %vm120_vm8, %v944_v62, %v952_v36  ;;  %v968_v21 = vsel %vm126_vm6, %v952_v36, %v961_v9  ;;  %v4796_v62 = vmov 2   ;;  %v4806_v36 = vmov 11  }
 0x4ce   :  { %1038 = vmatprep.mubr.f32.mxu1 %v968_v21 }
 0x4cf   :  { %1039 = vmatmul.mubr.f32.vlgmr.msra.gmra.mrb[6].mxu1 %v966_v17 }
 0x4d0   :  { %4368 = vmatpush1.bf16.msra.mxu1 %v7331_v25  ;;  %v963_v20 = vpop.permute.xlu1 %962  ;;  %v954_v7 = vpop.permute.xlu0 %953 }
 0x4d1   :  { %v969_v19 = vsel %vm126_vm6, %v954_v7, %v963_v20  ;;  %4370 = vmatprep.subr.bf16.mxu1 %v7332_v12  ;;  %v967_v46 = vsel %vm120_vm8, %v945_v61, %v954_v7  ;;  %v4798_v61 = vmov 13  }
 0x4d2   :  { %1044 = vmatprep.mubr.f32.mxu1 %v969_v19 }
 0x4d3   :  { %1045 = vmatmul.mubr.f32.gmra.mrb[8].mxu1 %v967_v46  ;;  %v7341_v46 = vld [vmem:[#allocation17_spill] sm:$0xff] }
 0x4d4   :  { %4372 = vmatpush1.bf16.msra.mxu1 %v7333_v23  ;;  %1115 = vmatprep.mubr.f32.mxu1 %v7334_v26  ;;  %v7342_v23 = vld [vmem:[#allocation19_spill] sm:$0xff] }
 0x4d7   :  { %3645 = vmatmul.mubr.msk.f32.vlgmr.msra.gmra.mrb[6].mxu1 %vm353_vm9, %v961_v9  ;;  %v4805_v9 = vmov 14  }
 0x4d8   :  { %1121 = vmatprep.mubr.f32.mxu1 %v7334_v26 }
 0x4db   :  { %3646 = vmatmul.mubr.msk.f32.gmra.mrb[8].mxu1 %vm353_vm9, %v963_v20  ;;  %v7340_v20 = vld [vmem:[#allocation16_spill] sm:$0xff] }
 0x5aa   :  { %v1117_v29 = vpop.f32.mrb[6].mxu1 }
 0x5ab   :  { %v1128_v35 = vmul.f32 %v1117_v29, %v7335_v32  ;;  %v1119_v38 = vpop.f32.mrb[7].mxu1  ;;  %v7343_v29 = vld [vmem:[#allocation22_spill] sm:$0xff] }
 0x5ac   :  { %v1129_v44 = vmul.f32 %v1119_v38, %v7336_v41  ;;  %v7346_v38 = vld [vmem:[#allocation31_spill] sm:$0xff] }
 0x5ad   :  { %v1132_v50 = vadd.f32 %v1128_v35, %v7337_v47  ;;  %v7345_v35 = vld [vmem:[#allocation28_spill] sm:$0xff] }
 0x5ae   :  { %v1133_v56 = vadd.f32 %v1129_v44, %v7338_v53  ;;  %v1123_v59 = vpop.f32.mrb[8].mxu1  ;;  %v7348_v44 = vld [vmem:[#allocation36_spill] sm:$0xff] }
 0x5af   :  { %v1130_v22 = vmul.f32 %v1123_v59, %v7335_v32  ;;  %v1125_v24 = vpop.f32.mrb[9].mxu1  ;;  %v5963_v33 = vmax.f32 %v1132_v50, 0.0  ;;  %v7344_v32 = vld [vmem:[#allocation25_spill] sm:$0xff] }
 0x5b0   :  { %v1131_v31 = vmul.f32 %v1125_v24, %v7336_v41  ;;  %v5966_v42 = vmax.f32 %v1133_v56, 0.0  ;;  %v7347_v41 = vld [vmem:[#allocation34_spill] sm:$0xff]  ;;  %v7350_v50 = vld [vmem:[#allocation45_spill] sm:$0xff] }
 0x5b1   :  { %v1134_v40 = vadd.f32 %v1130_v22, %v7337_v47  ;;  %v1144_v3 = vrot.slane %v5963_v33, 1  ;;  %v1157_v39 = vrot.slane %v5963_v33, 2  ;;  %v7349_v47 = vld [vmem:[#allocation44_spill] sm:$0xff]  ;;  %v7351_v59 = vld [vmem:[#allocation37_spill] sm:$0xff] }
 0x5b2   :  { %v1135_v49 = vadd.f32 %v1131_v31, %v7338_v53  ;;  %v1147_v10 = vrot.slane %v5966_v42, 1  ;;  %v1160_v43 = vrot.slane %v5966_v42, 2  ;;  %v6019_v22 = vsub.s32 5, %v7351_v59  ;;  %v7352_v31 = vld [vmem:[#allocation39_spill] sm:$0xff] }
 0x5b3   :  { %v1138_v51 = vmax.f32 %v1134_v40, 0.0  ;;  %v7353_v40 = vld [vmem:[#allocation38_spill] sm:$0xff] }
 0x5b4   :  { %v1139_v58 = vmax.f32 %v1135_v49, 0.0 }
 0x5b5   :  { %v1145_v60 = vrot.slane %v1138_v51, 1  ;;  %v1158_v11 = vrot.slane %v1138_v51, 2 }
 0x5b6   :  { %v1148_v4 = vrot.slane %v1139_v58, 1  ;;  %v1161_v16 = vrot.slane %v1139_v58, 2  ;;  %v6038_v58 = vsub.s32 2, %v7351_v59 }
 0x5b7   :  { %v1146_v15 = vsel %vm77_vm1, %v1144_v3, %v1145_v60  ;;  %v1159_v54 = vsel %vm87_vm0, %v1157_v39, %v1158_v11 }
 0x5b8   :  { %1150 = vrot.lane.b32.xlu0 %v1146_v15, %s4790_s4  ;;  %v1149_v27 = vsel %vm77_vm1, %v1147_v10, %v1148_v4  ;;  %v1162_v55 = vsel %vm87_vm0, %v1160_v43, %v1161_v16  ;;  %v6053_v15 = vsub.s32 6, %v7351_v59 }
 0x5b9   :  { %1152 = vrot.lane.b32.xlu1 %v1149_v27, %s4790_s4 }
 0x5bc   :  { %1163 = vrot.lane.b32.xlu0 %v1159_v54, %s4788_s6 }
 0x5bd   :  { %1165 = vrot.lane.b32.xlu1 %v1162_v55, %s4788_s6 }
 0x5c0   :  { %1771 = vperm.xlu0 %4720, %v1764_v5  }
 0x5c1   :  { %1817 = vperm.xlu1 %4721, %v1764_v5  }
 0x5c4   :  { %4723 = vset.pattern.permute.xlu0 %v4794_v34 }
 0x5c5   :  { %4722 = vset.pattern.permute.xlu1 %v4793_v14  ;;  %2068 = vperm.xlu0 %4723, %v1764_v5  }
 0x5c6   :  { %2060 = vperm.xlu1 %4722, %v1764_v5  }
 0x5c9   :  { %4726 = vset.pattern.permute.xlu0 %v4796_v62 }
 0x5ca   :  { %4724 = vset.pattern.permute.xlu1 %v4795_v45  ;;  %2160 = vperm.xlu0 %4726, %v1764_v5  }
 0x5cb   :  { %1865 = vperm.xlu1 %4724, %v1764_v5  }
 0x5ce   :  { %4729 = vset.pattern.permute.xlu0 %v4798_v61 }
 0x5cf   :  { %4725 = vset.pattern.permute.xlu1 %v4797_v37  ;;  %2092 = vperm.xlu0 %4729, %v1764_v5   ;;  %v6078_v37 = vsub.s32 3, %v7351_v59 }
 0x5d0   :  { %2080 = vperm.xlu1 %4725, %v1764_v5  }
 0x5d3   :  { %4732 = vset.pattern.permute.xlu0 %v4800_v18  ;;  %v6083_v18 = vsub.s32 7, %v7351_v59 }
 0x5d4   :  { %4727 = vset.pattern.permute.xlu1 %v4799_v13  ;;  %2268 = vperm.xlu0 %4732, %v1764_v5  }
 0x5d5   :  { %2168 = vperm.xlu1 %4727, %v1764_v5  }
 0x5d8   :  { %4735 = vset.pattern.permute.xlu0 %v4802_v1 }
 0x5d9   :  { %4728 = vset.pattern.permute.xlu1 %v4801_v30  ;;  %2292 = vperm.xlu0 %4735, %v1764_v5  }
 0x5da   :  { %1913 = vperm.xlu1 %4728, %v1764_v5  }
 0x5de   :  { %4730 = vset.pattern.permute.xlu1 %v4803_v52 }
 0x5df   :  { %2180 = vperm.xlu1 %4730, %v1764_v5  }
 0x5e3   :  { %4731 = vset.pattern.permute.xlu1 %v4804_v0 }
 0x5e4   :  { %2260 = vperm.xlu1 %4731, %v1764_v5  }
 0x5e8   :  { %4733 = vset.pattern.permute.xlu1 %v4805_v9 }
 0x5e9   :  { %2192 = vperm.xlu1 %4733, %v1764_v5  }
 0x5ed   :  { %4734 = vset.pattern.permute.xlu1 %v4806_v36  ;;  %v6095_v36 = vld [vmem:[%s7171_s12] ss:$2 sm:$0xf] }
 0x5ee   :  { %2280 = vperm.xlu1 %4734, %v1764_v5  }
 0x62a   :  { %v1151_v17 = vpop.permute.xlu0 %1150 }
 0x62b   :  { %v1153_v21 = vpop.permute.xlu1 %1152  ;;  %v1169_v25 = vsel %vm353_vm9, %v5966_v42, %v1151_v17 }
 0x62c   :  { %1237 = vmatprep.mubr.f32.mxu0 %v1169_v25  ;;  %v1154_v53 = vsel %vm353_vm9, %v1151_v17, %v1153_v21  ;;  %v6103_v21 = vld [vmem:[%s7171_s12 + $0x1] ss:$2 sm:$0xf] }
 0x62d   :  { %1238 = vmatmul.mubr.f32.vlgmr.msra.gmra.mrb[10].mxu0 %v5963_v33 }
 0x62e   :  { %4407 = vmatpush1.bf16.msra.mxu0 %v7340_v20  ;;  %v1164_v7 = vpop.permute.xlu0 %1163  ;;  %v6110_v20 = vld [vmem:[%s7172_s13 + $0x8] sm:$0xff] }
 0x62f   :  { %v1166_v19 = vpop.permute.xlu1 %1165  ;;  %4408 = vmatprep.subr.bf16.mxu0 %v7275_v63  ;;  %v1170_v56 = vsel %vm126_vm6, %v1154_v53, %v1164_v7 }
 0x630   :  { %v1167_v12 = vsel %vm126_vm6, %v1164_v7, %v1166_v19  ;;  %v6114_v7 = vrot.slane %v6095_v36, %v6038_v58 }
 0x631   :  { %3647 = vmatprep.mubr.msk.f32.mxu0 %vm120_vm8, %v1167_v12 }
 0x632   :  { %4410 = vmatpush1.bf16.msra.mxu0 %v7341_v46  ;;  %v6122_v46 = vrot.slane %v6095_v36, %v6078_v37 }
 0x633   :  { %4411 = vmatprep.subr.bf16.mxu0 %v7275_v63 }
 0x636   :  { %4413 = vmatpush1.bf16.msra.mxu0 %v7342_v23 }
 0x637   :  { %4414 = vmatprep.subr.bf16.mxu0 %v7275_v63 }
 0x63a   :  { %4416 = vmatpush1.bf16.msra.mxu0 %v7343_v29 }
 0x63b   :  { %4417 = vmatprep.subr.bf16.mxu0 %v7275_v63 }
 0x63e   :  { %4419 = vmatpush1.bf16.msra.mxu0 %v7344_v32  ;;  %v6130_v32 = vrot.slane %v6103_v21, %v6038_v58 }
 0x63f   :  { %4420 = vmatprep.subr.bf16.mxu0 %v7275_v63  ;;  %v6058_v39 = vpop.permute.xlu0 %1771 }
 0x640   :  { %v6021_v24 = vpop.permute.xlu1 %1817 }
 0x642   :  { %4422 = vmatpush1.bf16.msra.mxu0 %v7345_v35 }
 0x643   :  { %4423 = vmatprep.subr.bf16.mxu0 %v7275_v63 }
 0x645   :  { %v6035_v51 = vpop.permute.xlu1 %2060 }
 0x646   :  { %4425 = vmatpush1.bf16.msra.mxu0 %v7346_v38  ;;  %v6132_v38 = vpop.permute.xlu0 %2068 }
 0x647   :  { %4426 = vmatprep.subr.bf16.mxu0 %v7275_v63 }
 0x64a   :  { %4428 = vmatpush1.bf16.msra.mxu0 %v7347_v41  ;;  %v6056_v27 = vpop.permute.xlu1 %1865  ;;  %v6136_v41 = vrot.slane %v6103_v21, %v6078_v37 }
 0x64b   :  { %4429 = vmatprep.subr.bf16.mxu0 %v7275_v63 }
 0x64e   :  { %4431 = vmatpush1.bf16.msra.mxu0 %v7348_v44 }
 0x64f   :  { %4432 = vmatprep.subr.bf16.mxu0 %v7275_v63  ;;  %v6075_v45 = vpop.permute.xlu1 %2080 }
 0x652   :  { %4434 = vmatpush1.bf16.msra.mxu0 %v7349_v47 }
 0x653   :  { %4435 = vmatprep.subr.bf16.mxu0 %v7275_v63 }
 0x654   :  { %v6085_v30 = vpop.permute.xlu1 %2168 }
 0x656   :  { %4437 = vmatpush1.bf16.msra.mxu0 %v7350_v50 }
 0x657   :  { %4438 = vmatprep.subr.bf16.mxu0 %v7275_v63 }
 0x659   :  { %v6105_v25 = vpop.permute.xlu1 %1913 }
 0x65a   :  { %4440 = vmatpush1.bf16.msra.mxu0 %v5785_v6  ;;  %v1766_v6 = vld [vmem:[%s7170_s11 + $0x8] sm:$0xff] }
 0x65b   :  { %4441 = vmatprep.subr.bf16.mxu0 %v7275_v63  ;;  %v1835_v33 = vrot.slane %v1766_v6, %v6019_v22  ;;  %v1787_v42 = vrot.slane %v1766_v6, %v7353_v40  ;;  %v1879_v16 = vrot.slane %v1766_v6, %v6038_v58  ;;  %v1883_v55 = vrot.slane %v1766_v6, %v6053_v15 }
 0x65c   :  { %v1927_v52 = vrot.slane %v1766_v6, %v6078_v37  ;;  %v1931_v0 = vrot.slane %v1766_v6, %v6083_v18 }
 0x65d   :  { %v6041_v60 = vrot.slane %v1835_v33, %v7352_v31  ;;  %v6045_v4 = vrot.slane %v1787_v42, %v7353_v40  ;;  %v6066_v2 = vrot.slane %v1879_v16, %v6038_v58  ;;  %v6071_v14 = vrot.slane %v1883_v55, %v6038_v58 }
 0x65e   :  { %4443 = vmatpush1.bf16.msra.mxu0 %v5802_v57  ;;  %v1831_v57 = vrot.slane %v1766_v6, %v7352_v31  ;;  %v6090_v9 = vrot.slane %v1927_v52, %v6078_v37  ;;  %v6098_v17 = vrot.slane %v1931_v0, %v6078_v37 }
 0x65f   :  { %4444 = vmatprep.subr.bf16.mxu0 %v7275_v63  ;;  %v1859_v43 = vmul.f32 %v6041_v60, %v6021_v24  ;;  %v1814_v54 = vmul.f32 %v6045_v4, %v6058_v39  ;;  %v1906_v34 = vmul.f32 %v6066_v2, %v6056_v27  ;;  %v1907_v61 = vmul.f32 %v6071_v14, %v6056_v27 }
 0x660   :  { %v6033_v49 = vrot.slane %v1831_v57, %v7352_v31  ;;  %v1954_v19 = vmul.f32 %v6090_v9, %v6105_v25  ;;  %v2065_v12 = vmul.f32 %v6035_v51, %v6045_v4  ;;  %v1955_v23 = vmul.f32 %v6098_v17, %v6105_v25 }
 0x661   :  { %v2174_v16 = vmul.f32 %v6085_v30, %v6041_v60 }
 0x662   :  { %4446 = vmatpush1.bf16.msra.mxu0 %v5816_v48  ;;  %v6029_v48 = vsub.s32 4, %v7351_v59  ;;  %v1858_v10 = vmul.f32 %v6033_v49, %v6021_v24  ;;  %v2073_v50 = vmul.f32 %v6132_v38, %v6033_v49  ;;  %v2173_v42 = vmul.f32 %v6085_v30, %v6033_v49 }
 0x664   :  { %v1791_v3 = vrot.slane %v1766_v6, %v6029_v48  ;;  %v1862_v8 = vadd.f32 %v1858_v10, %v1814_v54  ;;  %v2034_v44 = vrot.slane %v6110_v20, %v6029_v48  ;;  %v2077_v6 = vadd.f32 %v2073_v50, %v2065_v12 }
 0x665   :  { %1308 = vmatmul.mubr.f32.vlgmr.msra.gmra.mrb[12].mxu0 %v1170_v56  ;;  %v2074_v56 = vmul.f32 %v6132_v38, %v6041_v60 }
 0x666   :  { %v6050_v11 = vrot.slane %v1791_v3, %v7353_v40  ;;  %v1910_v13 = vadd.f32 %v1906_v34, %v1862_v8  ;;  %v2054_v3 = vrot.slane %v2034_v44, %v7353_v40  ;;  %v6161_v8 = vpop.permute.xlu1 %2180 }
 0x667   :  { %v2185_v52 = vmul.f32 %v6161_v8, %v6066_v2  ;;  %v2186_v0 = vmul.f32 %v6161_v8, %v6071_v14 }
 0x668   :  { %v1815_v5 = vmul.f32 %v6050_v11, %v6058_v39  ;;  %v2066_v29 = vmul.f32 %v6035_v51, %v6050_v11  ;;  %v1958_v35 = vadd.f32 %v1954_v19, %v1910_v13 }
 0x66a   :  { %v1863_v62 = vadd.f32 %v1859_v43, %v1815_v5  ;;  %v1984_v53 = vmul.f32 %v6114_v7, %v1958_v35  ;;  %v2078_v33 = vadd.f32 %v2074_v56, %v2066_v29  ;;  %v6155_v43 = vpop.permute.xlu0 %2160  ;;  %v2085_v5 = vmul.f32 %v6075_v45, %v6066_v2  ;;  %v6175_v29 = vpop.permute.xlu1 %2260 }
 0x66b   :  { %v2165_v55 = vmul.f32 %v6155_v43, %v6045_v4  ;;  %v2166_v34 = vmul.f32 %v6155_v43, %v6050_v11  ;;  %v2130_v56 = vrot.slane %v6110_v20, %v6019_v22 }
 0x66c   :  { %v1911_v1 = vadd.f32 %v1907_v61, %v1863_v62  ;;  %v6147_v57 = vadd.f32 %v6130_v32, %v1984_v53  ;;  %v2086_v62 = vmul.f32 %v6075_v45, %v6071_v14  ;;  %v2089_v19 = vadd.f32 %v2085_v5, %v2077_v6  ;;  %v1364_v5 = vld [vmem:[%s7173_s9 + $0x80] sm:$0xff] }
 0x66d   :  { %v2177_v13 = vadd.f32 %v2173_v42, %v2165_v55 }
 0x66e   :  { %v1959_v47 = vadd.f32 %v1955_v23, %v1911_v1  ;;  %v2178_v1 = vadd.f32 %v2174_v16, %v2166_v34  ;;  %v6173_v12 = vpop.permute.xlu0 %2092  ;;  %v2090_v23 = vadd.f32 %v2086_v62, %v2078_v33  ;;  %v1365_v34 = vld [vmem:[%s7173_s9 + $0x88] sm:$0xff]  ;;  %v1348_v62 = vld [vmem:[%s7173_s9] sm:$0xff] }
 0x66f   :  { %v2097_v35 = vmul.f32 %v6173_v12, %v6090_v9  ;;  %v2098_v44 = vmul.f32 %v6173_v12, %v6098_v17 }
 0x670   :  { %v1985_v59 = vmul.f32 %v6122_v46, %v1959_v47  ;;  %v2189_v47 = vadd.f32 %v2185_v52, %v2177_v13  ;;  %v2190_v53 = vadd.f32 %v2186_v0, %v2178_v1  ;;  %v2230_v1 = vrot.slane %v6110_v20, %v6053_v15 }
 0x671   :  { %v2101_v50 = vadd.f32 %v2097_v35, %v2089_v19  ;;  %v1349_v19 = vld [vmem:[%s7173_s9 + $0x8] sm:$0xff] }
 0x672   :  { %v2012_v10 = vadd.f32 %v6136_v41, %v1985_v59  ;;  %v2102_v59 = vadd.f32 %v2098_v44, %v2090_v23  ;;  %v1428_v23 = vld [vmem:[%s7173_s9 + $0x280] sm:$0xff]  ;;  %v1429_v35 = vld [vmem:[%s7173_s9 + $0x288] sm:$0xff] }
 0x673   :  { %v2105_v6 = vmul.f32 %v2101_v50, %v6114_v7 }
 0x674   :  { %v2016_v54 = vmax.f32 %v2012_v10, 0.0  ;;  %v2106_v42 = vmul.f32 %v2102_v59, %v6122_v46  ;;  %v2150_v10 = vrot.slane %v2130_v56, %v7352_v31  ;;  %v4447_v59 = vpack.c.bf16 %v1365_v34, %v1364_v5  ;;  %v1366_v5 = vld [vmem:[%s7173_s9 + $0x90] sm:$0xff] }
 0x675   :  { %v6186_v33 = vadd.f32 %v2105_v6, %v6130_v32  ;;  %v4449_v6 = vpack.c.bf16 %v1349_v19, %v1348_v62  ;;  %v2266_v34 = vmul.f32 %v6175_v29, %v6050_v11  ;;  %v1351_v19 = vld [vmem:[%s7173_s9 + $0x18] sm:$0xff] }
 0x676   :  { %v6167_v61 = vmul.f32 %v2054_v3, %v2016_v54  ;;  %v6188_v3 = vpop.permute.xlu1 %2192  ;;  %v2110_v16 = vadd.f32 %v2106_v42, %v6136_v41  ;;  %v4511_v42 = vpack.c.bf16 %v1429_v35, %v1428_v23  ;;  %4448 = vmatprep.subr.bf16.mxu1 %v4447_v59 }
 0x677   :  { %v2197_v54 = vmul.f32 %v6188_v3, %v6090_v9  ;;  %v2198_v55 = vmul.f32 %v6188_v3, %v6098_v17  ;;  %4450 = vmatpush3.bf16.msra.mxu1 %v4449_v6 }
 0x678   :  { %v2114_v13 = vmax.f32 %v2110_v16, 0.0  ;;  %v2250_v16 = vrot.slane %v2230_v1, %v6038_v58  ;;  %4512 = vmatprep.subr.bf16.mxu0 %v4511_v42 }
 0x679   :  { %v2201_v52 = vadd.f32 %v2197_v54, %v2189_v47  ;;  %v2202_v0 = vadd.f32 %v2198_v55, %v2190_v53  ;;  %v6220_v47 = vpop.permute.xlu0 %2268  ;;  %v2265_v53 = vmul.f32 %v6175_v29, %v6045_v4  ;;  %v1412_v55 = vld [vmem:[%s7173_s9 + $0x200] sm:$0xff] }
 0x67a   :  { %v6216_v44 = vmul.f32 %v2150_v10, %v2114_v13  ;;  %v1413_v13 = vld [vmem:[%s7173_s9 + $0x208] sm:$0xff]  ;;  %v2273_v4 = vmul.f32 %v6220_v47, %v6033_v49  ;;  %v2274_v1 = vmul.f32 %v6220_v47, %v6041_v60  ;;  %v1350_v49 = vld [vmem:[%s7173_s9 + $0x10] sm:$0xff] }
 0x67b   :  { %v2205_v50 = vmul.f32 %v2201_v52, %v6114_v7  ;;  %v2206_v56 = vmul.f32 %v2202_v0, %v6122_v46  ;;  %v6244_v52 = vpop.permute.xlu1 %2280  ;;  %v1367_v0 = vld [vmem:[%s7173_s9 + $0x98] sm:$0xff]  ;;  %v4513_v23 = vpack.c.bf16 %v1413_v13, %v1412_v55  ;;  %v1430_v60 = vld [vmem:[%s7173_s9 + $0x290] sm:$0xff]  ;;  %v4453_v42 = vpack.c.bf16 %v1351_v19, %v1350_v49 }
 0x67c   :  { %v2277_v11 = vadd.f32 %v2273_v4, %v2265_v53  ;;  %v2285_v59 = vmul.f32 %v6244_v52, %v6066_v2  ;;  %v4451_v6 = vpack.c.bf16 %v1367_v0, %v1366_v5  ;;  %v1414_v53 = vld [vmem:[%s7173_s9 + $0x210] sm:$0xff]  ;;  %v2278_v55 = vadd.f32 %v2274_v1, %v2266_v34  ;;  %v1369_v2 = vld [vmem:[%s7173_s9 + $0xa8] sm:$0xff]  ;;  %v1352_v4 = vld [vmem:[%s7173_s9 + $0x20] sm:$0xff] }
 0x67d   :  { %v6226_v54 = vadd.f32 %v2205_v50, %v6130_v32  ;;  %v2210_v10 = vadd.f32 %v2206_v56, %v6136_v41  ;;  %v6257_v50 = vpop.permute.xlu0 %2292  ;;  %v1431_v56 = vld [vmem:[%s7173_s9 + $0x298] sm:$0xff]  ;;  %4514 = vmatpush3.bf16.msra.mxu0 %v4513_v23  ;;  %v2286_v13 = vmul.f32 %v6244_v52, %v6071_v14  ;;  %v1353_v5 = vld [vmem:[%s7173_s9 + $0x28] sm:$0xff]  ;;  %v1432_v14 = vld [vmem:[%s7173_s9 + $0x2a0] sm:$0xff] }
 0x67e   :  { %4452 = vmatprep.subr.bf16.mxu1 %v4451_v6  ;;  %v2297_v34 = vmul.f32 %v6257_v50, %v6090_v9  ;;  %v1433_v1 = vld [vmem:[%s7173_s9 + $0x2a8] sm:$0xff]  ;;  %v1416_v0 = vld [vmem:[%s7173_s9 + $0x220] sm:$0xff]  ;;  %v4515_v49 = vpack.c.bf16 %v1431_v56, %v1430_v60  ;;  %v1370_v9 = vld [vmem:[%s7173_s9 + $0xb0] sm:$0xff]  ;;  %v4457_v26 = vpack.c.bf16 %v1353_v5, %v1352_v4 }
 0x67f   :  { %v2214_v62 = vmax.f32 %v2210_v10, 0.0  ;;  %v1368_v10 = vld [vmem:[%s7173_s9 + $0xa0] sm:$0xff]  ;;  %4454 = vmatpush3.bf16.msra.mxu1 %v4453_v42  ;;  %v1371_v23 = vld [vmem:[%s7173_s9 + $0xb8] sm:$0xff]  ;;  %v1354_v60 = vld [vmem:[%s7173_s9 + $0x30] sm:$0xff]  ;;  %v2290_v42 = vadd.f32 %v2286_v13, %v2278_v55 }
 0x680   :  { %v4455_v6 = vpack.c.bf16 %v1369_v2, %v1368_v10  ;;  %v1355_v56 = vld [vmem:[%s7173_s9 + $0x38] sm:$0xff]  ;;  %4516 = vmatprep.subr.bf16.mxu0 %v4515_v49  ;;  %v4459_v5 = vpack.c.bf16 %v1371_v23, %v1370_v9  ;;  %v1373_v55 = vld [vmem:[%s7173_s9 + $0xc8] sm:$0xff]  ;;  %v1436_v49 = vld [vmem:[%s7173_s9 + $0x2c0] sm:$0xff] }
 0x681   :  { %v6255_v35 = vmul.f32 %v2250_v16, %v2214_v62  ;;  %v1415_v16 = vld [vmem:[%s7173_s9 + $0x218] sm:$0xff]  ;;  %v2289_v62 = vadd.f32 %v2285_v59, %v2277_v11  ;;  %v1417_v11 = vld [vmem:[%s7173_s9 + $0x228] sm:$0xff]  ;;  %v4461_v13 = vpack.c.bf16 %v1355_v56, %v1354_v60 }
 0x682   :  { %v4517_v19 = vpack.c.bf16 %v1415_v16, %v1414_v53  ;;  %v2298_v53 = vmul.f32 %v6257_v50, %v6098_v17  ;;  %v4519_v16 = vpack.c.bf16 %v1433_v1, %v1432_v14  ;;  %v1435_v10 = vld [vmem:[%s7173_s9 + $0x2b8] sm:$0xff]  ;;  %4456 = vmatprep.subr.bf16.mxu1 %v4455_v6  ;;  %v4521_v4 = vpack.c.bf16 %v1417_v11, %v1416_v0  ;;  %v1372_v17 = vld [vmem:[%s7173_s9 + $0xc0] sm:$0xff] }
 0x683   :  { %v2301_v59 = vadd.f32 %v2297_v34, %v2289_v62  ;;  %v1434_v62 = vld [vmem:[%s7173_s9 + $0x2b0] sm:$0xff]  ;;  %4458 = vmatpush3.bf16.msra.mxu1 %v4457_v26  ;;  %v1356_v14 = vld [vmem:[%s7173_s9 + $0x40] sm:$0xff]  ;;  %v1357_v26 = vld [vmem:[%s7173_s9 + $0x48] sm:$0xff]  ;;  %v4463_v11 = vpack.c.bf16 %v1373_v55, %v1372_v17  ;;  %v2030_v6 = vrot.slane %v6110_v20, %v7353_v40 }
 0x684   :  { %4518 = vmatpush3.bf16.msra.mxu0 %v4517_v19  ;;  %v1418_v34 = vld [vmem:[%s7173_s9 + $0x230] sm:$0xff]  ;;  %4460 = vmatprep.subr.bf16.mxu1 %v4459_v5  ;;  %v4523_v0 = vpack.c.bf16 %v1435_v10, %v1434_v62  ;;  %v1437_v19 = vld [vmem:[%s7173_s9 + $0x2c8] sm:$0xff]  ;;  %v1375_v9 = vld [vmem:[%s7173_s9 + $0xd8] sm:$0xff]  ;;  %v2302_v23 = vadd.f32 %v2298_v53, %v2290_v42  ;;  %v4465_v60 = vpack.c.bf16 %v1357_v26, %v1356_v14 }
 0x685   :  { %v2305_v2 = vmul.f32 %v2301_v59, %v6114_v7  ;;  %4520 = vmatprep.subr.bf16.mxu0 %v4519_v16  ;;  %v1419_v7 = vld [vmem:[%s7173_s9 + $0x238] sm:$0xff]  ;;  %v4527_v56 = vpack.c.bf16 %v1437_v19, %v1436_v49  ;;  %v1420_v16 = vld [vmem:[%s7173_s9 + $0x240] sm:$0xff]  ;;  %v1421_v62 = vld [vmem:[%s7173_s9 + $0x248] sm:$0xff]  ;;  %v2126_v53 = vrot.slane %v6110_v20, %v7352_v31  ;;  %v2050_v14 = vrot.slane %v2030_v6, %v7353_v40 }
 0x686   :  { %v4525_v59 = vpack.c.bf16 %v1419_v7, %v1418_v34  ;;  %v1358_v42 = vld [vmem:[%s7173_s9 + $0x50] sm:$0xff]  ;;  %v1439_v5 = vld [vmem:[%s7173_s9 + $0x2d8] sm:$0xff]  ;;  %v1376_v17 = vld [vmem:[%s7173_s9 + $0xe0] sm:$0xff]  ;;  %v2306_v34 = vmul.f32 %v2302_v23, %v6122_v46  ;;  %v4529_v7 = vpack.c.bf16 %v1421_v62, %v1420_v16  ;;  %v2213_v16 = vmax.f32 %v6226_v54, 0.0 }
 0x687   :  { %v6338_v1 = vadd.f32 %v2305_v2, %v6130_v32  ;;  %v1374_v32 = vld [vmem:[%s7173_s9 + $0xd0] sm:$0xff]  ;;  %4462 = vmatpush3.bf16.msra.mxu1 %v4461_v13  ;;  %v1359_v2 = vld [vmem:[%s7173_s9 + $0x58] sm:$0xff]  ;;  %v1377_v55 = vld [vmem:[%s7173_s9 + $0xe8] sm:$0xff]  ;;  %v2226_v13 = vrot.slane %v6110_v20, %v6038_v58 }
 0x688   :  { %4522 = vmatpush3.bf16.msra.mxu0 %v4521_v4  ;;  %4464 = vmatprep.subr.bf16.mxu1 %v4463_v11  ;;  %v4467_v10 = vpack.c.bf16 %v1375_v9, %v1374_v32  ;;  %v1438_v4 = vld [vmem:[%s7173_s9 + $0x2d0] sm:$0xff]  ;;  %v1423_v19 = vld [vmem:[%s7173_s9 + $0x258] sm:$0xff]  ;;  %v1360_v46 = vld [vmem:[%s7173_s9 + $0x60] sm:$0xff]  ;;  %v2015_v11 = vmax.f32 %v6147_v57, 0.0  ;;  %v2146_v32 = vrot.slane %v2126_v53, %v7352_v31  ;;  %v2113_v9 = vmax.f32 %v6186_v33, 0.0 }
 0x689   :  { %4524 = vmatprep.subr.bf16.mxu0 %v4523_v0  ;;  %v4469_v0 = vpack.c.bf16 %v1359_v2, %v1358_v42  ;;  %v4531_v26 = vpack.c.bf16 %v1439_v5, %v1438_v4  ;;  %v1422_v49 = vld [vmem:[%s7173_s9 + $0x250] sm:$0xff]  ;;  %v4471_v23 = vpack.c.bf16 %v1377_v55, %v1376_v17  ;;  %v1440_v6 = vld [vmem:[%s7173_s9 + $0x2e0] sm:$0xff]  ;;  %v1379_v33 = vld [vmem:[%s7173_s9 + $0xf8] sm:$0xff]  ;;  %v2310_v62 = vadd.f32 %v2306_v34, %v6136_v41 }
 0x68a   :  { %v1378_v57 = vld [vmem:[%s7173_s9 + $0xf0] sm:$0xff]  ;;  %v4533_v42 = vpack.c.bf16 %v1423_v19, %v1422_v49  ;;  %v1424_v2 = vld [vmem:[%s7173_s9 + $0x260] sm:$0xff]  ;;  %v1425_v4 = vld [vmem:[%s7173_s9 + $0x268] sm:$0xff]  ;;  %v2057_v5 = vmul.f32 %v2050_v14, %v2015_v11  ;;  %v2153_v41 = vmul.f32 %v2146_v32, %v2113_v9 }
 0x68b   :  { %4466 = vmatpush3.bf16.msra.mxu1 %v4465_v60  ;;  %v1441_v60 = vld [vmem:[%s7173_s9 + $0x2e8] sm:$0xff]  ;;  %v1362_v54 = vld [vmem:[%s7173_s9 + $0x70] sm:$0xff]  ;;  %v4475_v17 = vpack.c.bf16 %v1379_v33, %v1378_v57  ;;  %v1363_v55 = vld [vmem:[%s7173_s9 + $0x78] sm:$0xff]  ;;  %v2314_v49 = vmax.f32 %v2310_v62, 0.0  ;;  %v4537_v19 = vpack.c.bf16 %v1425_v4, %v1424_v2  ;;  %v2313_v33 = vmax.f32 %v6338_v1, 0.0 }
 0x68c   :  { %4526 = vmatpush3.bf16.msra.mxu0 %v4525_v59  ;;  %4468 = vmatprep.subr.bf16.mxu1 %v4467_v10  ;;  %v1361_v59 = vld [vmem:[%s7173_s9 + $0x68] sm:$0xff]  ;;  %v4535_v10 = vpack.c.bf16 %v1441_v60, %v1440_v6  ;;  %v1443_v34 = vld [vmem:[%s7173_s9 + $0x2f8] sm:$0xff]  ;;  %v4477_v11 = vpack.c.bf16 %v1363_v55, %v1362_v54  ;;  %v1426_v9 = vld [vmem:[%s7173_s9 + $0x270] sm:$0xff]  ;;  %v2157_v57 = vadd.f32 %v2153_v41, %v2057_v5 }
 0x68d   :  { %4528 = vmatprep.subr.bf16.mxu0 %v4527_v56  ;;  %v2246_v56 = vrot.slane %v2226_v13, %v6038_v58  ;;  %v4473_v53 = vpack.c.bf16 %v1361_v59, %v1360_v46  ;;  %v1442_v13 = vld [vmem:[%s7173_s9 + $0x2f0] sm:$0xff]  ;;  %v1397_v14 = vld [vmem:[%s7173_s9 + $0x188] sm:$0xff]  ;;  %v2330_v46 = vrot.slane %v6110_v20, %v6083_v18  ;;  %v2432_v59 = vld [vmem:[%s7174_s15 + $0x80] sm:$0xff] }
 0x68e   :  { %v4539_v32 = vpack.c.bf16 %v1443_v34, %v1442_v13  ;;  %v2433_v6 = vld [vmem:[%s7174_s15 + $0x88] sm:$0xff]  ;;  %v6471_v1 = vld [vmem:[%s7175_s14 + $0x1] ss:$2 sm:$0xf] }
 0x68f   :  { %4470 = vmatpush3.bf16.msra.mxu1 %v4469_v0  ;;  %v2158_v0 = vadd.f32 %v6216_v44, %v6167_v61  ;;  %v2350_v60 = vrot.slane %v2330_v46, %v6078_v37  ;;  %v2399_v5 = vrot.slane %v6471_v1, %v6038_v58 }
 0x690   :  { %4530 = vmatpush3.bf16.msra.mxu0 %v4529_v7  ;;  %4472 = vmatprep.subr.bf16.mxu1 %v4471_v23  ;;  %v1396_v7 = vld [vmem:[%s7173_s9 + $0x180] sm:$0xff]  ;;  %v1427_v23 = vld [vmem:[%s7173_s9 + $0x278] sm:$0xff] }
 0x691   :  { %4532 = vmatprep.subr.bf16.mxu0 %v4531_v26  ;;  %v2253_v26 = vmul.f32 %v2246_v56, %v2213_v16  ;;  %v2258_v61 = vadd.f32 %v6255_v35, %v2158_v0  ;;  %v4479_v44 = vpack.c.bf16 %v1397_v14, %v1396_v7  ;;  %v2326_v56 = vrot.slane %v6110_v20, %v6078_v37  ;;  %v6465_v16 = vld [vmem:[%s7175_s14] ss:$2 sm:$0xf] }
 0x692   :  { %v4541_v35 = vpack.c.bf16 %v1427_v23, %v1426_v9  ;;  %v2354_v62 = vmul.f32 %v2350_v60, %v2314_v49  ;;  %v2372_v4 = vrot.slane %v6465_v16, %v6038_v58  ;;  %v6486_v7 = vld [vmem:[%s7170_s11] sm:$0xff] }
 0x693   :  { %4474 = vmatpush3.bf16.msra.mxu1 %v4473_v53  ;;  %v4575_v53 = vpack.c.bf16 %v2433_v6, %v2432_v59  ;;  %v1827_v14 = vrot.slane %v6486_v7, %v6019_v22  ;;  %v1783_v0 = vrot.slane %v6486_v7, %v6029_v48  ;;  %v1923_v23 = vrot.slane %v6486_v7, %v6083_v18 }
 0x694   :  { %4534 = vmatpush3.bf16.msra.mxu0 %v4533_v42  ;;  %4476 = vmatprep.subr.bf16.mxu1 %v4475_v17  ;;  %v2257_v42 = vadd.f32 %v2253_v26, %v2157_v57  ;;  %v6473_v20 = vadd.f32 %v2354_v62, %v2258_v61 }
 0x695   :  { %4536 = vmatprep.subr.bf16.mxu0 %v4535_v10  ;;  %v2346_v10 = vrot.slane %v2326_v56, %v6078_v37  ;;  %v1847_v26 = vrot.slane %v1827_v14, %v7352_v31  ;;  %v1803_v49 = vrot.slane %v1783_v0, %v7353_v40  ;;  %v1943_v60 = vrot.slane %v1923_v23, %v6078_v37 }
 0x697   :  { %4478 = vmatpush3.bf16.msra.mxu1 %v4477_v11  ;;  %v2353_v2 = vmul.f32 %v2346_v10, %v2313_v33  ;;  %v1857_v46 = vmul.f32 %v1847_v26, %v6021_v24  ;;  %v1813_v11 = vmul.f32 %v1803_v49, %v6058_v39  ;;  %v2072_v61 = vmul.f32 %v6132_v38, %v1847_v26 }
 0x698   :  { %4538 = vmatpush3.bf16.msra.mxu0 %v4537_v19  ;;  %4480 = vmatprep.subr.bf16.mxu1 %v4479_v44  ;;  %v1875_v19 = vrot.slane %v6486_v7, %v6053_v15  ;;  %v2172_v33 = vmul.f32 %v6085_v30, %v1847_v26  ;;  %v2164_v56 = vmul.f32 %v6155_v43, %v1803_v49 }
 0x699   :  { %4540 = vmatprep.subr.bf16.mxu0 %v4539_v32  ;;  %v2357_v54 = vadd.f32 %v2353_v2, %v2257_v42  ;;  %v2064_v32 = vmul.f32 %v6035_v51, %v1803_v49  ;;  %v1861_v44 = vadd.f32 %v1857_v46, %v1813_v11  ;;  %v1953_v62 = vmul.f32 %v1943_v60, %v6105_v25 }
 0x69a   :  { %v1895_v9 = vrot.slane %v1875_v19, %v6038_v58  ;;  %v2176_v2 = vadd.f32 %v2172_v33, %v2164_v56  ;;  %v2196_v14 = vmul.f32 %v6188_v3, %v1943_v60  ;;  %v1996_v46 = vrot.slane %v6103_v21, %v7352_v31 }
 0x69b   :  { %v2383_v41 = vmul.f32 %v2372_v4, %v2357_v54  ;;  %v2076_v57 = vadd.f32 %v2072_v61, %v2064_v32  ;;  %v2264_v4 = vmul.f32 %v6175_v29, %v1803_v49  ;;  %v2272_v54 = vmul.f32 %v6220_v47, %v1847_v26  ;;  %v6522_v26 = vld [vmem:[%s7172_s13] sm:$0xff] }
 0x69c   :  { %4542 = vmatpush3.bf16.msra.mxu0 %v4541_v35  ;;  %v1905_v59 = vmul.f32 %v1895_v9, %v6056_v27  ;;  %v2084_v6 = vmul.f32 %v6075_v45, %v1895_v9  ;;  %v2184_v10 = vmul.f32 %v6161_v8, %v1895_v9  ;;  %v2284_v19 = vmul.f32 %v6244_v52, %v1895_v9 }
 0x69d   :  { %4576 = vmatprep.subr.bf16.mxu0 %v4575_v53  ;;  %v6479_v17 = vadd.f32 %v2399_v5, %v2383_v41  ;;  %v2096_v53 = vmul.f32 %v6173_v12, %v1943_v60  ;;  %v1969_v5 = vrot.slane %v6095_v36, %v7352_v31  ;;  %v2276_v0 = vadd.f32 %v2272_v54, %v2264_v4 }
 0x69e   :  { %v1909_v35 = vadd.f32 %v1905_v59, %v1861_v44  ;;  %v2088_v42 = vadd.f32 %v2084_v6, %v2076_v57  ;;  %v2296_v61 = vmul.f32 %v6257_v50, %v1943_v60  ;;  %v1823_v44 = vrot.slane %v6486_v7, %v7352_v31 }
 0x69f   :  { %v2288_v23 = vadd.f32 %v2284_v19, %v2276_v0  ;;  %v1779_v9 = vrot.slane %v6486_v7, %v7353_v40  ;;  %v2026_v59 = vrot.slane %v6522_v26, %v6029_v48  ;;  %v2122_v57 = vrot.slane %v6522_v26, %v6019_v22 }
 0x6a0   :  { %v1957_v41 = vadd.f32 %v1953_v62, %v1909_v35  ;;  %v1843_v62 = vrot.slane %v1823_v44, %v7352_v31  ;;  %v2222_v22 = vrot.slane %v6522_v26, %v6053_v15 }
 0x6a1   :  { %v2300_v35 = vadd.f32 %v2296_v61, %v2288_v23  ;;  %v1799_v60 = vrot.slane %v1779_v9, %v7353_v40 }
 0x6a2   :  { %v1983_v11 = vmul.f32 %v1969_v5, %v1957_v41  ;;  %v1856_v41 = vmul.f32 %v1843_v62, %v6021_v24  ;;  %v3639_v24 = vld [vmem:[%s7176_s8] ss:$0 sm:$0xff] }
 0x6a3   :  { %v2304_v54 = vmul.f32 %v2300_v35, %v1969_v5  ;;  %v2063_v15 = vmul.f32 %v6035_v51, %v1799_v60 }
 0x6a4   :  { %v2010_v6 = vadd.f32 %v1996_v46, %v1983_v11 }
 0x700   :  { %v3739_v55 = vpop.f32.mrb[10].mxu0 }
 0x701   :  { %v3740_v13 = vpop.f32.mrb[11].mxu0 }
 0x702   :  { %v6481_v34 = vadd.f32 %v3740_v13, %v3739_v55  ;;  %v2100_v55 = vadd.f32 %v2096_v53, %v2088_v42  ;;  %v2188_v13 = vadd.f32 %v2184_v10, %v2176_v2  ;;  %v1871_v42 = vrot.slane %v6486_v7, %v6038_v58 }
 0x703   :  { %v2046_v53 = vrot.slane %v2026_v59, %v7353_v40  ;;  %v2014_v10 = vmax.f32 %v2010_v6, 0.0  ;;  %v2142_v2 = vrot.slane %v2122_v57, %v7352_v31  ;;  %v3640_v6 = vld [vmem:[%s7176_s8 + $0x1] ss:$0 sm:$0xff] }
 0x704   :  { %v2104_v32 = vmul.f32 %v2100_v55, %v1969_v5  ;;  %v2200_v49 = vadd.f32 %v2196_v14, %v2188_v13  ;;  %v1812_v55 = vmul.f32 %v1799_v60, %v6058_v39  ;;  %v1891_v13 = vrot.slane %v1871_v42, %v6038_v58 }
 0x705   :  { %v1919_v14 = vrot.slane %v6486_v7, %v6078_v37  ;;  %v2056_v0 = vmul.f32 %v2046_v53, %v2014_v10  ;;  %v2071_v39 = vmul.f32 %v6132_v38, %v1843_v62  ;;  %v2171_v38 = vmul.f32 %v6085_v30, %v1843_v62 }
 0x706   :  { %v2108_v33 = vadd.f32 %v2104_v32, %v1996_v46  ;;  %v2204_v56 = vmul.f32 %v2200_v49, %v1969_v5  ;;  %v2308_v32 = vadd.f32 %v2304_v54, %v1996_v46  ;;  %v2242_v49 = vrot.slane %v2222_v22, %v6038_v58 }
 0x707   :  { %v2322_v5 = vrot.slane %v6522_v26, %v6083_v18  ;;  %v1904_v23 = vmul.f32 %v1891_v13, %v6056_v27  ;;  %v1860_v7 = vadd.f32 %v1856_v41, %v1812_v55  ;;  %v1939_v61 = vrot.slane %v1919_v14, %v6078_v37 }
 0x708   :  { %v2112_v48 = vmax.f32 %v2108_v33, 0.0  ;;  %v2208_v4 = vadd.f32 %v2204_v56, %v1996_v46  ;;  %v2312_v44 = vmax.f32 %v2308_v32, 0.0  ;;  %v787_v18 = vmul.f32 %v3639_v24, %v5934_v28 }
 0x709   :  { %v2342_v59 = vrot.slane %v2322_v5, %v6078_v37  ;;  %v2083_v51 = vmul.f32 %v6075_v45, %v1891_v13  ;;  %v2075_v57 = vadd.f32 %v2071_v39, %v2063_v15  ;;  %v2163_v27 = vmul.f32 %v6155_v43, %v1799_v60 }
 0x70a   :  { %v2152_v19 = vmul.f32 %v2142_v2, %v2112_v48  ;;  %v2212_v11 = vmax.f32 %v2208_v4, 0.0  ;;  %v1908_v33 = vadd.f32 %v1904_v23, %v1860_v7  ;;  %v1952_v56 = vmul.f32 %v1939_v61, %v6105_v25 }
 0x70b   :  { %v2352_v42 = vmul.f32 %v2342_v59, %v2312_v44  ;;  %v793_v53 = vadd.f32 %v3640_v6, %v787_v18  ;;  %v2183_v10 = vmul.f32 %v6161_v8, %v1891_v13  ;;  %v2175_v28 = vadd.f32 %v2171_v38, %v2163_v27  ;;  %v1398_v44 = vld [vmem:[%s7173_s9 + $0x190] sm:$0xff] }
 0x70c   :  { %v2156_v46 = vadd.f32 %v2152_v19, %v2056_v0  ;;  %v2252_v9 = vmul.f32 %v2242_v49, %v2212_v11  ;;  %v2087_v2 = vadd.f32 %v2083_v51, %v2075_v57  ;;  %v2095_v48 = vmul.f32 %v6173_v12, %v1939_v61  ;;  %v2417_v51 = vld [vmem:[%s7174_s15 + $0x8] sm:$0xff] }
 0x70d   :  { %v6569_v45 = vrot.slane %v6095_v36, %v7353_v40  ;;  %v1956_v30 = vadd.f32 %v1952_v56, %v1908_v33  ;;  %v2263_v4 = vmul.f32 %v6175_v29, %v1799_v60  ;;  %v2271_v43 = vmul.f32 %v6220_v47, %v1843_v62 }
 0x70e   :  { %v2256_v35 = vadd.f32 %v2252_v9, %v2156_v46  ;;  %v2368_v22 = vrot.slane %v6465_v16, %v7352_v31  ;;  %v6575_v41 = vmax.f32 %v793_v53, 0.0  ;;  %v2099_v12 = vadd.f32 %v2095_v48, %v2087_v2  ;;  %v1399_v46 = vld [vmem:[%s7173_s9 + $0x198] sm:$0xff] }
 0x70f   :  { %v2187_v14 = vadd.f32 %v2183_v10, %v2175_v28  ;;  %v2195_v36 = vmul.f32 %v6188_v3, %v1939_v61  ;;  %v6581_v0 = vrot.slane %v6103_v21, %v7353_v40  ;;  %v1982_v29 = vmul.f32 %v6569_v45, %v1956_v30  ;;  %v1380_v3 = vld [vmem:[%s7173_s9 + $0x100] sm:$0xff]  ;;  %v1381_v21 = vld [vmem:[%s7173_s9 + $0x108] sm:$0xff]  ;;  %v1382_v28 = vld [vmem:[%s7173_s9 + $0x110] sm:$0xff] }
 0x710   :  { %v2356_v25 = vadd.f32 %v2352_v42, %v2256_v35  ;;  %v2275_v62 = vadd.f32 %v2271_v43, %v2263_v4  ;;  %v2283_v60 = vmul.f32 %v6244_v52, %v1891_v13  ;;  %v2395_v11 = vrot.slane %v6471_v1, %v7352_v31  ;;  %v1383_v2 = vld [vmem:[%s7173_s9 + $0x118] sm:$0xff] }
 0x711   :  { %v796_v32 = vrot.slane %v6575_v41, 1  ;;  %v804_v49 = vrot.slane %v6575_v41, 5  ;;  %v800_v5 = vrot.slane %v6575_v41, 3  ;;  %v2103_v52 = vmul.f32 %v2099_v12, %v6569_v45  ;;  %v2418_v12 = vld [vmem:[%s7174_s15 + $0x10] sm:$0xff] }
 0x712   :  { %v2382_v19 = vmul.f32 %v2368_v22, %v2356_v25  ;;  %v2199_v13 = vadd.f32 %v2195_v36, %v2187_v14  ;;  %v2022_v15 = vrot.slane %v6522_v26, %v7353_v40  ;;  %v6601_v39 = vadd.f32 %v6581_v0, %v1982_v29  ;;  %v1401_v25 = vld [vmem:[%s7173_s9 + $0x1a8] sm:$0xff]  ;;  %v2419_v14 = vld [vmem:[%s7174_s15 + $0x18] sm:$0xff] }
 0x713   :  { %v2118_v23 = vrot.slane %v6522_v26, %v7352_v31  ;;  %v2287_v9 = vadd.f32 %v2283_v60, %v2275_v62  ;;  %v2295_v59 = vmul.f32 %v6257_v50, %v1939_v61  ;;  %v4481_v18 = vpack.c.bf16 %v1381_v21, %v1380_v3  ;;  %v2434_v50 = vld [vmem:[%s7174_s15 + $0x90] sm:$0xff]  ;;  %v2435_v61 = vld [vmem:[%s7174_s15 + $0x98] sm:$0xff]  ;;  %v2437_v62 = vld [vmem:[%s7174_s15 + $0xa8] sm:$0xff] }
 0x714   :  { %v2409_v38 = vadd.f32 %v2395_v11, %v2382_v19  ;;  %v6632_v35 = vadd.f32 %v2103_v52, %v6581_v0  ;;  %v2203_v42 = vmul.f32 %v2199_v13, %v6569_v45  ;;  %v4483_v10 = vpack.c.bf16 %v1399_v46, %v1398_v44  ;;  %v1384_v11 = vld [vmem:[%s7173_s9 + $0x120] sm:$0xff]  ;;  %v1403_v52 = vld [vmem:[%s7173_s9 + $0x1b8] sm:$0xff]  ;;  %v2421_v46 = vld [vmem:[%s7174_s15 + $0x28] sm:$0xff] }
 0x715   :  { %v2299_v22 = vadd.f32 %v2295_v59, %v2287_v9  ;;  %v4485_v29 = vpack.c.bf16 %v1383_v2, %v1382_v28  ;;  %v2042_v60 = vrot.slane %v2022_v15, %v7353_v40  ;;  %v2218_v3 = vrot.slane %v6522_v26, %v6038_v58  ;;  %v2420_v44 = vld [vmem:[%s7174_s15 + $0x20] sm:$0xff]  ;;  %v1386_v59 = vld [vmem:[%s7173_s9 + $0x130] sm:$0xff] }
 0x716   :  { %v2413_v36 = vmax.f32 %v2409_v38, 0.0  ;;  %v2207_v21 = vadd.f32 %v2203_v42, %v6581_v0  ;;  %v2138_v13 = vrot.slane %v2118_v23, %v7352_v31  ;;  %v2438_v31 = vld [vmem:[%s7174_s15 + $0xb0] sm:$0xff]  ;;  %v2423_v42 = vld [vmem:[%s7174_s15 + $0x38] sm:$0xff]  ;;  %v2440_v28 = vld [vmem:[%s7174_s15 + $0xc0] sm:$0xff] }
 0x717   :  { %v2303_v15 = vmul.f32 %v2299_v22, %v6569_v45  ;;  %v2439_v45 = vld [vmem:[%s7174_s15 + $0xb8] sm:$0xff] }
 0x718   :  { %v2211_v38 = vmax.f32 %v2207_v21, 0.0  ;;  %v2426_v21 = vld [vmem:[%s7174_s15 + $0x50] sm:$0xff] }
 0x738   :  { %v1309_v54 = vpop.f32.mrb[12].mxu0 }
 0x739   :  { %v1310_v8 = vadd.f32 %v6481_v34, %v1309_v54  ;;  %v1311_v55 = vpop.f32.mrb[13].mxu0  ;;  %v1400_v54 = vld [vmem:[%s7173_s9 + $0x1a0] sm:$0xff] }
 0x73a   :  { %v4579_v55 = vpack.c.bf16 %v2435_v61, %v2434_v50  ;;  %v4487_v19 = vpack.c.bf16 %v1401_v25, %v1400_v54  ;;  %v2307_v61 = vadd.f32 %v2303_v15, %v6581_v0  ;;  %v2441_v0 = vld [vmem:[%s7174_s15 + $0xc8] sm:$0xff]  ;;  %v1407_v54 = vld [vmem:[%s7173_s9 + $0x1d8] sm:$0xff] }
 0x73b   :  { %v1313_v47 = vmul.f32 %v3639_v24, %v1310_v8  ;;  %v802_v24 = vrot.slane %v6575_v41, 4  ;;  %v4591_v22 = vpack.c.bf16 %v2441_v0, %v2440_v28  ;;  %v2445_v15 = vld [vmem:[%s7174_s15 + $0xe8] sm:$0xff]  ;;  %v2431_v28 = vld [vmem:[%s7174_s15 + $0x78] sm:$0xff] }
 0x73c   :  { %v2311_v25 = vmax.f32 %v2307_v61, 0.0  ;;  %v1395_v61 = vld [vmem:[%s7173_s9 + $0x178] sm:$0xff] }
 0x73d   :  { %v1314_v34 = vadd.f32 %v3640_v6, %v1313_v47  ;;  %v2416_v6 = vld [vmem:[%s7174_s15] sm:$0xff] }
 0x73e   :  { %v4577_v43 = vpack.c.bf16 %v2417_v51, %v2416_v6  ;;  %v2436_v47 = vld [vmem:[%s7174_s15 + $0xa0] sm:$0xff]  ;;  %v2238_v51 = vrot.slane %v2218_v3, %v6038_v58  ;;  %v2422_v58 = vld [vmem:[%s7174_s15 + $0x30] sm:$0xff] }
 0x73f   :  { %v6605_v7 = vmax.f32 %v1314_v34, 0.0  ;;  %v1385_v34 = vld [vmem:[%s7173_s9 + $0x128] sm:$0xff] }
 0x740   :  { %v4489_v9 = vpack.c.bf16 %v1385_v34, %v1384_v11  ;;  %v1408_v34 = vld [vmem:[%s7173_s9 + $0x1e0] sm:$0xff] }
 0x741   :  { %v1341_v57 = vsel %vm1339_vm10, %v796_v32, %v6605_v7  ;;  %v1323_v27 = vrot.slane %v6605_v7, 7  ;;  %v3652_v33 = vrot.slane %v6605_v7, 12  ;;  %v3650_v56 = vrot.slane %v6605_v7, 10 }
 0x742   :  { %1547 = vmatprep.mubr.f32.mxu1 %v1341_v57  ;;  %v3651_v53 = vrot.slane %v6605_v7, 11  ;;  %v2013_v32 = vmax.f32 %v6601_v39, 0.0  ;;  %v4583_v39 = vpack.c.bf16 %v2437_v62, %v2436_v47  ;;  %v4585_v57 = vpack.c.bf16 %v2421_v46, %v2420_v44  ;;  %v2443_v47 = vld [vmem:[%s7174_s15 + $0xd8] sm:$0xff]  ;;  %v1392_v44 = vld [vmem:[%s7173_s9 + $0x160] sm:$0xff]  ;;  %v1393_v46 = vld [vmem:[%s7173_s9 + $0x168] sm:$0xff] }
 0x743   :  { %v1340_v48 = vsel %vm1339_vm10, %v6575_v41, %v1323_v27  ;;  %v1345_v30 = vsel %vm1339_vm10, %v804_v49, %v3652_v33  ;;  %v1343_v4 = vsel %vm1339_vm10, %v800_v5, %v3650_v56  ;;  %v4581_v49 = vpack.c.bf16 %v2419_v14, %v2418_v12  ;;  %v1402_v5 = vld [vmem:[%s7173_s9 + $0x1b0] sm:$0xff]  ;;  %v1404_v33 = vld [vmem:[%s7173_s9 + $0x1c0] sm:$0xff]  ;;  %v1405_v56 = vld [vmem:[%s7173_s9 + $0x1c8] sm:$0xff] }
 0x744   :  { %1548 = vmatmul.mubr.f32.vlgmr.msra.gmra.mrb[10].mxu1 %v1340_v48  ;;  %1687 = vmatprep.mubr.f32.mxu0 %v1345_v30  ;;  %v1344_v8 = vsel %vm1339_vm10, %v802_v24, %v3651_v53  ;;  %v2111_v24 = vmax.f32 %v6632_v35, 0.0  ;;  %v4491_v23 = vpack.c.bf16 %v1403_v52, %v1402_v5  ;;  %v2055_v6 = vmul.f32 %v2042_v60, %v2013_v32  ;;  %v1388_v48 = vld [vmem:[%s7173_s9 + $0x140] sm:$0xff]  ;;  %v1390_v60 = vld [vmem:[%s7173_s9 + $0x150] sm:$0xff]  ;;  %v1409_v32 = vld [vmem:[%s7173_s9 + $0x1e8] sm:$0xff] }
 0x745   :  { %4482 = vmatpush3.bf16.msra.mxu1 %v4481_v18  ;;  %1617 = vmatprep.mubr.f32.mxu1 %v1343_v4  ;;  %v1387_v18 = vld [vmem:[%s7173_s9 + $0x138] sm:$0xff]  ;;  %v4587_v35 = vpack.c.bf16 %v2439_v45, %v2438_v31  ;;  %v2318_v53 = vrot.slane %v6522_v26, %v6078_v37  ;;  %v4495_v2 = vpack.c.bf16 %v1405_v56, %v1404_v33  ;;  %v1389_v26 = vld [vmem:[%s7173_s9 + $0x148] sm:$0xff]  ;;  %v1410_v31 = vld [vmem:[%s7173_s9 + $0x1f0] sm:$0xff] }
 0x746   :  { %1688 = vmatmul.mubr.f32.vlgmr.msra.gmra.mrb[14].mxu0 %v1344_v8  ;;  %4484 = vmatprep.subr.bf16.mxu1 %v4483_v10  ;;  %v2151_v50 = vmul.f32 %v2138_v13, %v2111_v24  ;;  %v4493_v10 = vpack.c.bf16 %v1387_v18, %v1386_v59  ;;  %v2251_v30 = vmul.f32 %v2238_v51, %v2211_v38  ;;  %v2424_v8 = vld [vmem:[%s7174_s15 + $0x40] sm:$0xff]  ;;  %v1411_v45 = vld [vmem:[%s7173_s9 + $0x1f8] sm:$0xff]  ;;  %v2429_v18 = vld [vmem:[%s7174_s15 + $0x68] sm:$0xff] }
 0x747   :  { %4578 = vmatpush3.bf16.msra.mxu0 %v4577_v43  ;;  %2540 = vmatprep.mubr.f32.mxu0 %v2413_v36  ;;  %v4589_v4 = vpack.c.bf16 %v2423_v42, %v2422_v58  ;;  %v1406_v43 = vld [vmem:[%s7173_s9 + $0x1d0] sm:$0xff]  ;;  %v2338_v14 = vrot.slane %v2318_v53, %v6078_v37  ;;  %v4497_v36 = vpack.c.bf16 %v1389_v26, %v1388_v48  ;;  %v2444_v24 = vld [vmem:[%s7174_s15 + $0xe0] sm:$0xff]  ;;  %v2447_v33 = vld [vmem:[%s7174_s15 + $0xf8] sm:$0xff] }
 0x748   :  { %4580 = vmatprep.subr.bf16.mxu0 %v4579_v55  ;;  %v2425_v55 = vld [vmem:[%s7174_s15 + $0x48] sm:$0xff]  ;;  %v2155_v12 = vadd.f32 %v2151_v50, %v2055_v6  ;;  %v4499_v62 = vpack.c.bf16 %v1407_v54, %v1406_v43  ;;  %v2428_v59 = vld [vmem:[%s7174_s15 + $0x60] sm:$0xff]  ;;  %v2364_v51 = vrot.slane %v6465_v16, %v7353_v40  ;;  %v4505_v38 = vpack.c.bf16 %v1393_v46, %v1392_v44  ;;  %v1394_v50 = vld [vmem:[%s7173_s9 + $0x170] sm:$0xff] }
 0x749   :  { %4486 = vmatpush3.bf16.msra.mxu1 %v4485_v29  ;;  %v2442_v29 = vld [vmem:[%s7174_s15 + $0xd0] sm:$0xff]  ;;  %v4593_v11 = vpack.c.bf16 %v2425_v55, %v2424_v8  ;;  %v2351_v52 = vmul.f32 %v2338_v14, %v2311_v25  ;;  %v4507_v56 = vpack.c.bf16 %v1411_v45, %v1410_v31  ;;  %v1460_v58 = vld [vmem:[%s7173_s9 + $0x380] sm:$0xff]  ;;  %v1461_v42 = vld [vmem:[%s7173_s9 + $0x388] sm:$0xff]  ;;  %v4509_v48 = vpack.c.bf16 %v1395_v61, %v1394_v50 }
 0x74a   :  { %4488 = vmatprep.subr.bf16.mxu1 %v4487_v19  ;;  %v1391_v19 = vld [vmem:[%s7173_s9 + $0x158] sm:$0xff]  ;;  %v4595_v3 = vpack.c.bf16 %v2443_v47, %v2442_v29  ;;  %v2255_v5 = vadd.f32 %v2251_v30, %v2155_v12  ;;  %v4543_v26 = vpack.c.bf16 %v1461_v42, %v1460_v58  ;;  %v1444_v30 = vld [vmem:[%s7173_s9 + $0x300] sm:$0xff]  ;;  %v3649_v54 = vrot.slane %v6605_v7, 9  ;;  %v2618_v12 = vld [vmem:[%s7177_s17 + $0x8] sm:$0xff] }
 0x74b   :  { %4582 = vmatpush3.bf16.msra.mxu0 %v4581_v49  ;;  %v2427_v49 = vld [vmem:[%s7174_s15 + $0x58] sm:$0xff]  ;;  %v4501_v13 = vpack.c.bf16 %v1391_v19, %v1390_v60  ;;  %v2617_v55 = vld [vmem:[%s7177_s17] sm:$0xff]  ;;  %v798_v14 = vrot.slane %v6575_v41, 2  ;;  %v808_v29 = vrot.slane %v6575_v41, 7  ;;  %v2620_v46 = vld [vmem:[%s7179_s18 + $0x8] sm:$0xff] }
 0x74c   :  { %4584 = vmatprep.subr.bf16.mxu0 %v4583_v39  ;;  %v4503_v39 = vpack.c.bf16 %v1409_v32, %v1408_v34  ;;  %v2355_v6 = vadd.f32 %v2351_v52, %v2255_v5  ;;  %v1463_v25 = vld [vmem:[%s7173_s9 + $0x398] sm:$0xff]  ;;  %v4635_v19 = vpack.c.bf16 %v2618_v12, %v2617_v55  ;;  %v1465_v34 = vld [vmem:[%s7173_s9 + $0x3a8] sm:$0xff]  ;;  %v1448_v5 = vld [vmem:[%s7173_s9 + $0x320] sm:$0xff] }
 0x74d   :  { %4490 = vmatpush3.bf16.msra.mxu1 %v4489_v9  ;;  %v4597_v9 = vpack.c.bf16 %v2427_v49, %v2426_v21  ;;  %v1342_v60 = vsel %vm1339_vm10, %v798_v14, %v3649_v54  ;;  %v1449_v52 = vld [vmem:[%s7173_s9 + $0x328] sm:$0xff]  ;;  %v2619_v44 = vld [vmem:[%s7179_s18] sm:$0xff]  ;;  %v1450_v45 = vld [vmem:[%s7173_s9 + $0x330] sm:$0xff]  ;;  %v2403_v14 = vrot.slane %v6471_v1, %v6078_v37 }
 0x74e   :  { %4492 = vmatprep.subr.bf16.mxu1 %v4491_v23  ;;  %v4599_v23 = vpack.c.bf16 %v2445_v15, %v2444_v24  ;;  %v2381_v0 = vmul.f32 %v2364_v51, %v2355_v6  ;;  %v2624_v24 = vld [vmem:[%s7178_s2] sm:$0xff]  ;;  %v1466_v15 = vld [vmem:[%s7173_s9 + $0x3b0] sm:$0xff]  ;;  %v1469_v51 = vld [vmem:[%s7173_s9 + $0x3c8] sm:$0xff] }
 0x74f   :  { %4586 = vmatpush3.bf16.msra.mxu0 %v4585_v57  ;;  %v2446_v57 = vld [vmem:[%s7174_s15 + $0xf0] sm:$0xff]  ;;  %v1468_v6 = vld [vmem:[%s7173_s9 + $0x3c0] sm:$0xff]  ;;  %v1453_v61 = vld [vmem:[%s7173_s9 + $0x348] sm:$0xff] }
 0x750   :  { %4588 = vmatprep.subr.bf16.mxu0 %v4587_v35  ;;  %v4601_v35 = vpack.c.bf16 %v2429_v18, %v2428_v59  ;;  %v4603_v53 = vpack.c.bf16 %v2447_v33, %v2446_v57  ;;  %v3661_v59 = vld [vmem:[%s7178_s2 + $0x8] sm:$0xff]  ;;  %v6896_v18 = vpack.c.bf16 %v2620_v46, %v2619_v44  ;;  %v2622_v57 = vld [vmem:[%s7179_s18 + $0x18] sm:$0xff]  ;;  %v1452_v50 = vld [vmem:[%s7173_s9 + $0x340] sm:$0xff] }
 0x751   :  { %4494 = vmatpush3.bf16.msra.mxu1 %v4493_v10  ;;  %v2430_v10 = vld [vmem:[%s7174_s15 + $0x70] sm:$0xff]  ;;  %v1471_v42 = vld [vmem:[%s7173_s9 + $0x3d8] sm:$0xff]  ;;  %v2460_v46 = vld [vmem:[%s7174_s15 + $0x160] sm:$0xff] }
 0x752   :  { %4496 = vmatprep.subr.bf16.mxu1 %v4495_v2  ;;  %v2391_v2 = vrot.slane %v6471_v1, %v7353_v40  ;;  %v4605_v43 = vpack.c.bf16 %v2431_v28, %v2430_v10  ;;  %v1462_v40 = vld [vmem:[%s7173_s9 + $0x390] sm:$0xff]  ;;  %v1459_v12 = vld [vmem:[%s7173_s9 + $0x378] sm:$0xff] }
 0x753   :  { %4590 = vmatpush3.bf16.msra.mxu0 %v4589_v4  ;;  %v1445_v4 = vld [vmem:[%s7173_s9 + $0x308] sm:$0xff]  ;;  %v4547_v47 = vpack.c.bf16 %v1463_v25, %v1462_v40  ;;  %v1470_v58 = vld [vmem:[%s7173_s9 + $0x3d0] sm:$0xff]  ;;  %v1475_v40 = vld [vmem:[%s7173_s9 + $0x3f8] sm:$0xff]  ;;  %v2376_v25 = vrot.slane %v6465_v16, %v6078_v37  ;;  %v806_v37 = vrot.slane %v6575_v41, 6 }
 0x754   :  { %4592 = vmatprep.subr.bf16.mxu0 %v4591_v22  ;;  %v1330_v22 = vrot.slane %v1323_v27, 7  ;;  %v2408_v8 = vadd.f32 %v2391_v2, %v2381_v0  ;;  %v1446_v27 = vld [vmem:[%s7173_s9 + $0x310] sm:$0xff]  ;;  %v4563_v10 = vpack.c.bf16 %v1471_v42, %v1470_v58  ;;  %v1455_v0 = vld [vmem:[%s7173_s9 + $0x358] sm:$0xff]  ;;  %v1472_v2 = vld [vmem:[%s7173_s9 + $0x3e0] sm:$0xff] }
 0x755   :  { %4498 = vmatpush3.bf16.msra.mxu1 %v4497_v36  ;;  %v4545_v36 = vpack.c.bf16 %v1445_v4, %v1444_v30  ;;  %v1454_v28 = vld [vmem:[%s7173_s9 + $0x350] sm:$0xff]  ;;  %v1456_v4 = vld [vmem:[%s7173_s9 + $0x360] sm:$0xff]  ;;  %v2384_v16 = vmul.f32 %v2376_v25, %v6473_v20  ;;  %v3653_v20 = vrot.slane %v6605_v7, 13 }
 0x756   :  { %4500 = vmatprep.subr.bf16.mxu1 %v4499_v62  ;;  %v1447_v62 = vld [vmem:[%s7173_s9 + $0x318] sm:$0xff]  ;;  %v1347_v32 = vsel %vm1339_vm10, %v808_v29, %v1330_v22  ;;  %v1474_v54 = vld [vmem:[%s7173_s9 + $0x3f0] sm:$0xff]  ;;  %v2448_v29 = vld [vmem:[%s7174_s15 + $0x100] sm:$0xff] }
 0x757   :  { %4594 = vmatpush3.bf16.msra.mxu0 %v4593_v11  ;;  %v1464_v11 = vld [vmem:[%s7173_s9 + $0x3a0] sm:$0xff]  ;;  %v4549_v21 = vpack.c.bf16 %v1447_v62, %v1446_v27  ;;  %v1458_v55 = vld [vmem:[%s7173_s9 + $0x370] sm:$0xff]  ;;  %v2411_v27 = vadd.f32 %v2403_v14, %v2384_v16 }
 0x758   :  { %4596 = vmatprep.subr.bf16.mxu0 %v4595_v3  ;;  %v2412_v3 = vmax.f32 %v2408_v8, 0.0  ;;  %v4551_v49 = vpack.c.bf16 %v1465_v34, %v1464_v11  ;;  %v4571_v8 = vpack.c.bf16 %v1475_v40, %v1474_v54  ;;  %v2450_v62 = vld [vmem:[%s7174_s15 + $0x110] sm:$0xff]  ;;  %v2452_v41 = vld [vmem:[%s7174_s15 + $0x120] sm:$0xff]  ;;  %v2453_v34 = vld [vmem:[%s7174_s15 + $0x128] sm:$0xff] }
 0x759   :  { %4502 = vmatpush3.bf16.msra.mxu1 %v4501_v13  ;;  %v7354_v13 = vmov 0.0   ;;  %v2415_v11 = vmax.f32 %v2411_v27, 0.0  ;;  %v3654_v42 = vld [vmem:[%s7180_s10] ss:$0 sm:$0xff] }
 0x75a   :  { %4504 = vmatprep.subr.bf16.mxu1 %v4503_v39  ;;  %v1467_v39 = vld [vmem:[%s7173_s9 + $0x3b8] sm:$0xff] }
 0x75b   :  { %4598 = vmatpush3.bf16.msra.mxu0 %v4597_v9  ;;  %v4553_v9 = vpack.c.bf16 %v1449_v52, %v1448_v5  ;;  %v4555_v31 = vpack.c.bf16 %v1467_v39, %v1466_v15  ;;  %v2456_v5 = vld [vmem:[%s7174_s15 + $0x140] sm:$0xff]  ;;  %v2457_v52 = vld [vmem:[%s7174_s15 + $0x148] sm:$0xff]  ;;  %v2458_v15 = vld [vmem:[%s7174_s15 + $0x150] sm:$0xff] }
 0x75c   :  { %4600 = vmatprep.subr.bf16.mxu0 %v4599_v23  ;;  %v1451_v23 = vld [vmem:[%s7173_s9 + $0x338] sm:$0xff] }
 0x75d   :  { %4506 = vmatpush3.bf16.msra.mxu1 %v4505_v38  ;;  %v2621_v38 = vld [vmem:[%s7179_s18 + $0x10] sm:$0xff]  ;;  %v4557_v33 = vpack.c.bf16 %v1451_v23, %v1450_v45  ;;  %v2459_v39 = vld [vmem:[%s7174_s15 + $0x158] sm:$0xff] }
 0x75e   :  { %4508 = vmatprep.subr.bf16.mxu1 %v4507_v56  ;;  %v4559_v56 = vpack.c.bf16 %v1469_v51, %v1468_v6  ;;  %v4623_v44 = vpack.c.bf16 %v2459_v39, %v2458_v15  ;;  %v2462_v45 = vld [vmem:[%s7174_s15 + $0x170] sm:$0xff]  ;;  %v2463_v23 = vld [vmem:[%s7174_s15 + $0x178] sm:$0xff]  ;;  %v2464_v6 = vld [vmem:[%s7174_s15 + $0x180] sm:$0xff] }
 0x75f   :  { %4602 = vmatpush3.bf16.msra.mxu0 %v4601_v35  ;;  %v6919_v35 = vpack.c.bf16 %v2622_v57, %v2621_v38  ;;  %v2465_v51 = vld [vmem:[%s7174_s15 + $0x188] sm:$0xff]  ;;  %v2414_v57 = vmax.f32 %v6479_v17, 0.0 }
 0x760   :  { %4604 = vmatprep.subr.bf16.mxu0 %v4603_v53  ;;  %v4561_v53 = vpack.c.bf16 %v1453_v61, %v1452_v50  ;;  %v4632_v38 = vpack.c.bf16 %v2465_v51, %v2464_v6 }
 0x761   :  { %4510 = vmatpush3.bf16.msra.mxu1 %v4509_v48  ;;  %v1473_v48 = vld [vmem:[%s7173_s9 + $0x3e8] sm:$0xff] }
 0x762   :  { %4544 = vmatprep.subr.bf16.mxu1 %v4543_v26  ;;  %v4565_v26 = vpack.c.bf16 %v1455_v0, %v1454_v28  ;;  %v4567_v30 = vpack.c.bf16 %v1473_v48, %v1472_v2 }
 0x763   :  { %4606 = vmatpush3.bf16.msra.mxu0 %v4605_v43  ;;  %v1457_v43 = vld [vmem:[%s7173_s9 + $0x368] sm:$0xff] }
 0x764   :  { %1618 = vmatmul.mubr.f32.vlgmr.msra.gmra.mrb[12].mxu1 %v1342_v60  ;;  %4634 = vmatprep.subr.bf16.mxu0 %v7275_v63  ;;  %v4569_v22 = vpack.c.bf16 %v1457_v43, %v1456_v4  ;;  %v2451_v60 = vld [vmem:[%s7174_s15 + $0x118] sm:$0xff]  ;;  %v3659_v4 = vld [vmem:[%s7181_s19] ss:$0 sm:$0xff] }
 0x765   :  { %4546 = vmatpush3.bf16.msra.mxu1 %v4545_v36  ;;  %1757 = vmatprep.mubr.f32.mxu1 %v1347_v32  ;;  %v4573_v36 = vpack.c.bf16 %v1459_v12, %v1458_v55  ;;  %v4611_v7 = vpack.c.bf16 %v2451_v60, %v2450_v62  ;;  %v4614_v32 = vpack.c.bf16 %v2453_v34, %v2452_v41 }
 0x766   :  { %2541 = vmatmul.mubr.f32.vlgmr.msra.gmra.mrb[16].mxu0 %v2412_v3  ;;  %4548 = vmatprep.subr.bf16.mxu1 %v4547_v47  ;;  %v2449_v47 = vld [vmem:[%s7174_s15 + $0x108] sm:$0xff]  ;;  %v2454_v3 = vld [vmem:[%s7174_s15 + $0x130] sm:$0xff] }
 0x767   :  { %4636 = vmatpush3.bf16.msra.mxu0 %v4635_v19  ;;  %3967 = vmatprep.mubr.msk.f32.mxu0 %vm4807_vm11, %v7354_v13  ;;  %v4608_v1 = vpack.c.bf16 %v2449_v47, %v2448_v29 }
 0x768   :  { %4637 = vmatprep.subr.bf16.mxu0 %v7275_v63 }
 0x769   :  { %4550 = vmatpush3.bf16.msra.mxu1 %v4549_v21  ;;  %v2455_v21 = vld [vmem:[%s7174_s15 + $0x138] sm:$0xff] }
 0x76a   :  { %3968 = vmatmul.mubr.msk.f32.vlgmr.msra.gmra.mrb[18].mxu0 %vm123_vm5, %v2624_v24  ;;  %4552 = vmatprep.subr.bf16.mxu1 %v4551_v49  ;;  %v4617_v49 = vpack.c.bf16 %v2455_v21, %v2454_v3  ;;  %v4620_v24 = vpack.c.bf16 %v2457_v52, %v2456_v5 }
 0x76b   :  { %4639 = vmatpush3.bf16.msra.mxu0 %v4635_v19  ;;  %3974 = vmatprep.mubr.msk.f32.mxu0 %vm4807_vm11, %v7354_v13  ;;  %v1346_v19 = vsel %vm1339_vm10, %v806_v37, %v3653_v20 }
 0x76c   :  { %4640 = vmatprep.subr.bf16.mxu0 %v7275_v63 }
 0x76d   :  { %4554 = vmatpush3.bf16.msra.mxu1 %v4553_v9  ;;  %v2461_v9 = vld [vmem:[%s7174_s15 + $0x168] sm:$0xff] }
 0x76e   :  { %3975 = vmatmul.mubr.msk.f32.vlgmr.msra.gmra.mrb[20].mxu0 %vm123_vm5, %v3661_v59  ;;  %4556 = vmatprep.subr.bf16.mxu1 %v4555_v31  ;;  %v4626_v31 = vpack.c.bf16 %v2461_v9, %v2460_v46  ;;  %v4629_v59 = vpack.c.bf16 %v2463_v23, %v2462_v45  ;;  %v3657_v45 = vld [vmem:[%s7182_s16] ss:$0 sm:$0xff] }
 0x76f   :  { %4642 = vmatpush3.bf16.msra.mxu0 %v6896_v18  ;;  %3985 = vmatprep.mubr.msk.f32.mxu0 %vm4807_vm11, %v7354_v13 }
 0x770   :  { %4643 = vmatprep.subr.bf16.mxu0 %v7275_v63 }
 0x771   :  { %4558 = vmatpush3.bf16.msra.mxu1 %v4557_v33 }
 0x772   :  { %4560 = vmatprep.subr.bf16.mxu1 %v4559_v56 }
 0x773   :  { %4645 = vmatpush3.bf16.msra.mxu0 %v6919_v35 }
 0x774   :  { %4646 = vmatprep.subr.bf16.mxu0 %v7275_v63 }
 0x775   :  { %4562 = vmatpush3.bf16.msra.mxu1 %v4561_v53 }
 0x776   :  { %3986 = vmatmul.mubr.f32.vlgmr.msra.gmra.mrb[22].mxu0 %v7354_v13  ;;  %4564 = vmatprep.subr.bf16.mxu1 %v4563_v10 }
 0x777   :  { %4648 = vmatpush3.bf16.msra.mxu0 %v6896_v18  ;;  %3996 = vmatprep.mubr.msk.f32.mxu0 %vm4807_vm11, %v7354_v13 }
 0x778   :  { %4649 = vmatprep.subr.bf16.mxu0 %v7275_v63 }
 0x779   :  { %4566 = vmatpush3.bf16.msra.mxu1 %v4565_v26 }
 0x77a   :  { %4568 = vmatprep.subr.bf16.mxu1 %v4567_v30 }
 0x77b   :  { %4651 = vmatpush3.bf16.msra.mxu0 %v6919_v35 }
 0x77c   :  { %4652 = vmatprep.subr.bf16.mxu0 %v7275_v63 }
 0x77d   :  { %4570 = vmatpush3.bf16.msra.mxu1 %v4569_v22 }
 0x77e   :  { %4572 = vmatprep.subr.bf16.mxu1 %v4571_v8 }
 0x781   :  { %4574 = vmatpush3.bf16.msra.mxu1 %v4573_v36 }
 0x782   :  { %4607 = vmatprep.subr.bf16.mxu1 %v7275_v63 }
 0x784   :  { %1758 = vmatmul.mubr.f32.vlgmr.msra.gmra.mrb[14].mxu1 %v1346_v19 }
 0x785   :  { %4609 = vmatpush1.bf16.msra.mxu1 %v4608_v1  ;;  %3658 = vmatprep.mubr.msk.f32.mxu1 %vm123_vm5, %v2415_v11 }
 0x786   :  { %4610 = vmatprep.subr.bf16.mxu1 %v7275_v63 }
 0x789   :  { %4612 = vmatpush1.bf16.msra.mxu1 %v4611_v7 }
 0x78a   :  { %4613 = vmatprep.subr.bf16.mxu1 %v7275_v63 }
 0x78d   :  { %4615 = vmatpush1.bf16.msra.mxu1 %v4614_v32 }
 0x78e   :  { %4616 = vmatprep.subr.bf16.mxu1 %v7275_v63 }
 0x791   :  { %4618 = vmatpush1.bf16.msra.mxu1 %v4617_v49 }
 0x792   :  { %4619 = vmatprep.subr.bf16.mxu1 %v7275_v63 }
 0x795   :  { %4621 = vmatpush1.bf16.msra.mxu1 %v4620_v24 }
 0x796   :  { %4622 = vmatprep.subr.bf16.mxu1 %v7275_v63 }
 0x799   :  { %4624 = vmatpush1.bf16.msra.mxu1 %v4623_v44 }
 0x79a   :  { %4625 = vmatprep.subr.bf16.mxu1 %v7275_v63 }
 0x79d   :  { %4627 = vmatpush1.bf16.msra.mxu1 %v4626_v31 }
 0x79e   :  { %4628 = vmatprep.subr.bf16.mxu1 %v7275_v63 }
 0x7a1   :  { %4630 = vmatpush1.bf16.msra.mxu1 %v4629_v59 }
 0x7a2   :  { %4631 = vmatprep.subr.bf16.mxu1 %v7275_v63 }
 0x7a5   :  { %4633 = vmatpush1.bf16.msra.mxu1 %v4632_v38 }
 0x7a6   :  { %4658 = vmatprep.subr.bf16.mxu1 %v7275_v63 }
 0x7a8   :  { %2611 = vmatmul.mubr.f32.vlgmr.msra.gmra.mrb[16].mxu1 %v2414_v57 }
 0x7a9   :  { %4660 = vmatpush3.bf16.msra.mxu1 %v6896_v18  ;;  %4018 = vmatprep.mubr.msk.f32.mxu1 %vm4807_vm11, %v7354_v13 }
 0x7aa   :  { %4661 = vmatprep.subr.bf16.mxu1 %v7275_v63 }
 0x7ad   :  { %4663 = vmatpush3.bf16.msra.mxu1 %v6919_v35 }
 0x7ae   :  { %4670 = vmatprep.subr.bf16.mxu1 %v7275_v63 }
 0x817   :  { %v3774_v33 = vpop.f32.mrb[10].mxu1 }
 0x818   :  { %v3775_v56 = vpop.f32.mrb[11].mxu1 }
 0x819   :  { %v3776_v50 = vadd.f32 %v3775_v56, %v3774_v33  ;;  %v3844_v61 = vpop.f32.mrb[14].mxu0 }
 0x81a   :  { %v3845_v58 = vpop.f32.mrb[15].mxu0 }
 0x81b   :  { %v3846_v17 = vadd.f32 %v3845_v58, %v3844_v61  ;;  %v1550_v28 = vadd.f32 %v3776_v50, %v3654_v42 }
 0x837   :  { %v3809_v53 = vpop.f32.mrb[12].mxu1 }
 0x838   :  { %v3810_v10 = vpop.f32.mrb[13].mxu1 }
 0x839   :  { %v3811_v0 = vadd.f32 %v3810_v10, %v3809_v53  ;;  %v3914_v2 = vpop.f32.mrb[16].mxu0 }
 0x83a   :  { %v3915_v48 = vpop.f32.mrb[17].mxu0 }
 0x83b   :  { %v1620_v26 = vadd.f32 %v3811_v0, %v1550_v28  ;;  %v3916_v30 = vadd.f32 %v3915_v48, %v3914_v2 }
 0x83d   :  { %v2700_v43 = vpop.f32.mrb[18].mxu0  ;;  %v1690_v54 = vadd.f32 %v3846_v17, %v1620_v26  ;;  %v2543_v23 = vadd.f32 %v3916_v30, %v3657_v45 }
 0x83e   :  { %v2701_v40 = vadd.f32 %v3659_v4, %v2700_v43  ;;  %v3969_v25 = vpop.f32.mrb[19].mxu0 }
 0x840   :  { %v2880_v22 = vrot.slane %v2701_v40, 1  ;;  %v2981_v16 = vrot.slane %v2701_v40, 2  ;;  %v3084_v14 = vrot.slane %v2701_v40, 3  ;;  %v3187_v36 = vrot.slane %v2701_v40, 4 }
 0x841   :  { %v2775_v8 = vpop.f32.mrb[20].mxu0  ;;  %v3290_v29 = vrot.slane %v2701_v40, 5  ;;  %v3393_v47 = vrot.slane %v2701_v40, 6  ;;  %v3496_v20 = vrot.slane %v2701_v40, 7 }
 0x842   :  { %v2776_v55 = vadd.f32 %v3659_v4, %v2775_v8  ;;  %v3976_v12 = vpop.f32.mrb[21].mxu0 }
 0x844   :  { %v2780_v27 = vrot.slane %v2776_v55, 7  ;;  %v2882_v37 = vsel %vm1339_vm10, %v2880_v22, %v2776_v55  ;;  %v2983_v1 = vrot.slane %v2776_v55, 1  ;;  %v3086_v62 = vrot.slane %v2776_v55, 2 }
 0x845   :  { %v3189_v60 = vrot.slane %v2776_v55, 3  ;;  %v3292_v19 = vrot.slane %v2776_v55, 4  ;;  %v3395_v11 = vrot.slane %v2776_v55, 5  ;;  %v3498_v7 = vrot.slane %v2776_v55, 6 }
 0x846   :  { %v2782_v41 = vsel %vm1339_vm10, %v2701_v40, %v2780_v27  ;;  %v7058_v34 = vsel %vm1339_vm10, %v2981_v16, %v2983_v1  ;;  %v7061_v32 = vsel %vm1339_vm10, %v3084_v14, %v3086_v62 }
 0x847   :  { %v7064_v3 = vsel %vm1339_vm10, %v3187_v36, %v3189_v60  ;;  %v7067_v21 = vsel %vm1339_vm10, %v3290_v29, %v3292_v19  ;;  %v7070_v49 = vsel %vm1339_vm10, %v3393_v47, %v3395_v11  ;;  %v7073_v5 = vsel %vm1339_vm10, %v3496_v20, %v3498_v7 }
 0x849   :  { %v2852_v52 = vpop.f32.mrb[22].mxu0 }
 0x84a   :  { %v2856_v24 = vadd.f32 %v2852_v52, %v2782_v41  ;;  %v3987_v15 = vpop.f32.mrb[23].mxu0 }
 0x84c   :  { %4736 = vtanh.f32 %v2856_v24  ;;  %v2857_v56 = vmul.f32 0.5, %v2856_v24 }
 0x84e   :  { %4738 = vtanh.f32 %v2857_v56 }
 0x856   :  { %v4737_v39 = vpop.eup %4736 }
 0x857   :  { %2864 = vrot.lane.b32.xlu1 %v4737_v39, %s4790_s4  ;;  %v3879_v44 = vpop.f32.mrb[14].mxu1 }
 0x858   :  { %v3880_v46 = vpop.f32.mrb[15].mxu1  ;;  %v4739_v50 = vpop.eup %4738 }
 0x859   :  { %v3881_v9 = vadd.f32 %v3880_v46, %v3879_v44  ;;  %v2859_v61 = vadd.f32 1.0, %v4739_v50 }
 0x85b   :  { %v1760_v31 = vadd.f32 %v3881_v9, %v1690_v54  ;;  %v2860_v58 = vmul.f32 0.5, %v2859_v61 }
 0x85d   :  { %v1763_v38 = vmax.f32 %v1760_v31, 0.0  ;;  %v2862_v53 = vmul.f32 0.0, %v2860_v58 }
 0x87b   :  { %v2612_v59 = vpop.f32.mrb[16].mxu1 }
 0x87c   :  { %v2613_v6 = vadd.f32 %v2612_v59, %v2543_v23  ;;  %v2614_v51 = vpop.f32.mrb[17].mxu1 }
 0x87e   :  { %v2616_v57 = vmax.f32 %v2613_v6, 0.0 }
 0x880   :  { %v7079_v33 = vadd.f32 %v2616_v57, %v1763_v38 }
 0x8c9   :  { %v2865_v17 = vpop.permute.xlu1 %2864 }
 0x8ca   :  { %v2867_v42 = vmul.f32 %v2865_v17, %v2860_v58 }
 0x8cc   :  { %2869 = vrot.lane.b32.xlu1 %v2867_v42, %s4790_s4 }
 0x93e   :  { %v2870_v10 = vpop.permute.xlu1 %2869 }
 0x93f   :  { %v2872_v28 = vadd.f32 %v2870_v10, %v2862_v53 }
 0x941   :  { %4740 = vtanh.f32 %v2872_v28 }
 0x94b   :  { %v4741_v0 = vpop.eup %4740 }
 0x94c   :  { %2875 = vrot.lane.b32.xlu0 %v4741_v0, %s4790_s4 }
 0x9be   :  { %v2876_v2 = vpop.permute.xlu0 %2875 }
 0x9bf   :  { %v2878_v48 = vmul.f32 %v2876_v2, %v2860_v58 }
 0x9c1   :  { %2884 = vrot.lane.b32.xlu1 %v2878_v48, %s4788_s6 }
 0xa33   :  { %v2885_v26 = vpop.permute.xlu1 %2884 }
 0xa34   :  { %3997 = vmatmul.mubr.msk.f32.vlgmr.msra.gmra.mrb[24].mxu0 %vm353_vm9, %v2885_v26 }
 0xa35   :  { %4654 = vmatpush3.bf16.msra.mxu0 %v6896_v18  ;;  %4007 = vmatprep.mubr.msk.f32.mxu0 %vm4807_vm11, %v7354_v13 }
 0xa36   :  { %4655 = vmatprep.subr.bf16.mxu0 %v7275_v63 }
 0xa39   :  { %4657 = vmatpush3.bf16.msra.mxu0 %v6919_v35 }
 0xa3a   :  { %4664 = vmatprep.subr.bf16.mxu0 %v7275_v63 }
 0xb07   :  { %v2954_v30 = vpop.f32.mrb[24].mxu0 }
 0xb08   :  { %v2958_v4 = vadd.f32 %v2954_v30, %v2882_v37  ;;  %v3998_v43 = vpop.f32.mrb[25].mxu0 }
 0xb0a   :  { %4742 = vtanh.f32 %v2958_v4  ;;  %v2959_v40 = vmul.f32 0.5, %v2958_v4 }
 0xb0c   :  { %4744 = vtanh.f32 %v2959_v40 }
 0xb14   :  { %v4743_v54 = vpop.eup %4742 }
 0xb15   :  { %2966 = vrot.lane.b32.xlu0 %v4743_v54, %s4790_s4 }
 0xb16   :  { %v4745_v25 = vpop.eup %4744 }
 0xb17   :  { %v2961_v22 = vadd.f32 1.0, %v4745_v25 }
 0xb19   :  { %v2962_v8 = vmul.f32 0.5, %v2961_v22 }
 0xb1b   :  { %v2964_v16 = vmul.f32 %v2962_v8, %v2872_v28 }
 0xb87   :  { %v2967_v55 = vpop.permute.xlu0 %2966 }
 0xb88   :  { %v2969_v12 = vmul.f32 %v2967_v55, %v2962_v8 }
 0xb8a   :  { %2971 = vrot.lane.b32.xlu1 %v2969_v12, %s4790_s4 }
 0xbfc   :  { %v2972_v14 = vpop.permute.xlu1 %2971 }
 0xbfd   :  { %v2974_v36 = vadd.f32 %v2972_v14, %v2964_v16 }
 0xbff   :  { %4746 = vtanh.f32 %v2974_v36 }
 0xc09   :  { %v4747_v29 = vpop.eup %4746 }
 0xc0a   :  { %2977 = vrot.lane.b32.xlu0 %v4747_v29, %s4790_s4 }
 0xc7c   :  { %v2978_v47 = vpop.permute.xlu0 %2977 }
 0xc7d   :  { %v2980_v20 = vmul.f32 %v2978_v47, %v2962_v8 }
 0xc7f   :  { %2987 = vrot.lane.b32.xlu1 %v2980_v20, %s4788_s6 }
 0xcf1   :  { %v2988_v27 = vpop.permute.xlu1 %2987 }
 0xcf2   :  { %4008 = vmatmul.mubr.msk.f32.vlgmr.msra.gmra.mrb[26].mxu0 %vm353_vm9, %v2988_v27 }
 0xcf3   :  { %4666 = vmatpush3.bf16.msra.mxu0 %v6896_v18  ;;  %4029 = vmatprep.mubr.msk.f32.mxu0 %vm4807_vm11, %v7354_v13 }
 0xcf4   :  { %4667 = vmatprep.subr.bf16.mxu0 %v7275_v63 }
 0xcf7   :  { %4669 = vmatpush3.bf16.msra.mxu0 %v6919_v35 }
 0xcf8   :  { %4676 = vmatprep.subr.bf16.mxu0 %v7275_v63 }
 0xdc5   :  { %v3057_v37 = vpop.f32.mrb[26].mxu0 }
 0xdc6   :  { %v3061_v1 = vadd.f32 %v3057_v37, %v7058_v34  ;;  %v4009_v62 = vpop.f32.mrb[27].mxu0 }
 0xdc8   :  { %4748 = vtanh.f32 %v3061_v1  ;;  %v3062_v19 = vmul.f32 0.5, %v3061_v1 }
 0xdca   :  { %4750 = vtanh.f32 %v3062_v19 }
 0xdd2   :  { %v4749_v60 = vpop.eup %4748 }
 0xdd3   :  { %3069 = vrot.lane.b32.xlu0 %v4749_v60, %s4790_s4 }
 0xdd4   :  { %v4751_v11 = vpop.eup %4750 }
 0xdd5   :  { %v3064_v7 = vadd.f32 1.0, %v4751_v11 }
 0xdd7   :  { %v3065_v41 = vmul.f32 0.5, %v3064_v7 }
 0xdd9   :  { %v3067_v15 = vmul.f32 %v3065_v41, %v2974_v36 }
 0xe45   :  { %v3070_v52 = vpop.permute.xlu0 %3069 }
 0xe46   :  { %v3072_v24 = vmul.f32 %v3070_v52, %v3065_v41 }
 0xe48   :  { %3074 = vrot.lane.b32.xlu1 %v3072_v24, %s4790_s4 }
 0xeba   :  { %v3075_v39 = vpop.permute.xlu1 %3074 }
 0xebb   :  { %v3077_v44 = vadd.f32 %v3075_v39, %v3067_v15 }
 0xebd   :  { %4752 = vtanh.f32 %v3077_v44 }
 0xec7   :  { %v4753_v46 = vpop.eup %4752 }
 0xec8   :  { %3080 = vrot.lane.b32.xlu0 %v4753_v46, %s4790_s4 }
 0xf3a   :  { %v3081_v34 = vpop.permute.xlu0 %3080 }
 0xf3b   :  { %v3083_v9 = vmul.f32 %v3081_v34, %v3065_v41 }
 0xf3d   :  { %3090 = vrot.lane.b32.xlu1 %v3083_v9, %s4788_s6 }
 0xfaf   :  { %v3091_v31 = vpop.permute.xlu1 %3090 }
 0xfb0   :  { %4019 = vmatmul.mubr.msk.f32.vlgmr.msra.gmra.mrb[18].mxu1 %vm353_vm9, %v3091_v31 }
 0xfb1   :  { %4672 = vmatpush3.bf16.msra.mxu1 %v6896_v18  ;;  %4040 = vmatprep.mubr.msk.f32.mxu1 %vm4807_vm11, %v7354_v13 }
 0xfb2   :  { %4673 = vmatprep.subr.bf16.mxu1 %v7275_v63 }
 0xfb5   :  { %4675 = vmatpush3.bf16.msra.mxu1 %v6919_v35 }
 0xfb6   :  { %4682 = vmatprep.subr.bf16.mxu1 %v7275_v63 }
0x1083   :  { %v3160_v45 = vpop.f32.mrb[18].mxu1 }
0x1084   :  { %v3164_v23 = vadd.f32 %v3160_v45, %v7061_v32  ;;  %v4020_v59 = vpop.f32.mrb[19].mxu1 }
0x1086   :  { %4754 = vtanh.f32 %v3164_v23  ;;  %v3165_v51 = vmul.f32 0.5, %v3164_v23 }
0x1088   :  { %4756 = vtanh.f32 %v3165_v51 }
0x1090   :  { %v4755_v6 = vpop.eup %4754 }
0x1091   :  { %3172 = vrot.lane.b32.xlu0 %v4755_v6, %s4790_s4 }
0x1092   :  { %v4757_v38 = vpop.eup %4756 }
0x1093   :  { %v3167_v57 = vadd.f32 1.0, %v4757_v38 }
0x1095   :  { %v3168_v56 = vmul.f32 0.5, %v3167_v57 }
0x1097   :  { %v3170_v58 = vmul.f32 %v3168_v56, %v3077_v44 }
0x1103   :  { %v3173_v50 = vpop.permute.xlu0 %3172 }
0x1104   :  { %v3175_v61 = vmul.f32 %v3173_v50, %v3168_v56 }
0x1106   :  { %3177 = vrot.lane.b32.xlu1 %v3175_v61, %s4790_s4 }
0x1178   :  { %v3178_v17 = vpop.permute.xlu1 %3177 }
0x1179   :  { %v3180_v42 = vadd.f32 %v3178_v17, %v3170_v58 }
0x117b   :  { %4758 = vtanh.f32 %v3180_v42 }
0x1185   :  { %v4759_v53 = vpop.eup %4758 }
0x1186   :  { %3183 = vrot.lane.b32.xlu0 %v4759_v53, %s4790_s4 }
0x11f8   :  { %v3184_v32 = vpop.permute.xlu0 %3183 }
0x11f9   :  { %v3186_v10 = vmul.f32 %v3184_v32, %v3168_v56 }
0x11fb   :  { %3193 = vrot.lane.b32.xlu1 %v3186_v10, %s4788_s6 }
0x126d   :  { %v3194_v28 = vpop.permute.xlu1 %3193 }
0x126e   :  { %4030 = vmatmul.mubr.msk.f32.vlgmr.msra.gmra.mrb[28].mxu0 %vm353_vm9, %v3194_v28 }
0x126f   :  { %4678 = vmatpush3.bf16.msra.mxu0 %v6896_v18  ;;  %4051 = vmatprep.mubr.msk.f32.mxu0 %vm4807_vm11, %v7354_v13 }
0x1270   :  { %4679 = vmatprep.subr.bf16.mxu0 %v7275_v63 }
0x1273   :  { %4681 = vmatpush3.bf16.msra.mxu0 %v6919_v35 }
0x1341   :  { %v3263_v0 = vpop.f32.mrb[28].mxu0 }
0x1342   :  { %v3267_v2 = vadd.f32 %v3263_v0, %v7064_v3  ;;  %v4031_v48 = vpop.f32.mrb[29].mxu0 }
0x1344   :  { %4760 = vtanh.f32 %v3267_v2  ;;  %v3268_v30 = vmul.f32 0.5, %v3267_v2 }
0x1346   :  { %4762 = vtanh.f32 %v3268_v30 }
0x134e   :  { %v4761_v26 = vpop.eup %4760 }
0x134f   :  { %3275 = vrot.lane.b32.xlu0 %v4761_v26, %s4790_s4 }
0x1350   :  { %v4763_v4 = vpop.eup %4762 }
0x1351   :  { %v3270_v43 = vadd.f32 1.0, %v4763_v4 }
0x1353   :  { %v3271_v54 = vmul.f32 0.5, %v3270_v43  ;;  %v3670_v43 = vld [vmem:[%s7184_s20] ss:$0 sm:$0xff] }
0x1355   :  { %v3273_v22 = vmul.f32 %v3271_v54, %v3180_v42 }
0x13c1   :  { %v3276_v40 = vpop.permute.xlu0 %3275 }
0x13c2   :  { %v3278_v25 = vmul.f32 %v3276_v40, %v3271_v54 }
0x13c4   :  { %3280 = vrot.lane.b32.xlu1 %v3278_v25, %s4790_s4 }
0x1436   :  { %v3281_v8 = vpop.permute.xlu1 %3280 }
0x1437   :  { %v3283_v55 = vadd.f32 %v3281_v8, %v3273_v22 }
0x1439   :  { %4764 = vtanh.f32 %v3283_v55 }
0x1443   :  { %v4765_v12 = vpop.eup %4764 }
0x1444   :  { %3286 = vrot.lane.b32.xlu0 %v4765_v12, %s4790_s4 }
0x14b6   :  { %v3287_v3 = vpop.permute.xlu0 %3286 }
0x14b7   :  { %v3289_v16 = vmul.f32 %v3287_v3, %v3271_v54 }
0x14b9   :  { %3296 = vrot.lane.b32.xlu1 %v3289_v16, %s4788_s6 }
0x152b   :  { %v3297_v14 = vpop.permute.xlu1 %3296 }
0x152c   :  { %4041 = vmatmul.mubr.msk.f32.vlgmr.msra.gmra.mrb[20].mxu1 %vm353_vm9, %v3297_v14 }
0x152d   :  { %4684 = vmatpush3.bf16.msra.mxu1 %v6896_v18  ;;  %4062 = vmatprep.mubr.msk.f32.mxu1 %vm4807_vm11, %v7354_v13 }
0x152e   :  { %4685 = vmatprep.subr.bf16.mxu1 %v7275_v63 }
0x1531   :  { %4687 = vmatpush3.bf16.msra.mxu1 %v6919_v35 }
0x15ff   :  { %v3366_v36 = vpop.f32.mrb[20].mxu1 }
0x1600   :  { %v3370_v29 = vadd.f32 %v3366_v36, %v7067_v21  ;;  %v4042_v47 = vpop.f32.mrb[21].mxu1 }
0x1602   :  { %4766 = vtanh.f32 %v3370_v29  ;;  %v3371_v27 = vmul.f32 0.5, %v3370_v29 }
0x1604   :  { %4768 = vtanh.f32 %v3371_v27 }
0x160c   :  { %v4767_v20 = vpop.eup %4766 }
0x160d   :  { %3378 = vrot.lane.b32.xlu0 %v4767_v20, %s4790_s4 }
0x160e   :  { %v4769_v37 = vpop.eup %4768 }
0x160f   :  { %v3373_v1 = vadd.f32 1.0, %v4769_v37 }
0x1611   :  { %v3374_v18 = vmul.f32 0.5, %v3373_v1 }
0x1613   :  { %v3376_v63 = vmul.f32 %v3374_v18, %v3283_v55 }
0x167f   :  { %v3379_v62 = vpop.permute.xlu0 %3378 }
0x1680   :  { %v3381_v60 = vmul.f32 %v3379_v62, %v3374_v18 }
0x1682   :  { %3383 = vrot.lane.b32.xlu1 %v3381_v60, %s4790_s4 }
0x16f4   :  { %v3384_v13 = vpop.permute.xlu1 %3383 }
0x16f5   :  { %v3386_v35 = vadd.f32 %v3384_v13, %v3376_v63 }
0x16f7   :  { %4770 = vtanh.f32 %v3386_v35 }
0x1701   :  { %v4771_v19 = vpop.eup %4770 }
0x1702   :  { %3389 = vrot.lane.b32.xlu0 %v4771_v19, %s4790_s4 }
0x1774   :  { %v3390_v21 = vpop.permute.xlu0 %3389 }
0x1775   :  { %v3392_v11 = vmul.f32 %v3390_v21, %v3374_v18 }
0x1777   :  { %3399 = vrot.lane.b32.xlu1 %v3392_v11, %s4788_s6 }
0x17e9   :  { %v3400_v7 = vpop.permute.xlu1 %3399 }
0x17ea   :  { %4052 = vmatmul.mubr.msk.f32.vlgmr.msra.gmra.mrb[30].mxu0 %vm353_vm9, %v3400_v7 }
0x18bd   :  { %v3469_v41 = vpop.f32.mrb[30].mxu0 }
0x18be   :  { %v3473_v52 = vadd.f32 %v3469_v41, %v7070_v49  ;;  %v4053_v24 = vpop.f32.mrb[31].mxu0 }
0x18c0   :  { %4772 = vtanh.f32 %v3473_v52  ;;  %v3474_v39 = vmul.f32 0.5, %v3473_v52 }
0x18c2   :  { %4774 = vtanh.f32 %v3474_v39 }
0x18ca   :  { %v4773_v15 = vpop.eup %4772 }
0x18cb   :  { %3481 = vrot.lane.b32.xlu0 %v4773_v15, %s4790_s4 }
0x18cc   :  { %v4775_v44 = vpop.eup %4774 }
0x18cd   :  { %v3476_v46 = vadd.f32 1.0, %v4775_v44 }
0x18cf   :  { %v3477_v34 = vmul.f32 0.5, %v3476_v46 }
0x18d1   :  { %v3479_v45 = vmul.f32 %v3477_v34, %v3386_v35 }
0x193d   :  { %v3482_v9 = vpop.permute.xlu0 %3481 }
0x193e   :  { %v3484_v31 = vmul.f32 %v3482_v9, %v3477_v34 }
0x1940   :  { %3486 = vrot.lane.b32.xlu1 %v3484_v31, %s4790_s4 }
0x19b2   :  { %v3487_v23 = vpop.permute.xlu1 %3486 }
0x19b3   :  { %v3489_v59 = vadd.f32 %v3487_v23, %v3479_v45 }
0x19b5   :  { %4776 = vtanh.f32 %v3489_v59 }
0x19bf   :  { %v4777_v6 = vpop.eup %4776 }
0x19c0   :  { %3492 = vrot.lane.b32.xlu0 %v4777_v6, %s4790_s4 }
0x1a32   :  { %v3493_v49 = vpop.permute.xlu0 %3492 }
0x1a33   :  { %v3495_v51 = vmul.f32 %v3493_v49, %v3477_v34 }
0x1a35   :  { %3502 = vrot.lane.b32.xlu1 %v3495_v51, %s4788_s6 }
0x1aa7   :  { %v3503_v38 = vpop.permute.xlu1 %3502 }
0x1aa8   :  { %4063 = vmatmul.mubr.msk.f32.vlgmr.msra.gmra.mrb[22].mxu1 %vm353_vm9, %v3503_v38 }
0x1b7b   :  { %v3572_v57 = vpop.f32.mrb[22].mxu1 }
0x1b7c   :  { %v3576_v56 = vadd.f32 %v3572_v57, %v7073_v5  ;;  %v4064_v50 = vpop.f32.mrb[23].mxu1  ;;  %v27_v5 = vstv %s7183_s21 }
0x1b7d   :  { %28 = vst [vmem:[#allocation2] sm:$0x1] %v27_v5 }
0x1b7e   :  { %4778 = vtanh.f32 %v3576_v56  ;;  %v3577_v58 = vmul.f32 0.5, %v3576_v56 }
0x1b80   :  { %4780 = vtanh.f32 %v3577_v58 }
0x1b84   :  { %v3671_v22 = vld [vmem:[#allocation2] ss:$0 sm:$0xff] }
0x1b88   :  { %v4779_v61 = vpop.eup %4778 }
0x1b89   :  { %3584 = vrot.lane.b32.xlu0 %v4779_v61, %s4790_s4 }
0x1b8a   :  { %v4781_v17 = vpop.eup %4780 }
0x1b8b   :  { %v3579_v42 = vadd.f32 1.0, %v4781_v17 }
0x1b8d   :  { %v3580_v53 = vmul.f32 0.5, %v3579_v42 }
0x1b8f   :  { %v3582_v28 = vmul.f32 %v3580_v53, %v3489_v59 }
0x1bfb   :  { %v3585_v32 = vpop.permute.xlu0 %3584 }
0x1bfc   :  { %v3587_v10 = vmul.f32 %v3585_v32, %v3580_v53 }
0x1bfe   :  { %3589 = vrot.lane.b32.xlu1 %v3587_v10, %s4790_s4 }
0x1c70   :  { %v3590_v0 = vpop.permute.xlu1 %3589 }
0x1c71   :  { %v3592_v2 = vadd.f32 %v3590_v0, %v3582_v28 }
0x1c73   :  { %4782 = vtanh.f32 %v3592_v2 }
0x1c7d   :  { %v4783_v48 = vpop.eup %4782 }
0x1c7e   :  { %3595 = vrot.lane.b32.xlu0 %v4783_v48, %s4790_s4 }
0x1cf0   :  { %v3596_v26 = vpop.permute.xlu0 %3595 }
0x1cf1   :  { %v3598_v30 = vmul.f32 %v3596_v26, %v3580_v53 }
0x1cf3   :  { %3601 = vrot.lane.b32.xlu1 %v3598_v30, %s4788_s6 }
0x1d65   :  { %v3602_v4 = vpop.permute.xlu1 %3601 }
0x1d66   :  { %v3604_v54 = vadd.f32 %v3602_v4, %v7079_v33 }
0x1d68   :  { %v3612_v40 = vmul.f32 %v3670_v43, %v3604_v54 }
0x1d6a   :  { %v3614_v25 = vsel %vm3613_vm12, %v3612_v40, 0.0 }
0x1d6b   :  { %3615 = vadd.xlane.f32.xlu0 %v3614_v25 }
0x1df8   :  { %v3616_v8 = vpop.xlane.xlu0 %3615 }
0x1df9   :  { %v3624_v55 = vadd.f32 %v3671_v22, %v3616_v8 }
0x1dfb   :  { %3626 = vst.msk [vmem:[%s7185_s22] sm:$0x3] %vm3625_vm13, %v3624_v55 }

</bundles_post_ra>
